<compile_context>
chip_gen: v5e
topology: v5e:2x2
jax: 0.10.0
libtpu: 0.0.40
codegen_flags: <defaults>
</compile_context>

<pallas_src>
import jax
import jax.numpy as jnp
from jax.experimental import pallas as pl
from jax.experimental.pallas import tpu as pltpu

_EPS = 1e-5


def _encoder_kernel(x_ref,
                    w1_ref, w2_hbm, w3_hbm, w4_hbm,
                    p1_ref, p2_ref, p3_ref, p4_ref,
                    out_ref,
                    w2_vmem, w3_vmem, w4_vmem,
                    sems):
    """Fused Linear + ReLU + BatchNorm1d (training-mode batch stats), 4 blocks.

    p*_ref are packed per-layer params: row 0 = bias, row 1 = gamma, row 2 = beta.
    """
    # Kick off the layer-2..4 weight copies immediately so they overlap with
    # layer-1..3 compute (and with each other).
    cp2 = pltpu.make_async_copy(w2_hbm, w2_vmem, sems.at[0])
    cp3 = pltpu.make_async_copy(w3_hbm, w3_vmem, sems.at[1])
    cp4 = pltpu.make_async_copy(w4_hbm, w4_vmem, sems.at[2])
    cp2.start()
    cp3.start()
    cp4.start()

    inv_b = 1.0 / x_ref.shape[0]  # static python float

    def layer(h_bf16, w_bf16, p_ref, out_bf16):
        # Linear: bf16 x bf16 on the MXU, f32 accumulate; f32 bias add.
        z = jnp.dot(h_bf16, w_bf16, preferred_element_type=jnp.float32) + p_ref[0:1, :]
        # ReLU
        a = jnp.maximum(z, 0.0)
        # BatchNorm1d (training mode): biased batch variance, two-pass for
        # numerical robustness (post-ReLU activations have large means).
        mean = jnp.sum(a, axis=0, keepdims=True) * inv_b
        d = a - mean
        var = jnp.sum(d * d, axis=0, keepdims=True) * inv_b
        inv = jax.lax.rsqrt(var + _EPS)
        # Fused affine: y = a * scale + shift  ([1, N] per-feature rows).
        scale = inv * p_ref[1:2, :]
        shift = p_ref[2:3, :] - mean * scale
        y = a * scale + shift
        return y.astype(jnp.bfloat16) if out_bf16 else y

    h = layer(x_ref[...].astype(jnp.bfloat16), w1_ref[...], p1_ref, True)
    cp2.wait()
    h = layer(h, w2_vmem[...], p2_ref, True)
    cp3.wait()
    h = layer(h, w3_vmem[...], p3_ref, True)
    cp4.wait()
    out_ref[...] = layer(h, w4_vmem[...], p4_ref, False)


def _round_up(n, m):
    return ((n + m - 1) // m) * m


def _vmem_limit_bytes(B, dims):
    """Footprint-derived VMEM limit, valid on v7x (64 MiB) and v5e/v6e (128 MiB)."""
    w_bytes = sum(dims[i] * dims[i + 1] * 2 for i in range(4))        # bf16 weights
    p_bytes = sum(8 * dims[i + 1] * 4 for i in range(4))               # [3,N] pads to [8,N]
    act_bytes = 4 * B * max(dims[1:]) * 4                              # ~4 live f32 [B, Nmax]
    io_bytes = B * (dims[0] + dims[-1]) * 4
    footprint = 2 * w_bytes + p_bytes + act_bytes + io_bytes           # weights appear in HBM-ref + scratch
    limit = int(footprint * 1.5)
    return max(16 * 1024 * 1024, min(limit, 48 * 1024 * 1024))


def encoder_forward(x, params, latent_dim):
    """params: list of (W_bf16 [in, out_padded], packed [3, out_padded] f32) per layer."""
    B = x.shape[0]
    dims = [x.shape[1]] + [p[0].shape[1] for p in params]
    out_dim_padded = dims[-1]

    W1, P1 = params[0]
    W2, P2 = params[1]
    W3, P3 = params[2]
    W4, P4 = params[3]

    vmem = pl.BlockSpec(memory_space=pltpu.VMEM)
    hbm = pl.BlockSpec(memory_space=pl.ANY)

    out = pl.pallas_call(
        _encoder_kernel,
        out_shape=jax.ShapeDtypeStruct((B, out_dim_padded), jnp.float32),
        in_specs=[vmem,                      # x
                  vmem, hbm, hbm, hbm,       # W1 (auto-DMA), W2..W4 (raw HBM, manual DMA)
                  vmem, vmem, vmem, vmem],   # packed per-layer params
        out_specs=vmem,
        scratch_shapes=[
            pltpu.VMEM(W2.shape, jnp.bfloat16),
            pltpu.VMEM(W3.shape, jnp.bfloat16),
            pltpu.VMEM(W4.shape, jnp.bfloat16),
            pltpu.SemaphoreType.DMA((3,)),
        ],
        compiler_params=pltpu.CompilerParams(
            vmem_limit_bytes=_vmem_limit_bytes(B, dims)),
    )(x, W1, W2, W3, W4, P1, P2, P3, P4)

    # out.chunk(2, dim=1) -> (mu, variance); drop lane padding first.
    mu = out[:, :latent_dim]
    variance = out[:, latent_dim:2 * latent_dim]
    return mu, variance


def init_params(key, inp_dim, latent_dim):
    """PyTorch-style init: Linear U(-1/sqrt(fan_in), +), BN gamma=1, beta=0.

    Weights stored as bf16 (matmul operands); bias/gamma/beta packed per layer
    into one f32 [3, out] array (row 0 = bias, 1 = gamma, 2 = beta).
    The final layer is padded to a multiple of 128 output lanes.
    """
    out_true = 2 * latent_dim
    out_pad = _round_up(out_true, 128)
    dims = [inp_dim, 1024, 512, 256, out_pad]
    true_dims = [inp_dim, 1024, 512, 256, out_true]

    params = []
    for i in range(4):
        fan_in = dims[i]
        fan_out_true = true_dims[i + 1]
        fan_out_pad = dims[i + 1]
        key, kw, kb = jax.random.split(key, 3)
        bound = 1.0 / jnp.sqrt(float(fan_in))
        W = jax.random.uniform(kw, (fan_in, fan_out_true), jnp.float32, -bound, bound)
        b = jax.random.uniform(kb, (fan_out_true,), jnp.float32, -bound, bound)
        if fan_out_pad != fan_out_true:
            W = jnp.pad(W, ((0, 0), (0, fan_out_pad - fan_out_true)))
            b = jnp.pad(b, (0, fan_out_pad - fan_out_true))
        gamma = jnp.ones((fan_out_pad,), jnp.float32)
        beta = jnp.zeros((fan_out_pad,), jnp.float32)
        packed = jnp.stack([b, gamma, beta], axis=0)          # [3, out_pad]
        params.append((W.astype(jnp.bfloat16), packed))
    return params


if __name__ == "__main__":
    B = 8            # batch (multiple of 8 sublanes; grow toward 128/256 for MXU occupancy)
    INP_DIM = 128    # Encoder(input_size=128, ...)
    LATENT = 32      # Encoder(latent_dim=32) -> true output dim 64 (padded to 128 lanes)

    key = jax.random.PRNGKey(0)
    key, kx = jax.random.split(key)
    x = jax.random.normal(kx, (B, INP_DIM), jnp.float32)

    params = init_params(key, INP_DIM, LATENT)

    mu, variance = encoder_forward(x, params, LATENT)
    jax.block_until_ready((mu, variance))

    assert mu.shape == (B, LATENT) and variance.shape == (B, LATENT)
    assert bool(jnp.all(jnp.isfinite(mu))) and bool(jnp.all(jnp.isfinite(variance)))
    print("KERNEL_OK")
</pallas_src>

<mosaic_0001>
module attributes {stable_mosaic.version = 11 : i64} {
  func.func @_encoder_kernel(%arg0: memref<8x128xf32, #tpu.memory_space<vmem>>, %arg1: memref<128x1024xbf16, #tpu.memory_space<vmem>>, %arg2: memref<1024x512xbf16, #tpu.memory_space<any>>, %arg3: memref<512x256xbf16, #tpu.memory_space<any>>, %arg4: memref<256x128xbf16, #tpu.memory_space<any>>, %arg5: memref<3x1024xf32, #tpu.memory_space<vmem>>, %arg6: memref<3x512xf32, #tpu.memory_space<vmem>>, %arg7: memref<3x256xf32, #tpu.memory_space<vmem>>, %arg8: memref<3x128xf32, #tpu.memory_space<vmem>>, %arg9: memref<8x128xf32, #tpu.memory_space<vmem>>, %arg10: memref<1024x512xbf16, #tpu.memory_space<vmem>>, %arg11: memref<512x256xbf16, #tpu.memory_space<vmem>>, %arg12: memref<256x128xbf16, #tpu.memory_space<vmem>>, %arg13: memref<3x!tpu.dma_semaphore, #tpu.memory_space<semaphore_mem>>) attributes {dimension_semantics = [], scalar_prefetch = 0 : i64, scratch_operands = 4 : i64, tpu.core_type = #tpu.core_type<tc>} {
    %c0_i32 = arith.constant 0 : i32
    %0 = tpu.memref_slice %arg13[%c0_i32] : memref<3x!tpu.dma_semaphore, #tpu.memory_space<semaphore_mem>> -> memref<1x!tpu.dma_semaphore, #tpu.memory_space<semaphore_mem>>
    %1 = tpu.memref_squeeze %0 : memref<1x!tpu.dma_semaphore, #tpu.memory_space<semaphore_mem>> -> memref<!tpu.dma_semaphore, #tpu.memory_space<semaphore_mem>>
    tpu.enqueue_dma source(%arg2 : memref<1024x512xbf16, #tpu.memory_space<any>>) target(%arg10 : memref<1024x512xbf16, #tpu.memory_space<vmem>>) target_semaphore(%1 : memref<!tpu.dma_semaphore, #tpu.memory_space<semaphore_mem>>)
    %c1_i32 = arith.constant 1 : i32
    %2 = tpu.memref_slice %arg13[%c1_i32] : memref<3x!tpu.dma_semaphore, #tpu.memory_space<semaphore_mem>> -> memref<1x!tpu.dma_semaphore, #tpu.memory_space<semaphore_mem>>
    %3 = tpu.memref_squeeze %2 : memref<1x!tpu.dma_semaphore, #tpu.memory_space<semaphore_mem>> -> memref<!tpu.dma_semaphore, #tpu.memory_space<semaphore_mem>>
    tpu.enqueue_dma source(%arg3 : memref<512x256xbf16, #tpu.memory_space<any>>) target(%arg11 : memref<512x256xbf16, #tpu.memory_space<vmem>>) target_semaphore(%3 : memref<!tpu.dma_semaphore, #tpu.memory_space<semaphore_mem>>)
    %c2_i32 = arith.constant 2 : i32
    %4 = tpu.memref_slice %arg13[%c2_i32] : memref<3x!tpu.dma_semaphore, #tpu.memory_space<semaphore_mem>> -> memref<1x!tpu.dma_semaphore, #tpu.memory_space<semaphore_mem>>
    %5 = tpu.memref_squeeze %4 : memref<1x!tpu.dma_semaphore, #tpu.memory_space<semaphore_mem>> -> memref<!tpu.dma_semaphore, #tpu.memory_space<semaphore_mem>>
    tpu.enqueue_dma source(%arg4 : memref<256x128xbf16, #tpu.memory_space<any>>) target(%arg12 : memref<256x128xbf16, #tpu.memory_space<vmem>>) target_semaphore(%5 : memref<!tpu.dma_semaphore, #tpu.memory_space<semaphore_mem>>)
    %c0 = arith.constant 0 : index
    %c0_0 = arith.constant 0 : index
    %6 = vector.load %arg0[%c0, %c0_0] : memref<8x128xf32, #tpu.memory_space<vmem>>, vector<8x128xf32>
    %7 = arith.truncf %6 : vector<8x128xf32> to vector<8x128xbf16>
    %c0_1 = arith.constant 0 : index
    %c0_2 = arith.constant 0 : index
    %8 = vector.load %arg1[%c0_1, %c0_2] : memref<128x1024xbf16, #tpu.memory_space<vmem>>, vector<128x1024xbf16>
    %cst = arith.constant dense<0.000000e+00> : vector<8x1024xf32>
    %9 = tpu.matmul %7, %8, %cst {dimension_numbers = #tpu.dot_dimension_numbers<[1], [0], [0], [1], [0, 0, 1, 1], [], []>} : vector<8x128xbf16>, vector<128x1024xbf16>, vector<8x1024xf32> -> vector<8x1024xf32>
    %c0_3 = arith.constant 0 : index
    %c0_4 = arith.constant 0 : index
    %10 = vector.load %arg5[%c0_3, %c0_4] : memref<3x1024xf32, #tpu.memory_space<vmem>>, vector<1x1024xf32>
    %11 = vector.broadcast %10 : vector<1x1024xf32> to vector<8x1024xf32>
    %12 = arith.addf %9, %11 : vector<8x1024xf32>
    %cst_5 = arith.constant 0.000000e+00 : f32
    %13 = vector.broadcast %cst_5 : f32 to vector<8x1024xf32>
    %14 = arith.maximumf %12, %13 : vector<8x1024xf32>
    %cst_6 = arith.constant dense<0.000000e+00> : vector<1024xf32>
    %15 = vector.multi_reduction <add>, %14, %cst_6 [0] : vector<8x1024xf32> to vector<1024xf32>
    %16 = vector.shape_cast %15 : vector<1024xf32> to vector<1x1024xf32>
    %cst_7 = arith.constant 1.250000e-01 : f32
    %17 = vector.broadcast %cst_7 : f32 to vector<1x1024xf32>
    %18 = arith.mulf %16, %17 : vector<1x1024xf32>
    %19 = vector.broadcast %18 : vector<1x1024xf32> to vector<8x1024xf32>
    %20 = arith.subf %14, %19 : vector<8x1024xf32>
    %21 = arith.mulf %20, %20 : vector<8x1024xf32>
    %cst_8 = arith.constant dense<0.000000e+00> : vector<1024xf32>
    %22 = vector.multi_reduction <add>, %21, %cst_8 [0] : vector<8x1024xf32> to vector<1024xf32>
    %23 = vector.shape_cast %22 : vector<1024xf32> to vector<1x1024xf32>
    %cst_9 = arith.constant 1.250000e-01 : f32
    %24 = vector.broadcast %cst_9 : f32 to vector<1x1024xf32>
    %25 = arith.mulf %23, %24 : vector<1x1024xf32>
    %cst_10 = arith.constant 9.99999974E-6 : f32
    %26 = vector.broadcast %cst_10 : f32 to vector<1x1024xf32>
    %27 = arith.addf %25, %26 : vector<1x1024xf32>
    %28 = math.rsqrt %27 : vector<1x1024xf32>
    %c1 = arith.constant 1 : index
    %c0_11 = arith.constant 0 : index
    %29 = vector.load %arg5[%c1, %c0_11] : memref<3x1024xf32, #tpu.memory_space<vmem>>, vector<1x1024xf32>
    %30 = arith.mulf %28, %29 : vector<1x1024xf32>
    %c2 = arith.constant 2 : index
    %c0_12 = arith.constant 0 : index
    %31 = vector.load %arg5[%c2, %c0_12] : memref<3x1024xf32, #tpu.memory_space<vmem>>, vector<1x1024xf32>
    %32 = arith.mulf %18, %30 : vector<1x1024xf32>
    %33 = arith.subf %31, %32 : vector<1x1024xf32>
    %34 = vector.broadcast %30 : vector<1x1024xf32> to vector<8x1024xf32>
    %35 = arith.mulf %14, %34 : vector<8x1024xf32>
    %36 = vector.broadcast %33 : vector<1x1024xf32> to vector<8x1024xf32>
    %37 = arith.addf %35, %36 : vector<8x1024xf32>
    %38 = arith.truncf %37 : vector<8x1024xf32> to vector<8x1024xbf16>
    %c0_i32_13 = arith.constant 0 : i32
    %39 = tpu.memref_slice %arg13[%c0_i32_13] : memref<3x!tpu.dma_semaphore, #tpu.memory_space<semaphore_mem>> -> memref<1x!tpu.dma_semaphore, #tpu.memory_space<semaphore_mem>>
    %40 = tpu.memref_squeeze %39 : memref<1x!tpu.dma_semaphore, #tpu.memory_space<semaphore_mem>> -> memref<!tpu.dma_semaphore, #tpu.memory_space<semaphore_mem>>
    tpu.wait_dma2 semaphore(%40 : memref<!tpu.dma_semaphore, #tpu.memory_space<semaphore_mem>>) src(%arg2 : memref<1024x512xbf16, #tpu.memory_space<any>>) dst(%arg10 : memref<1024x512xbf16, #tpu.memory_space<vmem>>)
    %c0_14 = arith.constant 0 : index
    %c0_15 = arith.constant 0 : index
    %41 = vector.load %arg10[%c0_14, %c0_15] : memref<1024x512xbf16, #tpu.memory_space<vmem>>, vector<1024x512xbf16>
    %cst_16 = arith.constant dense<0.000000e+00> : vector<8x512xf32>
    %42 = tpu.matmul %38, %41, %cst_16 {dimension_numbers = #tpu.dot_dimension_numbers<[1], [0], [0], [1], [0, 0, 1, 1], [], []>} : vector<8x1024xbf16>, vector<1024x512xbf16>, vector<8x512xf32> -> vector<8x512xf32>
    %c0_17 = arith.constant 0 : index
    %c0_18 = arith.constant 0 : index
    %43 = vector.load %arg6[%c0_17, %c0_18] : memref<3x512xf32, #tpu.memory_space<vmem>>, vector<1x512xf32>
    %44 = vector.broadcast %43 : vector<1x512xf32> to vector<8x512xf32>
    %45 = arith.addf %42, %44 : vector<8x512xf32>
    %cst_19 = arith.constant 0.000000e+00 : f32
    %46 = vector.broadcast %cst_19 : f32 to vector<8x512xf32>
    %47 = arith.maximumf %45, %46 : vector<8x512xf32>
    %cst_20 = arith.constant dense<0.000000e+00> : vector<512xf32>
    %48 = vector.multi_reduction <add>, %47, %cst_20 [0] : vector<8x512xf32> to vector<512xf32>
    %49 = vector.shape_cast %48 : vector<512xf32> to vector<1x512xf32>
    %cst_21 = arith.constant 1.250000e-01 : f32
    %50 = vector.broadcast %cst_21 : f32 to vector<1x512xf32>
    %51 = arith.mulf %49, %50 : vector<1x512xf32>
    %52 = vector.broadcast %51 : vector<1x512xf32> to vector<8x512xf32>
    %53 = arith.subf %47, %52 : vector<8x512xf32>
    %54 = arith.mulf %53, %53 : vector<8x512xf32>
    %cst_22 = arith.constant dense<0.000000e+00> : vector<512xf32>
    %55 = vector.multi_reduction <add>, %54, %cst_22 [0] : vector<8x512xf32> to vector<512xf32>
    %56 = vector.shape_cast %55 : vector<512xf32> to vector<1x512xf32>
    %cst_23 = arith.constant 1.250000e-01 : f32
    %57 = vector.broadcast %cst_23 : f32 to vector<1x512xf32>
    %58 = arith.mulf %56, %57 : vector<1x512xf32>
    %cst_24 = arith.constant 9.99999974E-6 : f32
    %59 = vector.broadcast %cst_24 : f32 to vector<1x512xf32>
    %60 = arith.addf %58, %59 : vector<1x512xf32>
    %61 = math.rsqrt %60 : vector<1x512xf32>
    %c1_25 = arith.constant 1 : index
    %c0_26 = arith.constant 0 : index
    %62 = vector.load %arg6[%c1_25, %c0_26] : memref<3x512xf32, #tpu.memory_space<vmem>>, vector<1x512xf32>
    %63 = arith.mulf %61, %62 : vector<1x512xf32>
    %c2_27 = arith.constant 2 : index
    %c0_28 = arith.constant 0 : index
    %64 = vector.load %arg6[%c2_27, %c0_28] : memref<3x512xf32, #tpu.memory_space<vmem>>, vector<1x512xf32>
    %65 = arith.mulf %51, %63 : vector<1x512xf32>
    %66 = arith.subf %64, %65 : vector<1x512xf32>
    %67 = vector.broadcast %63 : vector<1x512xf32> to vector<8x512xf32>
    %68 = arith.mulf %47, %67 : vector<8x512xf32>
    %69 = vector.broadcast %66 : vector<1x512xf32> to vector<8x512xf32>
    %70 = arith.addf %68, %69 : vector<8x512xf32>
    %71 = arith.truncf %70 : vector<8x512xf32> to vector<8x512xbf16>
    %c1_i32_29 = arith.constant 1 : i32
    %72 = tpu.memref_slice %arg13[%c1_i32_29] : memref<3x!tpu.dma_semaphore, #tpu.memory_space<semaphore_mem>> -> memref<1x!tpu.dma_semaphore, #tpu.memory_space<semaphore_mem>>
    %73 = tpu.memref_squeeze %72 : memref<1x!tpu.dma_semaphore, #tpu.memory_space<semaphore_mem>> -> memref<!tpu.dma_semaphore, #tpu.memory_space<semaphore_mem>>
    tpu.wait_dma2 semaphore(%73 : memref<!tpu.dma_semaphore, #tpu.memory_space<semaphore_mem>>) src(%arg3 : memref<512x256xbf16, #tpu.memory_space<any>>) dst(%arg11 : memref<512x256xbf16, #tpu.memory_space<vmem>>)
    %c0_30 = arith.constant 0 : index
    %c0_31 = arith.constant 0 : index
    %74 = vector.load %arg11[%c0_30, %c0_31] : memref<512x256xbf16, #tpu.memory_space<vmem>>, vector<512x256xbf16>
    %cst_32 = arith.constant dense<0.000000e+00> : vector<8x256xf32>
    %75 = tpu.matmul %71, %74, %cst_32 {dimension_numbers = #tpu.dot_dimension_numbers<[1], [0], [0], [1], [0, 0, 1, 1], [], []>} : vector<8x512xbf16>, vector<512x256xbf16>, vector<8x256xf32> -> vector<8x256xf32>
    %c0_33 = arith.constant 0 : index
    %c0_34 = arith.constant 0 : index
    %76 = vector.load %arg7[%c0_33, %c0_34] : memref<3x256xf32, #tpu.memory_space<vmem>>, vector<1x256xf32>
    %77 = vector.broadcast %76 : vector<1x256xf32> to vector<8x256xf32>
    %78 = arith.addf %75, %77 : vector<8x256xf32>
    %cst_35 = arith.constant 0.000000e+00 : f32
    %79 = vector.broadcast %cst_35 : f32 to vector<8x256xf32>
    %80 = arith.maximumf %78, %79 : vector<8x256xf32>
    %cst_36 = arith.constant dense<0.000000e+00> : vector<256xf32>
    %81 = vector.multi_reduction <add>, %80, %cst_36 [0] : vector<8x256xf32> to vector<256xf32>
    %82 = vector.shape_cast %81 : vector<256xf32> to vector<1x256xf32>
    %cst_37 = arith.constant 1.250000e-01 : f32
    %83 = vector.broadcast %cst_37 : f32 to vector<1x256xf32>
    %84 = arith.mulf %82, %83 : vector<1x256xf32>
    %85 = vector.broadcast %84 : vector<1x256xf32> to vector<8x256xf32>
    %86 = arith.subf %80, %85 : vector<8x256xf32>
    %87 = arith.mulf %86, %86 : vector<8x256xf32>
    %cst_38 = arith.constant dense<0.000000e+00> : vector<256xf32>
    %88 = vector.multi_reduction <add>, %87, %cst_38 [0] : vector<8x256xf32> to vector<256xf32>
    %89 = vector.shape_cast %88 : vector<256xf32> to vector<1x256xf32>
    %cst_39 = arith.constant 1.250000e-01 : f32
    %90 = vector.broadcast %cst_39 : f32 to vector<1x256xf32>
    %91 = arith.mulf %89, %90 : vector<1x256xf32>
    %cst_40 = arith.constant 9.99999974E-6 : f32
    %92 = vector.broadcast %cst_40 : f32 to vector<1x256xf32>
    %93 = arith.addf %91, %92 : vector<1x256xf32>
    %94 = math.rsqrt %93 : vector<1x256xf32>
    %c1_41 = arith.constant 1 : index
    %c0_42 = arith.constant 0 : index
    %95 = vector.load %arg7[%c1_41, %c0_42] : memref<3x256xf32, #tpu.memory_space<vmem>>, vector<1x256xf32>
    %96 = arith.mulf %94, %95 : vector<1x256xf32>
    %c2_43 = arith.constant 2 : index
    %c0_44 = arith.constant 0 : index
    %97 = vector.load %arg7[%c2_43, %c0_44] : memref<3x256xf32, #tpu.memory_space<vmem>>, vector<1x256xf32>
    %98 = arith.mulf %84, %96 : vector<1x256xf32>
    %99 = arith.subf %97, %98 : vector<1x256xf32>
    %100 = vector.broadcast %96 : vector<1x256xf32> to vector<8x256xf32>
    %101 = arith.mulf %80, %100 : vector<8x256xf32>
    %102 = vector.broadcast %99 : vector<1x256xf32> to vector<8x256xf32>
    %103 = arith.addf %101, %102 : vector<8x256xf32>
    %104 = arith.truncf %103 : vector<8x256xf32> to vector<8x256xbf16>
    %c2_i32_45 = arith.constant 2 : i32
    %105 = tpu.memref_slice %arg13[%c2_i32_45] : memref<3x!tpu.dma_semaphore, #tpu.memory_space<semaphore_mem>> -> memref<1x!tpu.dma_semaphore, #tpu.memory_space<semaphore_mem>>
    %106 = tpu.memref_squeeze %105 : memref<1x!tpu.dma_semaphore, #tpu.memory_space<semaphore_mem>> -> memref<!tpu.dma_semaphore, #tpu.memory_space<semaphore_mem>>
    tpu.wait_dma2 semaphore(%106 : memref<!tpu.dma_semaphore, #tpu.memory_space<semaphore_mem>>) src(%arg4 : memref<256x128xbf16, #tpu.memory_space<any>>) dst(%arg12 : memref<256x128xbf16, #tpu.memory_space<vmem>>)
    %c0_46 = arith.constant 0 : index
    %c0_47 = arith.constant 0 : index
    %107 = vector.load %arg12[%c0_46, %c0_47] : memref<256x128xbf16, #tpu.memory_space<vmem>>, vector<256x128xbf16>
    %cst_48 = arith.constant dense<0.000000e+00> : vector<8x128xf32>
    %108 = tpu.matmul %104, %107, %cst_48 {dimension_numbers = #tpu.dot_dimension_numbers<[1], [0], [0], [1], [0, 0, 1, 1], [], []>} : vector<8x256xbf16>, vector<256x128xbf16>, vector<8x128xf32> -> vector<8x128xf32>
    %c0_49 = arith.constant 0 : index
    %c0_50 = arith.constant 0 : index
    %109 = vector.load %arg8[%c0_49, %c0_50] : memref<3x128xf32, #tpu.memory_space<vmem>>, vector<1x128xf32>
    %110 = vector.broadcast %109 : vector<1x128xf32> to vector<8x128xf32>
    %111 = arith.addf %108, %110 : vector<8x128xf32>
    %cst_51 = arith.constant 0.000000e+00 : f32
    %112 = vector.broadcast %cst_51 : f32 to vector<8x128xf32>
    %113 = arith.maximumf %111, %112 : vector<8x128xf32>
    %cst_52 = arith.constant dense<0.000000e+00> : vector<128xf32>
    %114 = vector.multi_reduction <add>, %113, %cst_52 [0] : vector<8x128xf32> to vector<128xf32>
    %115 = vector.shape_cast %114 : vector<128xf32> to vector<1x128xf32>
    %cst_53 = arith.constant 1.250000e-01 : f32
    %116 = vector.broadcast %cst_53 : f32 to vector<1x128xf32>
    %117 = arith.mulf %115, %116 : vector<1x128xf32>
    %118 = vector.broadcast %117 : vector<1x128xf32> to vector<8x128xf32>
    %119 = arith.subf %113, %118 : vector<8x128xf32>
    %120 = arith.mulf %119, %119 : vector<8x128xf32>
    %cst_54 = arith.constant dense<0.000000e+00> : vector<128xf32>
    %121 = vector.multi_reduction <add>, %120, %cst_54 [0] : vector<8x128xf32> to vector<128xf32>
    %122 = vector.shape_cast %121 : vector<128xf32> to vector<1x128xf32>
    %cst_55 = arith.constant 1.250000e-01 : f32
    %123 = vector.broadcast %cst_55 : f32 to vector<1x128xf32>
    %124 = arith.mulf %122, %123 : vector<1x128xf32>
    %cst_56 = arith.constant 9.99999974E-6 : f32
    %125 = vector.broadcast %cst_56 : f32 to vector<1x128xf32>
    %126 = arith.addf %124, %125 : vector<1x128xf32>
    %127 = math.rsqrt %126 : vector<1x128xf32>
    %c1_57 = arith.constant 1 : index
    %c0_58 = arith.constant 0 : index
    %128 = vector.load %arg8[%c1_57, %c0_58] : memref<3x128xf32, #tpu.memory_space<vmem>>, vector<1x128xf32>
    %129 = arith.mulf %127, %128 : vector<1x128xf32>
    %c2_59 = arith.constant 2 : index
    %c0_60 = arith.constant 0 : index
    %130 = vector.load %arg8[%c2_59, %c0_60] : memref<3x128xf32, #tpu.memory_space<vmem>>, vector<1x128xf32>
    %131 = arith.mulf %117, %129 : vector<1x128xf32>
    %132 = arith.subf %130, %131 : vector<1x128xf32>
    %133 = vector.broadcast %129 : vector<1x128xf32> to vector<8x128xf32>
    %134 = arith.mulf %113, %133 : vector<8x128xf32>
    %135 = vector.broadcast %132 : vector<1x128xf32> to vector<8x128xf32>
    %136 = arith.addf %134, %135 : vector<8x128xf32>
    %c0_61 = arith.constant 0 : index
    %c0_62 = arith.constant 0 : index
    %137 = vector.load %arg9[%c0_61, %c0_62] : memref<8x128xf32, #tpu.memory_space<vmem>>, vector<8x128xf32>
    tpu.vector_store %arg9[%c0_61, %c0_62], %136 {strides = array<i32>} : memref<8x128xf32, #tpu.memory_space<vmem>>, vector<8x128xf32>,
    return
  }
}

</mosaic_0001>

<bundles_post_ra>
// kernel: tpu_custom_call.1
= control target key start
LH: loop header
LB: loop body
LE: loop exit
PB: predicated region body
PF: predicated region fallthrough
CT: control target
= control target key end

     0   :  { %14 = vsyncpa [#allocation7], 0  ;;  %s6696_s0 = inlined_call_operand.hbm [shape: f32[8,128], index: 0, kind: input, shape index: {}]   ;;  %s6697_s1 = inlined_call_operand.hbm [shape: bf16[128,1024], index: 1, kind: input, shape index: {}]   ;;  %s6698_s2 = inlined_call_operand.hbm [shape: bf16[1024,512], index: 2, kind: input, shape index: {}]   ;;  %s6699_s3 = inlined_call_operand.hbm [shape: bf16[512,256], index: 3, kind: input, shape index: {}]   ;;  %s6700_s4 = inlined_call_operand.hbm [shape: bf16[256,128], index: 4, kind: input, shape index: {}]   ;;  %s6701_s5 = inlined_call_operand.hbm [shape: f32[3,1024], index: 5, kind: input, shape index: {}]   ;;  %s6702_s6 = inlined_call_operand.hbm [shape: f32[3,512], index: 6, kind: input, shape index: {}]   ;;  %s6703_s7 = inlined_call_operand.hbm [shape: f32[3,256], index: 7, kind: input, shape index: {}]   ;;  %s6704_s8 = inlined_call_operand.vmem [shape: f32[3,128], index: 8, kind: input, shape index: {}]   ;;  %s6705_s9 = inlined_call_operand.hbm [shape: f32[8,128], index: 9, kind: output, shape index: {}]  }
   0x1   :  { %15 = vsyncpa [#allocation10], 0 }
   0x2   :  { %16 = vsyncpa [#allocation13], 0  ;;  %s33_s11 = sshll.u32 %s6697_s1, 4  ;;  %s34_s11 = int_to_ptr.hbm [resolvable:$true] %s33_s11 }
   0x3   :  { %17 = vsyncpa [#allocation8], 0  ;;  %s6222_s12 = smov [#allocation9]   ;;  %s58_s16 = sshll.u32 %s6702_s6, 4  ;;  %s59_s16 = int_to_ptr.hbm [resolvable:$true] %s58_s16 }
   0x4   :  { %s35_s13 = sshll.u32 %s6222_s12, 4  ;;  %s6223_s17 = smov 512   ;;  %s36_s13 = int_to_ptr.vmem [resolvable:$true] %s35_s13 }
   0x5   :  { %s6224_s18 = smov 32   ;;  %s6225_s19 = smov [#allocation12]  }
   0x6   :  { %41 = dma.hbm_to_vmem [thread:$0]  %s34_s11, 8192, %s36_s13, [#allocation10], %s6223_s17, %s6223_s17, %s6224_s18  }
   0x7   :  { %s60_s20 = sshll.u32 %s6225_s19, 4  ;;  %s23_s23 = sshll.u32 %s6696_s0, 4  ;;  %s61_s20 = int_to_ptr.vmem [resolvable:$true] %s60_s20  ;;  %s24_s23 = int_to_ptr.hbm [resolvable:$true] %s23_s23 }
   0x8   :  { %63 = dma.hbm_to_vmem [thread:$0]  %s59_s16, 256, %s61_s20, [#allocation13]  }
   0x9   :  { %s47_s25 = sshll.u32 %s6701_s5, 4  ;;  %s6226_s26 = smov [#allocation6]   ;;  %s48_s25 = int_to_ptr.hbm [resolvable:$true] %s47_s25 }
   0xa   :  { %s25_s27 = sshll.u32 %s6226_s26, 4  ;;  %s6227_s6 = smov [#allocation11]   ;;  %s26_s27 = int_to_ptr.vmem [resolvable:$true] %s25_s27 }
   0xb   :  { %28 = dma.hbm_to_vmem [thread:$0]  %s24_s23, 128, %s26_s27, [#allocation7]  }
   0xc   :  { %s49_s28 = sshll.u32 %s6227_s6, 4  ;;  %s69_s10 = sshll.u32 %s6703_s7, 4  ;;  %s50_s28 = int_to_ptr.vmem [resolvable:$true] %s49_s28  ;;  %s70_s10 = int_to_ptr.hbm [resolvable:$true] %s69_s10 }
   0xd   :  { %52 = dma.hbm_to_vmem [thread:$0]  %s48_s25, 512, %s50_s28, [#allocation10]  }
   0xe   :  { %s6228_s0 = smov [#allocation14]  }
   0xf   :  { %s71_s11 = sshll.u32 %s6228_s0, 4  ;;  %s72_s11 = int_to_ptr.vmem [resolvable:$true] %s71_s11 }
  0x10   :  { %74 = dma.hbm_to_vmem [thread:$0]  %s70_s10, 128, %s72_s11, [#allocation13]  }
  0x11   :  { %6208 = dma.done.wait [#allocation7], 128  }
  0x12   :  { %6209 = vsyncadd [#allocation7], 4294967168 }
  0x13   :  { %6210 = dma.done.wait [#allocation10], 8704  }
  0x14   :  { %6211 = vsyncadd [#allocation10], 4294958592 }
  0x15   :  { %6212 = dma.done.wait [#allocation13], 384  }
  0x16   :  { %6213 = vsyncadd [#allocation13], 4294966912  ;;  %v4172_v0 = vld [vmem:[#allocation9 + $0x1c0] sm:$0xf]  ;;  %v5605_v2 = vld [vmem:[#allocation9 + $0x1c4] sm:$0xf] }
  0x17   :  { %v5609_v1 = vld [vmem:[#allocation9 + $0x1dc] sm:$0xf0]  ;;  %v4174_v4 = vld [vmem:[#allocation9 + $0x1e0] sm:$0xf0]  ;;  %v4180_v5 = vld [vmem:[#allocation9 + $0x1c8] sm:$0xf] }
  0x18   :  { %v4173_v3 = vor.u32 %v5609_v1, %v4172_v0  ;;  %v5610_v6 = vld [vmem:[#allocation9 + $0x1e4] sm:$0xf0]  ;;  %v4177_v7 = vor.u32 %v5605_v2, %v4174_v4  ;;  %v5606_v9 = vld [vmem:[#allocation9 + $0x1cc] sm:$0xf]  ;;  %v4140_v11 = vld [vmem:[#allocation9 + $0x180] sm:$0xf] }
  0x19   :  { %v4181_v8 = vor.u32 %v5610_v6, %v4180_v5  ;;  %v4182_v10 = vld [vmem:[#allocation9 + $0x1e8] sm:$0xf0]  ;;  %v5601_v13 = vld [vmem:[#allocation9 + $0x19c] sm:$0xf0]  ;;  %v5597_v14 = vld [vmem:[#allocation9 + $0x184] sm:$0xf] }
  0x1a   :  { %542 = vmatpush.bf16.msra.mxu0 %v4173_v3  ;;  %v4185_v12 = vor.u32 %v5606_v9, %v4182_v10  ;;  %v4142_v15 = vld [vmem:[#allocation9 + $0x1a0] sm:$0xf0]  ;;  %555 = vmatpush.bf16.msra.mxu1 %v4177_v7  ;;  %v4141_v16 = vor.u32 %v5601_v13, %v4140_v11  ;;  %v4148_v18 = vld [vmem:[#allocation9 + $0x188] sm:$0xf]  ;;  %v5598_v20 = vld [vmem:[#allocation9 + $0x18c] sm:$0xf] }
  0x1b   :  { %568 = vmatpush.bf16.msra.mxu2 %v4181_v8  ;;  %v4145_v17 = vor.u32 %v5597_v14, %v4142_v15  ;;  %v5602_v19 = vld [vmem:[#allocation9 + $0x1a4] sm:$0xf0]  ;;  %v4150_v22 = vld [vmem:[#allocation9 + $0x1a8] sm:$0xf0]  ;;  %v4108_v23 = vld [vmem:[#allocation9 + $0x140] sm:$0xf] }
  0x1c   :  { %581 = vmatpush.bf16.msra.mxu3 %v4185_v12  ;;  %v4149_v21 = vor.u32 %v5602_v19, %v4148_v18  ;;  %v5593_v24 = vld [vmem:[#allocation9 + $0x15c] sm:$0xf0]  ;;  %v4153_v25 = vor.u32 %v5598_v20, %v4150_v22  ;;  %v5589_v26 = vld [vmem:[#allocation9 + $0x144] sm:$0xf]  ;;  %v4116_v28 = vld [vmem:[#allocation9 + $0x148] sm:$0xf] }
  0x1d   :  { %v4110_v27 = vld [vmem:[#allocation9 + $0x160] sm:$0xf0]  ;;  %v4109_v29 = vor.u32 %v5593_v24, %v4108_v23  ;;  %v5594_v30 = vld [vmem:[#allocation9 + $0x164] sm:$0xf0]  ;;  %v5590_v31 = vld [vmem:[#allocation9 + $0x14c] sm:$0xf] }
  0x1e   :  { %543 = vmatpush.bf16.msra.mxu0 %v4141_v16  ;;  %v4118_v32 = vld [vmem:[#allocation9 + $0x168] sm:$0xf0]  ;;  %556 = vmatpush.bf16.msra.mxu1 %v4145_v17  ;;  %v4113_v33 = vor.u32 %v5589_v26, %v4110_v27  ;;  %v4117_v34 = vor.u32 %v5594_v30, %v4116_v28  ;;  %v4076_v35 = vld [vmem:[#allocation9 + $0x100] sm:$0xf]  ;;  %v5581_v37 = vld [vmem:[#allocation9 + $0x104] sm:$0xf] }
  0x1f   :  { %569 = vmatpush.bf16.msra.mxu2 %v4149_v21  ;;  %v5585_v36 = vld [vmem:[#allocation9 + $0x11c] sm:$0xf0]  ;;  %v4121_v38 = vor.u32 %v5590_v31, %v4118_v32  ;;  %v4078_v39 = vld [vmem:[#allocation9 + $0x120] sm:$0xf0]  ;;  %v4084_v40 = vld [vmem:[#allocation9 + $0x108] sm:$0xf] }
  0x20   :  { %582 = vmatpush.bf16.msra.mxu3 %v4153_v25  ;;  %v5586_v41 = vld [vmem:[#allocation9 + $0x124] sm:$0xf0]  ;;  %v5582_v42 = vld [vmem:[#allocation9 + $0x10c] sm:$0xf]  ;;  %v4077_v44 = vor.u32 %v5585_v36, %v4076_v35  ;;  %v4081_v45 = vor.u32 %v5581_v37, %v4078_v39  ;;  %v4044_v47 = vld [vmem:[#allocation9 + $0xc0] sm:$0xf] }
  0x21   :  { %v4086_v43 = vld [vmem:[#allocation9 + $0x128] sm:$0xf0]  ;;  %v4085_v46 = vor.u32 %v5586_v41, %v4084_v40  ;;  %v5577_v48 = vld [vmem:[#allocation9 + $0xdc] sm:$0xf0]  ;;  %v5573_v49 = vld [vmem:[#allocation9 + $0xc4] sm:$0xf] }
  0x22   :  { %544 = vmatpush.bf16.msra.mxu0 %v4109_v29  ;;  %557 = vmatpush.bf16.msra.mxu1 %v4113_v33  ;;  %v4089_v50 = vor.u32 %v5582_v42, %v4086_v43  ;;  %v4046_v51 = vld [vmem:[#allocation9 + $0xe0] sm:$0xf0]  ;;  %v4052_v52 = vld [vmem:[#allocation9 + $0xc8] sm:$0xf]  ;;  %v5574_v54 = vld [vmem:[#allocation9 + $0xcc] sm:$0xf]  ;;  %v4045_v56 = vor.u32 %v5577_v48, %v4044_v47 }
  0x23   :  { %570 = vmatpush.bf16.msra.mxu2 %v4117_v34  ;;  %v5578_v53 = vld [vmem:[#allocation9 + $0xe4] sm:$0xf0]  ;;  %v4054_v55 = vld [vmem:[#allocation9 + $0xe8] sm:$0xf0]  ;;  %v4049_v57 = vor.u32 %v5573_v49, %v4046_v51  ;;  %v4012_v59 = vld [vmem:[#allocation9 + $0x80] sm:$0xf] }
  0x24   :  { %583 = vmatpush.bf16.msra.mxu3 %v4121_v38  ;;  %v4053_v58 = vor.u32 %v5578_v53, %v4052_v52  ;;  %v5569_v60 = vld [vmem:[#allocation9 + $0x9c] sm:$0xf0]  ;;  %v5565_v61 = vld [vmem:[#allocation9 + $0x84] sm:$0xf]  ;;  %v4057_v62 = vor.u32 %v5574_v54, %v4054_v55  ;;  %v4020_v0 = vld [vmem:[#allocation9 + $0x88] sm:$0xf] }
  0x25   :  { %v4014_v63 = vld [vmem:[#allocation9 + $0xa0] sm:$0xf0]  ;;  %v5570_v1 = vld [vmem:[#allocation9 + $0xa4] sm:$0xf0]  ;;  %v5566_v2 = vld [vmem:[#allocation9 + $0x8c] sm:$0xf]  ;;  %v4013_v4 = vor.u32 %v5569_v60, %v4012_v59 }
  0x26   :  { %545 = vmatpush.bf16.msra.mxu0 %v4077_v44  ;;  %558 = vmatpush.bf16.msra.mxu1 %v4081_v45  ;;  %v4022_v3 = vld [vmem:[#allocation9 + $0xa8] sm:$0xf0]  ;;  %v4017_v5 = vor.u32 %v5565_v61, %v4014_v63  ;;  %v4021_v6 = vor.u32 %v5570_v1, %v4020_v0  ;;  %v3980_v7 = vld [vmem:[#allocation9 + $0x40] sm:$0xf]  ;;  %v5557_v9 = vld [vmem:[#allocation9 + $0x44] sm:$0xf] }
  0x27   :  { %571 = vmatpush.bf16.msra.mxu2 %v4085_v46  ;;  %v5561_v8 = vld [vmem:[#allocation9 + $0x5c] sm:$0xf0]  ;;  %v4025_v10 = vor.u32 %v5566_v2, %v4022_v3  ;;  %v3982_v11 = vld [vmem:[#allocation9 + $0x60] sm:$0xf0]  ;;  %v3988_v12 = vld [vmem:[#allocation9 + $0x48] sm:$0xf] }
  0x28   :  { %584 = vmatpush.bf16.msra.mxu3 %v4089_v50  ;;  %v5562_v13 = vld [vmem:[#allocation9 + $0x64] sm:$0xf0]  ;;  %v5558_v14 = vld [vmem:[#allocation9 + $0x4c] sm:$0xf]  ;;  %v3981_v16 = vor.u32 %v5561_v8, %v3980_v7  ;;  %v3948_v17 = vld [vmem:[#allocation9] sm:$0xf]  ;;  %v3985_v19 = vor.u32 %v5557_v9, %v3982_v11 }
  0x29   :  { %v3990_v15 = vld [vmem:[#allocation9 + $0x68] sm:$0xf0]  ;;  %v5553_v18 = vld [vmem:[#allocation9 + $0x1c] sm:$0xf0]  ;;  %v3989_v20 = vor.u32 %v5562_v13, %v3988_v12  ;;  %v5549_v21 = vld [vmem:[#allocation9 + $0x4] sm:$0xf] }
  0x2a   :  { %546 = vmatpush.bf16.msra.mxu0 %v4045_v56  ;;  %559 = vmatpush.bf16.msra.mxu1 %v4049_v57  ;;  %v3950_v22 = vld [vmem:[#allocation9 + $0x20] sm:$0xf0]  ;;  %v3956_v23 = vld [vmem:[#allocation9 + $0x8] sm:$0xf]  ;;  %v3993_v24 = vor.u32 %v5558_v14, %v3990_v15  ;;  %v5550_v26 = vld [vmem:[#allocation9 + $0xc] sm:$0xf]  ;;  %v3949_v31 = vor.u32 %v5553_v18, %v3948_v17 }
  0x2b   :  { %572 = vmatpush.bf16.msra.mxu2 %v4053_v58  ;;  %v5554_v25 = vld [vmem:[#allocation9 + $0x24] sm:$0xf0]  ;;  %v3958_v27 = vld [vmem:[#allocation9 + $0x28] sm:$0xf0]  ;;  %v4188_v28 = vld [vmem:[#allocation9 + $0x1d0] sm:$0xf]  ;;  %v3953_v35 = vor.u32 %v5549_v21, %v3950_v22 }
  0x2c   :  { %585 = vmatpush.bf16.msra.mxu3 %v4057_v62  ;;  %v5611_v29 = vld [vmem:[#allocation9 + $0x1ec] sm:$0xf0]  ;;  %v5607_v30 = vld [vmem:[#allocation9 + $0x1d4] sm:$0xf]  ;;  %v4196_v33 = vld [vmem:[#allocation9 + $0x1d8] sm:$0xf]  ;;  %v3957_v36 = vor.u32 %v5554_v25, %v3956_v23  ;;  %v3961_v40 = vor.u32 %v5550_v26, %v3958_v27 }
  0x2d   :  { %v4190_v32 = vld [vmem:[#allocation9 + $0x1f0] sm:$0xf0]  ;;  %v5612_v34 = vld [vmem:[#allocation9 + $0x1f4] sm:$0xf0]  ;;  %v5608_v37 = vld [vmem:[#allocation9 + $0x1dc] sm:$0xf]  ;;  %v4189_v41 = vor.u32 %v5611_v29, %v4188_v28 }
  0x2e   :  { %547 = vmatpush.bf16.msra.mxu0 %v4013_v4  ;;  %560 = vmatpush.bf16.msra.mxu1 %v4017_v5  ;;  %v4198_v38 = vld [vmem:[#allocation9 + $0x1f8] sm:$0xf0]  ;;  %v4193_v42 = vor.u32 %v5607_v30, %v4190_v32  ;;  %v4197_v43 = vor.u32 %v5612_v34, %v4196_v33  ;;  %v4156_v44 = vld [vmem:[#allocation9 + $0x190] sm:$0xf]  ;;  %v5599_v46 = vld [vmem:[#allocation9 + $0x194] sm:$0xf] }
  0x2f   :  { %573 = vmatpush.bf16.msra.mxu2 %v4021_v6  ;;  %v138_v39 = vld [vmem:[#allocation6] sm:$0xff]  ;;  %v5603_v45 = vld [vmem:[#allocation9 + $0x1ac] sm:$0xf0]  ;;  %v4201_v47 = vor.u32 %v5608_v37, %v4198_v38  ;;  %v4158_v49 = vld [vmem:[#allocation9 + $0x1b0] sm:$0xf0]  ;;  %s104_s12 = sshll.u32 %s6698_s2, 4  ;;  %s105_s12 = int_to_ptr.hbm [resolvable:$true] %s104_s12 }
  0x30   :  { %586 = vmatpush.bf16.msra.mxu3 %v4025_v10  ;;  %v6298_v48 = vpack.c.bf16 %v138_v39, %v138_v39  ;;  %v4164_v50 = vld [vmem:[#allocation9 + $0x198] sm:$0xf]  ;;  %v5600_v52 = vld [vmem:[#allocation9 + $0x19c] sm:$0xf]  ;;  %v4157_v54 = vor.u32 %v5603_v45, %v4156_v44  ;;  %v4161_v55 = vor.u32 %v5599_v46, %v4158_v49  ;;  %v4124_v57 = vld [vmem:[#allocation9 + $0x150] sm:$0xf] }
  0x31   :  { %v5604_v51 = vld [vmem:[#allocation9 + $0x1b4] sm:$0xf0]  ;;  %v4166_v53 = vld [vmem:[#allocation9 + $0x1b8] sm:$0xf0]  ;;  %v5595_v58 = vld [vmem:[#allocation9 + $0x16c] sm:$0xf0] }
  0x32   :  { %548 = vmatpush.bf16.msra.mxu0 %v3981_v16  ;;  %561 = vmatpush.bf16.msra.mxu1 %v3985_v19  ;;  %v4165_v56 = vor.u32 %v5604_v51, %v4164_v50  ;;  %v5591_v59 = vld [vmem:[#allocation9 + $0x154] sm:$0xf]  ;;  %v4169_v60 = vor.u32 %v5600_v52, %v4166_v53  ;;  %v4132_v62 = vld [vmem:[#allocation9 + $0x158] sm:$0xf]  ;;  %v5592_v0 = vld [vmem:[#allocation9 + $0x15c] sm:$0xf]  ;;  %v4125_v2 = vor.u32 %v5595_v58, %v4124_v57 }
  0x33   :  { %574 = vmatpush.bf16.msra.mxu2 %v3989_v20  ;;  %v4126_v61 = vld [vmem:[#allocation9 + $0x170] sm:$0xf0]  ;;  %v5596_v63 = vld [vmem:[#allocation9 + $0x174] sm:$0xf0]  ;;  %v4134_v1 = vld [vmem:[#allocation9 + $0x178] sm:$0xf0] }
  0x34   :  { %587 = vmatpush.bf16.msra.mxu3 %v3993_v24  ;;  %v4129_v3 = vor.u32 %v5591_v59, %v4126_v61  ;;  %v4133_v4 = vor.u32 %v5596_v63, %v4132_v62  ;;  %v4092_v5 = vld [vmem:[#allocation9 + $0x110] sm:$0xf]  ;;  %v5583_v7 = vld [vmem:[#allocation9 + $0x114] sm:$0xf]  ;;  %v4137_v8 = vor.u32 %v5592_v0, %v4134_v1  ;;  %v4100_v10 = vld [vmem:[#allocation9 + $0x118] sm:$0xf] }
  0x35   :  { %v5587_v6 = vld [vmem:[#allocation9 + $0x12c] sm:$0xf0]  ;;  %v4094_v9 = vld [vmem:[#allocation9 + $0x130] sm:$0xf0]  ;;  %v5588_v11 = vld [vmem:[#allocation9 + $0x134] sm:$0xf0] }
  0x36   :  { %549 = vmatpush.bf16.msra.mxu0 %v3949_v31  ;;  %562 = vmatpush.bf16.msra.mxu1 %v3953_v35  ;;  %v5584_v12 = vld [vmem:[#allocation9 + $0x11c] sm:$0xf]  ;;  %v4093_v14 = vor.u32 %v5587_v6, %v4092_v5  ;;  %v4097_v15 = vor.u32 %v5583_v7, %v4094_v9  ;;  %v4101_v16 = vor.u32 %v5588_v11, %v4100_v10  ;;  %v4060_v17 = vld [vmem:[#allocation9 + $0xd0] sm:$0xf]  ;;  %v5575_v19 = vld [vmem:[#allocation9 + $0xd4] sm:$0xf] }
  0x37   :  { %575 = vmatpush.bf16.msra.mxu2 %v3957_v36  ;;  %v4102_v13 = vld [vmem:[#allocation9 + $0x138] sm:$0xf0]  ;;  %v5579_v18 = vld [vmem:[#allocation9 + $0xec] sm:$0xf0]  ;;  %v4062_v21 = vld [vmem:[#allocation9 + $0xf0] sm:$0xf0] }
  0x38   :  { %588 = vmatpush.bf16.msra.mxu3 %v3961_v40  ;;  %v4105_v20 = vor.u32 %v5584_v12, %v4102_v13  ;;  %v4068_v22 = vld [vmem:[#allocation9 + $0xd8] sm:$0xf]  ;;  %v5576_v24 = vld [vmem:[#allocation9 + $0xdc] sm:$0xf]  ;;  %v4061_v26 = vor.u32 %v5579_v18, %v4060_v17  ;;  %v4065_v27 = vor.u32 %v5575_v19, %v4062_v21  ;;  %v4028_v29 = vld [vmem:[#allocation9 + $0x90] sm:$0xf] }
  0x39   :  { %550 = vmatmul.bf16.vlgmr.msra.gmra.mxu0 %v6298_v48  ;;  %563 = vmatmul.bf16.vlgmr.msra.gmra.mxu1 %v6298_v48  ;;  %v5580_v23 = vld [vmem:[#allocation9 + $0xf4] sm:$0xf0]  ;;  %v4070_v25 = vld [vmem:[#allocation9 + $0xf8] sm:$0xf0]  ;;  %v5571_v30 = vld [vmem:[#allocation9 + $0xac] sm:$0xf0] }
  0x3a   :  { %594 = vmatpush.bf16.msrb.mxu0 %v4189_v41  ;;  %607 = vmatpush.bf16.msrb.mxu1 %v4193_v42  ;;  %v4069_v28 = vor.u32 %v5580_v23, %v4068_v22  ;;  %v5567_v31 = vld [vmem:[#allocation9 + $0x94] sm:$0xf]  ;;  %v4073_v32 = vor.u32 %v5576_v24, %v4070_v25  ;;  %v4036_v34 = vld [vmem:[#allocation9 + $0x98] sm:$0xf]  ;;  %v5568_v36 = vld [vmem:[#allocation9 + $0x9c] sm:$0xf]  ;;  %v4029_v38 = vor.u32 %v5571_v30, %v4028_v29 }
  0x3b   :  { %620 = vmatpush.bf16.msrb.mxu2 %v4197_v43  ;;  %589 = vmatmul.bf16.vlgmr.msra.gmra.mxu3 %v6298_v48  ;;  %v4030_v33 = vld [vmem:[#allocation9 + $0xb0] sm:$0xf0]  ;;  %v5572_v35 = vld [vmem:[#allocation9 + $0xb4] sm:$0xf0]  ;;  %v4038_v37 = vld [vmem:[#allocation9 + $0xb8] sm:$0xf0] }
  0x3c   :  { %633 = vmatpush.bf16.msrb.mxu3 %v4201_v47  ;;  %576 = vmatmul.bf16.vlgmr.msra.gmra.mxu2 %v6298_v48  ;;  %v4033_v39 = vor.u32 %v5567_v31, %v4030_v33  ;;  %v4037_v40 = vor.u32 %v5572_v35, %v4036_v34  ;;  %v3996_v41 = vld [vmem:[#allocation9 + $0x50] sm:$0xf]  ;;  %v5559_v43 = vld [vmem:[#allocation9 + $0x54] sm:$0xf]  ;;  %v4041_v44 = vor.u32 %v5568_v36, %v4038_v37  ;;  %v4004_v46 = vld [vmem:[#allocation9 + $0x58] sm:$0xf] }
  0x3d   :  { %v5563_v42 = vld [vmem:[#allocation9 + $0x6c] sm:$0xf0]  ;;  %v3998_v45 = vld [vmem:[#allocation9 + $0x70] sm:$0xf0]  ;;  %v5564_v47 = vld [vmem:[#allocation9 + $0x74] sm:$0xf0] }
  0x3e   :  { %595 = vmatpush.bf16.msrb.mxu0 %v4157_v54  ;;  %608 = vmatpush.bf16.msrb.mxu1 %v4161_v55  ;;  %v5560_v49 = vld [vmem:[#allocation9 + $0x5c] sm:$0xf]  ;;  %v3997_v51 = vor.u32 %v5563_v42, %v3996_v41  ;;  %v4001_v52 = vor.u32 %v5559_v43, %v3998_v45  ;;  %v4005_v53 = vor.u32 %v5564_v47, %v4004_v46  ;;  %v3964_v54 = vld [vmem:[#allocation9 + $0x10] sm:$0xf]  ;;  %v3966_v58 = vld [vmem:[#allocation9 + $0x30] sm:$0xf0] }
  0x3f   :  { %621 = vmatpush.bf16.msrb.mxu2 %v4165_v56  ;;  %v4006_v50 = vld [vmem:[#allocation9 + $0x78] sm:$0xf0]  ;;  %v5555_v55 = vld [vmem:[#allocation9 + $0x2c] sm:$0xf0]  ;;  %v5551_v56 = vld [vmem:[#allocation9 + $0x14] sm:$0xf] }
  0x40   :  { %634 = vmatpush.bf16.msrb.mxu3 %v4169_v60  ;;  %v4009_v57 = vor.u32 %v5560_v49, %v4006_v50  ;;  %v3972_v59 = vld [vmem:[#allocation9 + $0x18] sm:$0xf]  ;;  %v5552_v61 = vld [vmem:[#allocation9 + $0x1c] sm:$0xf]  ;;  %v3965_v63 = vor.u32 %v5555_v55, %v3964_v54  ;;  %v3969_v0 = vor.u32 %v5551_v56, %v3966_v58  ;;  %s6229_s13 = smov [#allocation2]   ;;  %s118_s17 = sshll.u32 %s6699_s3, 4  ;;  %s119_s17 = int_to_ptr.hbm [resolvable:$true] %s118_s17 }
  0x41   :  { %v5556_v60 = vld [vmem:[#allocation9 + $0x34] sm:$0xf0]  ;;  %v3974_v62 = vld [vmem:[#allocation9 + $0x38] sm:$0xf0]  ;;  %s106_s14 = sshll.u32 %s6229_s13, 4  ;;  %s6230_s18 = smov [#allocation3]   ;;  %s107_s14 = int_to_ptr.vmem [resolvable:$true] %s106_s14 }
  0x42   :  { %596 = vmatpush.bf16.msrb.mxu0 %v4125_v2  ;;  %609 = vmatpush.bf16.msrb.mxu1 %v4129_v3  ;;  %v3973_v1 = vor.u32 %v5556_v60, %v3972_v59  ;;  %v3977_v2 = vor.u32 %v5552_v61, %v3974_v62  ;;  %v6308_v3 = vld [vmem:[#allocation11] ss:$4 sm:$0xff]  ;;  %109 = dma.hbm_to_vmem [thread:$0]  %s105_s12, 32768, %s107_s14, [#allocation5] }
  0x43   :  { %622 = vmatpush.bf16.msrb.mxu2 %v4133_v4  ;;  %v206_v4 = vperm.slane %v6308_v3, 0  ;;  %v207_v5 = vperm.slane %v6308_v3, 1  ;;  %s120_s19 = sshll.u32 %s6230_s18, 4  ;;  %s132_s21 = sshll.u32 %s6700_s4, 4  ;;  %v208_v11 = vperm.slane %v6308_v3, 2  ;;  %v209_v12 = vperm.slane %v6308_v3, 3  ;;  %s121_s19 = int_to_ptr.vmem [resolvable:$true] %s120_s19  ;;  %s133_s21 = int_to_ptr.hbm [resolvable:$true] %s132_s21 }
  0x44   :  { %635 = vmatpush.bf16.msrb.mxu3 %v4137_v8  ;;  %123 = dma.hbm_to_vmem [thread:$0]  %s119_s17, 8192, %s121_s19, [#allocation5 + $0x1]  ;;  %v210_v47 = vperm.slane %v6308_v3, 4 }
  0x45   :  { %s6231_s3 = smov [#allocation4]  }
  0x46   :  { %597 = vmatpush.bf16.msrb.mxu0 %v4093_v14  ;;  %610 = vmatpush.bf16.msrb.mxu1 %v4097_v15  ;;  %s134_s22 = sshll.u32 %s6231_s3, 4  ;;  %s135_s22 = int_to_ptr.vmem [resolvable:$true] %s134_s22 }
  0x47   :  { %623 = vmatpush.bf16.msrb.mxu2 %v4101_v16  ;;  %137 = dma.hbm_to_vmem [thread:$0]  %s133_s21, 2048, %s135_s22, [#allocation5 + $0x2] }
  0x48   :  { %636 = vmatpush.bf16.msrb.mxu3 %v4105_v20 }
  0x4a   :  { %598 = vmatpush.bf16.msrb.mxu0 %v4061_v26  ;;  %611 = vmatpush.bf16.msrb.mxu1 %v4065_v27 }
  0x4b   :  { %624 = vmatpush.bf16.msrb.mxu2 %v4069_v28 }
  0x4c   :  { %637 = vmatpush.bf16.msrb.mxu3 %v4073_v32 }
  0x4e   :  { %599 = vmatpush.bf16.msrb.mxu0 %v4029_v38  ;;  %612 = vmatpush.bf16.msrb.mxu1 %v4033_v39 }
  0x4f   :  { %625 = vmatpush.bf16.msrb.mxu2 %v4037_v40 }
  0x50   :  { %638 = vmatpush.bf16.msrb.mxu3 %v4041_v44 }
  0x52   :  { %600 = vmatpush.bf16.msrb.mxu0 %v3997_v51  ;;  %613 = vmatpush.bf16.msrb.mxu1 %v4001_v52  ;;  %v211_v51 = vperm.slane %v6308_v3, 5 }
  0x53   :  { %626 = vmatpush.bf16.msrb.mxu2 %v4005_v53 }
  0x54   :  { %639 = vmatpush.bf16.msrb.mxu3 %v4009_v57 }
  0x56   :  { %601 = vmatpush.bf16.msrb.mxu0 %v3965_v63  ;;  %614 = vmatpush.bf16.msrb.mxu1 %v3969_v0  ;;  %v212_v63 = vperm.slane %v6308_v3, 6 }
  0x57   :  { %627 = vmatpush.bf16.msrb.mxu2 %v3973_v1 }
  0x58   :  { %640 = vmatpush.bf16.msrb.mxu3 %v3977_v2 }
  0x59   :  { %602 = vmatmul.bf16.vlgmr.msrb.gmra.mxu0 %v6298_v48  ;;  %615 = vmatmul.bf16.vlgmr.msrb.gmra.mxu1 %v6298_v48 }
  0x5a   :  { %628 = vmatmul.bf16.vlgmr.msrb.gmra.mxu2 %v6298_v48 }
  0x5b   :  { %641 = vmatmul.bf16.vlgmr.msrb.gmra.mxu3 %v6298_v48 }
  0xb6   :  { %v551_v6 = vpop.f32.mrf.mxu0  ;;  %v564_v7 = vpop.f32.mrf.mxu1 }
  0xb7   :  { %v552_v48 = vadd.f32 %v551_v6, %v206_v4  ;;  %v565_v8 = vadd.f32 %v564_v7, %v207_v5 }
  0xb9   :  { %v6321_v9 = vmax.f32 %v552_v48, 0.0  ;;  %v6323_v10 = vmax.f32 %v565_v8, 0.0 }
  0xbb   :  { %v660_v13 = vrot.slane %v6323_v10, 4  ;;  %v654_v14 = vrot.slane %v6321_v9, 4 }
  0xbd   :  { %v661_v16 = vadd.f32 %v660_v13, %v6323_v10  ;;  %v655_v24 = vadd.f32 %v654_v14, %v6321_v9 }
  0xbe   :  { %v590_v18 = vpop.f32.mrf.mxu3  ;;  %v553_v19 = vpop.f32.mrf.mxu0 }
  0xbf   :  { %v577_v15 = vpop.f32.mrf.mxu2  ;;  %v591_v20 = vadd.f32 %v590_v18, %v209_v12  ;;  %v566_v21 = vpop.f32.mrf.mxu1  ;;  %v662_v22 = vrot.slane %v661_v16, 2  ;;  %v656_v30 = vrot.slane %v655_v24, 2 }
  0xc0   :  { %v578_v17 = vadd.f32 %v577_v15, %v208_v11 }
  0xc1   :  { %v6333_v25 = vmax.f32 %v591_v20, 0.0  ;;  %v663_v27 = vadd.f32 %v662_v22, %v661_v16  ;;  %v657_v38 = vadd.f32 %v656_v30, %v655_v24  ;;  %v213_v16 = vperm.slane %v6308_v3, 7 }
  0xc2   :  { %v6330_v23 = vmax.f32 %v578_v17, 0.0 }
  0xc3   :  { %v672_v28 = vrot.slane %v6333_v25, 4  ;;  %v664_v35 = vrot.slane %v663_v27, 1  ;;  %v658_v43 = vrot.slane %v657_v38, 1 }
  0xc4   :  { %v666_v26 = vrot.slane %v6330_v23, 4 }
  0xc5   :  { %v673_v31 = vadd.f32 %v672_v28, %v6333_v25  ;;  %v665_v41 = vadd.f32 %v664_v35, %v663_v27  ;;  %v659_v49 = vadd.f32 %v658_v43, %v657_v38 }
  0xc6   :  { %v667_v29 = vadd.f32 %v666_v26, %v6330_v23  ;;  %v592_v34 = vpop.f32.mrf.mxu3 }
  0xc7   :  { %v579_v32 = vpop.f32.mrf.mxu2  ;;  %v674_v36 = vrot.slane %v673_v31, 2  ;;  %v6339_v45 = vmul.f32 0.125, %v665_v41  ;;  %v6349_v57 = vmul.f32 0.125, %v659_v49 }
  0xc8   :  { %v668_v33 = vrot.slane %v667_v29, 2 }
  0xc9   :  { %v675_v39 = vadd.f32 %v674_v36, %v673_v31  ;;  %v711_v52 = vsub.f32 %v6323_v10, %v6339_v45  ;;  %v710_v2 = vsub.f32 %v6321_v9, %v6349_v57 }
  0xca   :  { %v669_v37 = vadd.f32 %v668_v33, %v667_v29 }
  0xcb   :  { %v676_v42 = vrot.slane %v675_v39, 1  ;;  %v719_v61 = vmul.f32 %v711_v52, %v711_v52  ;;  %v718_v18 = vmul.f32 %v710_v2, %v710_v2 }
  0xcc   :  { %v670_v40 = vrot.slane %v669_v37, 1 }
  0xcd   :  { %v677_v46 = vadd.f32 %v676_v42, %v675_v39  ;;  %v732_v7 = vrot.slane %v719_v61, 4  ;;  %v726_v29 = vrot.slane %v718_v18, 4 }
  0xce   :  { %v671_v44 = vadd.f32 %v670_v40, %v669_v37 }
  0xcf   :  { %v6347_v53 = vmul.f32 0.125, %v677_v46  ;;  %v733_v21 = vadd.f32 %v732_v7, %v719_v61  ;;  %v727_v40 = vadd.f32 %v726_v29, %v718_v18 }
  0xd0   :  { %v6342_v50 = vmul.f32 0.125, %v671_v44 }
  0xd1   :  { %v713_v62 = vsub.f32 %v6333_v25, %v6347_v53  ;;  %v734_v35 = vrot.slane %v733_v21, 2 }
  0xd2   :  { %v712_v58 = vsub.f32 %v6330_v23, %v6342_v50 }
  0xd3   :  { %v721_v8 = vmul.f32 %v713_v62, %v713_v62  ;;  %v735_v46 = vadd.f32 %v734_v35, %v733_v21 }
  0xd4   :  { %v720_v4 = vmul.f32 %v712_v58, %v712_v58 }
  0xd5   :  { %v744_v22 = vrot.slane %v721_v8, 4 }
  0xd6   :  { %v603_v54 = vpop.f32.mrf.mxu0  ;;  %v616_v56 = vpop.f32.mrf.mxu1  ;;  %v738_v19 = vrot.slane %v720_v4, 4 }
  0xd7   :  { %v604_v55 = vadd.f32 %v603_v54, %v210_v47  ;;  %v617_v60 = vadd.f32 %v616_v56, %v211_v51  ;;  %v745_v3 = vadd.f32 %v744_v22, %v721_v8 }
  0xd8   :  { %v739_v32 = vadd.f32 %v738_v19, %v720_v4 }
  0xd9   :  { %v6353_v59 = vmax.f32 %v604_v55, 0.0  ;;  %v6359_v1 = vmax.f32 %v617_v60, 0.0  ;;  %v746_v47 = vrot.slane %v745_v3, 2  ;;  %v728_v55 = vrot.slane %v727_v40, 2 }
  0xda   :  { %v740_v41 = vrot.slane %v739_v32, 2 }
  0xdb   :  { %v678_v0 = vrot.slane %v6353_v59, 4  ;;  %v684_v6 = vrot.slane %v6359_v1, 4  ;;  %v747_v61 = vadd.f32 %v746_v47, %v745_v3 }
  0xdc   :  { %v741_v56 = vadd.f32 %v740_v41, %v739_v32 }
  0xdd   :  { %v679_v5 = vadd.f32 %v678_v0, %v6353_v59  ;;  %v629_v48 = vpop.f32.mrf.mxu2  ;;  %v685_v15 = vadd.f32 %v684_v6, %v6359_v1  ;;  %v748_v7 = vrot.slane %v747_v61, 1 }
  0xde   :  { %v630_v11 = vadd.f32 %v629_v48, %v212_v63  ;;  %v642_v12 = vpop.f32.mrf.mxu3  ;;  %v605_v13 = vpop.f32.mrf.mxu0  ;;  %v736_v63 = vrot.slane %v735_v46, 1  ;;  %v742_v6 = vrot.slane %v741_v56, 1 }
  0xdf   :  { %v680_v14 = vrot.slane %v679_v5, 2  ;;  %v618_v17 = vpop.f32.mrf.mxu1  ;;  %v686_v24 = vrot.slane %v685_v15, 2  ;;  %v643_v28 = vadd.f32 %v642_v12, %v213_v16  ;;  %v749_v19 = vadd.f32 %v748_v7, %v747_v61 }
  0xe0   :  { %v6367_v26 = vmax.f32 %v630_v11, 0.0  ;;  %v737_v12 = vadd.f32 %v736_v63, %v735_v46  ;;  %v743_v17 = vadd.f32 %v742_v6, %v741_v56 }
  0xe1   :  { %v681_v20 = vadd.f32 %v680_v14, %v679_v5  ;;  %v687_v30 = vadd.f32 %v686_v24, %v685_v15  ;;  %v6371_v39 = vmax.f32 %v643_v28, 0.0  ;;  %v729_v5 = vadd.f32 %v728_v55, %v727_v40 }
  0xe2   :  { %v690_v31 = vrot.slane %v6367_v26, 4  ;;  %v775_v22 = vmul.f32 0.125, %v737_v12 }
  0xe3   :  { %v682_v27 = vrot.slane %v681_v20, 1  ;;  %v688_v36 = vrot.slane %v687_v30, 1  ;;  %v696_v54 = vrot.slane %v6371_v39, 4  ;;  %v730_v16 = vrot.slane %v729_v5, 1 }
  0xe4   :  { %v691_v37 = vadd.f32 %v690_v31, %v6367_v26  ;;  %v776_v31 = vmul.f32 0.125, %v743_v17  ;;  %v6387_v3 = vadd.f32 1e-05, %v775_v22 }
  0xe5   :  { %v683_v33 = vadd.f32 %v682_v27, %v681_v20  ;;  %v631_v34 = vpop.f32.mrf.mxu2  ;;  %v689_v43 = vadd.f32 %v688_v36, %v687_v30  ;;  %v697_v2 = vadd.f32 %v696_v54, %v6371_v39  ;;  %v731_v30 = vadd.f32 %v730_v16, %v729_v5 }
  0xe6   :  { %v644_v38 = vpop.f32.mrf.mxu3  ;;  %v692_v44 = vrot.slane %v691_v37, 2  ;;  %5960 = vrsqrt.f32 %v6387_v3  ;;  %vm806_vm2 = vweird.f32 %v6387_v3 }
  0xe7   :  { %v6373_v42 = vmul.f32 0.125, %v683_v33  ;;  %v6377_v51 = vmul.f32 0.125, %v689_v43  ;;  %v698_v14 = vrot.slane %v697_v2, 2  ;;  %v777_v33 = vmul.f32 0.125, %v749_v19 }
  0xe8   :  { %v693_v52 = vadd.f32 %v692_v44, %v691_v37  ;;  %v774_v41 = vmul.f32 0.125, %v731_v30  ;;  %v6389_v43 = vadd.f32 1e-05, %v776_v31 }
  0xe9   :  { %v714_v49 = vsub.f32 %v6353_v59, %v6373_v42  ;;  %v715_v60 = vsub.f32 %v6359_v1, %v6377_v51  ;;  %v699_v27 = vadd.f32 %v698_v14, %v697_v2  ;;  %v6391_v44 = vadd.f32 1e-05, %v777_v33 }
  0xea   :  { %v694_v62 = vrot.slane %v693_v52, 1  ;;  %v6398_v56 = vadd.f32 1e-05, %v774_v41  ;;  %5962 = vrsqrt.f32 %v6389_v43  ;;  %vm816_vm5 = vweird.f32 %v6389_v43 }
  0xeb   :  { %v722_v58 = vmul.f32 %v714_v49, %v714_v49  ;;  %v723_v4 = vmul.f32 %v715_v60, %v715_v60  ;;  %v700_v37 = vrot.slane %v699_v27, 1  ;;  %5964 = vrsqrt.f32 %v6391_v44 }
  0xec   :  { %v695_v11 = vadd.f32 %v694_v62, %v693_v52  ;;  %v6408_v63 = vpop.eup %5960  ;;  %vm826_vm8 = vweird.f32 %v6391_v44 }
  0xed   :  { %v750_v0 = vrot.slane %v722_v58, 4  ;;  %v756_v8 = vrot.slane %v723_v4, 4  ;;  %v701_v52 = vadd.f32 %v700_v37, %v699_v27  ;;  %vm807_vm0 = vweird.f32 %v6408_v63 }
  0xee   :  { %v6383_v21 = vmul.f32 0.125, %v695_v11  ;;  %vm6459_vm4 = vmor %vm806_vm2, %vm807_vm0 }
  0xef   :  { %v751_v48 = vadd.f32 %v750_v0, %v722_v58  ;;  %v757_v15 = vadd.f32 %v756_v8, %v723_v4  ;;  %v6401_v58 = vmul.f32 0.125, %v701_v52 }
  0xf0   :  { %v716_v29 = vsub.f32 %v6367_v26, %v6383_v21  ;;  %v6411_v4 = vpop.eup %5962 }
  0xf1   :  { %v752_v13 = vrot.slane %v751_v48, 2  ;;  %v758_v20 = vrot.slane %v757_v15, 2  ;;  %v717_v61 = vsub.f32 %v6371_v39, %v6401_v58  ;;  %v6413_v6 = vpop.eup %5964  ;;  %vm817_vm1 = vweird.f32 %v6411_v4 }
  0xf2   :  { %v724_v35 = vmul.f32 %v716_v29, %v716_v29  ;;  %v821_v16 = vmul.f32 %v6413_v6, %v6391_v44  ;;  %vm827_vm3 = vweird.f32 %v6413_v6  ;;  %vm6470_vm7 = vmor %vm816_vm5, %vm817_vm1 }
  0xf3   :  { %v753_v18 = vadd.f32 %v752_v13, %v751_v48  ;;  %v759_v28 = vadd.f32 %v758_v20, %v757_v15  ;;  %v725_v0 = vmul.f32 %v717_v61, %v717_v61  ;;  %v801_v48 = vmul.f32 %v6408_v63, %v6387_v3  ;;  %vm6477_vm11 = vmor %vm826_vm8, %vm827_vm3 }
  0xf4   :  { %v762_v40 = vrot.slane %v724_v35, 4  ;;  %v811_v15 = vmul.f32 %v6411_v4, %v6389_v43  ;;  %vm796_vm3 = vweird.f32 %v6398_v56  ;;  %vm922_vm8 = vcmask 1040384  }
  0xf5   :  { %v754_v24 = vrot.slane %v753_v18, 1  ;;  %v760_v34 = vrot.slane %v759_v28, 1  ;;  %v768_v5 = vrot.slane %v725_v0, 4 }
  0xf6   :  { %v763_v47 = vadd.f32 %v762_v40, %v724_v35  ;;  %v812_v27 = vmul.f32 %v6411_v4, %v811_v15 }
  0xf7   :  { %v755_v32 = vadd.f32 %v754_v24, %v753_v18  ;;  %v761_v38 = vadd.f32 %v760_v34, %v759_v28  ;;  %v769_v11 = vadd.f32 %v768_v5, %v725_v0  ;;  %v802_v18 = vmul.f32 %v6408_v63, %v801_v48 }
  0xf8   :  { %v764_v55 = vrot.slane %v763_v47, 2  ;;  %v822_v28 = vmul.f32 %v6413_v6, %v821_v16 }
  0xf9   :  { %v778_v36 = vmul.f32 0.125, %v755_v32  ;;  %v779_v46 = vmul.f32 0.125, %v761_v38  ;;  %v770_v17 = vrot.slane %v769_v11, 2  ;;  %v803_v30 = vmul.f32 0.5, %v802_v18 }
  0xfa   :  { %v765_v60 = vadd.f32 %v764_v55, %v763_v47  ;;  %v823_v37 = vmul.f32 0.5, %v822_v28 }
  0xfb   :  { %v6394_v49 = vadd.f32 1e-05, %v778_v36  ;;  %v6396_v54 = vadd.f32 1e-05, %v779_v46  ;;  %v771_v22 = vadd.f32 %v770_v17, %v769_v11  ;;  %v813_v36 = vmul.f32 0.5, %v812_v27 }
  0xfc   :  { %v766_v62 = vrot.slane %v765_v60, 1  ;;  %v804_v40 = vsub.f32 1.5, %v803_v30  ;;  %v6446_v46 = vld [vmem:[#allocation11 + $0x1] ss:$4 sm:$0xff]  ;;  %v824_v0 = vsub.f32 1.5, %v823_v37 }
  0xfd   :  { %5966 = vrsqrt.f32 %v6394_v49  ;;  %v772_v29 = vrot.slane %v771_v22, 1  ;;  %v874_v48 = vperm.slane %v6446_v46, 1  ;;  %v875_v17 = vperm.slane %v6446_v46, 2 }
  0xfe   :  { %5968 = vrsqrt.f32 %v6396_v54  ;;  %v767_v2 = vadd.f32 %v766_v62, %v765_v60  ;;  %v814_v62 = vsub.f32 1.5, %v813_v36  ;;  %v805_v5 = vmul.f32 %v6408_v63, %v804_v40 }
  0xff   :  { %5970 = vrsqrt.f32 %v6398_v56  ;;  %v773_v33 = vadd.f32 %v772_v29, %v771_v22  ;;  %vm836_vm9 = vweird.f32 %v6394_v49  ;;  %v876_v44 = vperm.slane %v6446_v46, 3 }
 0x100   :  { %v780_v7 = vmul.f32 0.125, %v767_v2  ;;  %v809_v3 = vsel %vm6459_vm4, %v6408_v63, %v805_v5  ;;  %vm846_vm15 = vweird.f32 %v6396_v54  ;;  %v878_v36 = vperm.slane %v6446_v46, 5 }
 0x101   :  { %v781_v41 = vmul.f32 0.125, %v773_v33 }
 0x102   :  { %v6421_v13 = vadd.f32 1e-05, %v780_v7 }
 0x103   :  { %v6417_v8 = vpop.eup %5966  ;;  %v6449_v61 = vadd.f32 1e-05, %v781_v41 }
 0x104   :  { %v6419_v12 = vpop.eup %5968  ;;  %5972 = vrsqrt.f32 %v6421_v13  ;;  %v831_v19 = vmul.f32 %v6417_v8, %v6394_v49  ;;  %vm837_vm6 = vweird.f32 %v6417_v8  ;;  %vm856_vm1 = vweird.f32 %v6421_v13 }
 0x105   :  { %v6423_v14 = vpop.eup %5970  ;;  %v841_v20 = vmul.f32 %v6419_v12, %v6396_v54  ;;  %5974 = vrsqrt.f32 %v6449_v61  ;;  %vm847_vm10 = vweird.f32 %v6419_v12  ;;  %vm6490_vm14 = vmor %vm836_vm9, %vm837_vm6  ;;  %v877_v54 = vperm.slane %v6446_v46, 4 }
 0x106   :  { %v791_v24 = vmul.f32 %v6423_v14, %v6398_v56  ;;  %v832_v31 = vmul.f32 %v6417_v8, %v831_v19  ;;  %v815_v19 = vmul.f32 %v6411_v4, %v814_v62  ;;  %vm797_vm13 = vweird.f32 %v6423_v14  ;;  %vm6501_vm0 = vmor %vm846_vm15, %vm847_vm10 }
 0x107   :  { %v842_v32 = vmul.f32 %v6419_v12, %v841_v20  ;;  %v825_v20 = vmul.f32 %v6413_v6, %v824_v0  ;;  %vm798_vm4 = vmor %vm796_vm3, %vm797_vm13  ;;  %vm866_vm6 = vweird.f32 %v6449_v61  ;;  %vm924_vm9 = vcmask 1042434  }
 0x108   :  { %v792_v35 = vmul.f32 %v6423_v14, %v791_v24  ;;  %v833_v47 = vmul.f32 0.5, %v832_v31  ;;  %v819_v30 = vsel %vm6470_vm7, %v6411_v4, %v815_v19  ;;  %v879_v4 = vperm.slane %v6446_v46, 6 }
 0x109   :  { %v843_v52 = vmul.f32 0.5, %v842_v32  ;;  %v829_v31 = vsel %vm6477_vm11, %v6413_v6, %v825_v20  ;;  %v891_v40 = vmul.f32 %v875_v17, %v819_v30  ;;  %vm926_vm10 = vcmask 1041408  }
 0x10a   :  { %v6441_v34 = vpop.eup %5972  ;;  %v793_v60 = vmul.f32 0.5, %v792_v35  ;;  %v834_v7 = vsub.f32 1.5, %v833_v47  ;;  %v6507_v35 = vmul.f32 %v874_v48, %v809_v3  ;;  %v892_v41 = vmul.f32 %v876_v44, %v829_v31 }
 0x10b   :  { %v851_v38 = vmul.f32 %v6441_v34, %v6421_v13  ;;  %v844_v11 = vsub.f32 1.5, %v843_v52  ;;  %vm857_vm12 = vweird.f32 %v6441_v34  ;;  %v5975_v28 = vpop.eup %5974  ;;  %v873_v47 = vperm.slane %v6446_v46, 0 }
 0x10c   :  { %v794_v16 = vsub.f32 1.5, %v793_v60  ;;  %v835_v24 = vmul.f32 %v6417_v8, %v834_v7  ;;  %v861_v33 = vmul.f32 %v5975_v28, %v6449_v61  ;;  %vm858_vm2 = vmor %vm856_vm1, %vm857_vm12  ;;  %vm867_vm5 = vweird.f32 %v5975_v28 }
 0x10d   :  { %v852_v55 = vmul.f32 %v6441_v34, %v851_v38  ;;  %v845_v27 = vmul.f32 %v6419_v12, %v844_v11  ;;  %v901_v56 = vmul.f32 %v891_v40, %v6342_v50  ;;  %v902_v0 = vmul.f32 %v892_v41, %v6347_v53  ;;  %vm868_vm7 = vmor %vm866_vm6, %vm867_vm5 }
 0x10e   :  { %v795_v29 = vmul.f32 %v6423_v14, %v794_v16  ;;  %v839_v6 = vsel %vm6490_vm14, %v6417_v8, %v835_v24  ;;  %v862_v38 = vmul.f32 %v5975_v28, %v861_v33  ;;  %vm928_vm11 = vcmask 1044484  }
 0x10f   :  { %v853_v2 = vmul.f32 0.5, %v852_v55  ;;  %v849_v13 = vsel %vm6501_vm0, %v6419_v12, %v845_v27  ;;  %v893_v8 = vmul.f32 %v877_v54, %v839_v6  ;;  %v900_v12 = vmul.f32 %v6507_v35, %v6339_v45 }
 0x110   :  { %v863_v52 = vmul.f32 0.5, %v862_v38  ;;  %v799_v55 = vsel %vm798_vm4, %v6423_v14, %v795_v29  ;;  %v894_v60 = vmul.f32 %v878_v36, %v849_v13  ;;  %v916_v16 = vrot.slane %v901_v56, 6 }
 0x111   :  { %v854_v15 = vsub.f32 1.5, %v853_v2  ;;  %v880_v2 = vperm.slane %v6446_v46, 7  ;;  %v889_v5 = vmul.f32 %v873_v47, %v799_v55  ;;  %v903_v14 = vmul.f32 %v893_v8, %v6373_v42 }
 0x112   :  { %v904_v7 = vmul.f32 %v894_v60, %v6377_v51  ;;  %v915_v45 = vrot.slane %v900_v12, 7  ;;  %v917_v50 = vrot.slane %v902_v0, 5  ;;  %vm930_vm12 = vcmask 1046534  }
 0x113   :  { %v855_v63 = vmul.f32 %v6441_v34, %v854_v15  ;;  %v899_v53 = vmul.f32 %v889_v5, %v6349_v57  ;;  %v938_v46 = vperm.slane %v889_v5, 0  ;;  %v918_v18 = vrot.slane %v903_v14, 4 }
 0x114   :  { %v919_v61 = vrot.slane %v904_v7, 3  ;;  %v940_v20 = vperm.slane %v891_v40, 0  ;;  %v925_v3 = vsel %vm924_vm9, %v916_v16, %v917_v50  ;;  %vm932_vm13 = vcmask 1045508  }
 0x115   :  { %v859_v37 = vsel %vm858_vm2, %v6441_v34, %v855_v63  ;;  %v864_v34 = vsub.f32 1.5, %v863_v52  ;;  %v923_v51 = vsel %vm922_vm8, %v899_v53, %v915_v45  ;;  %v941_v57 = vperm.slane %v892_v41, 0 }
 0x116   :  { %v895_v62 = vmul.f32 %v879_v4, %v859_v37  ;;  %v942_v43 = vperm.slane %v893_v8, 0  ;;  %v943_v24 = vperm.slane %v894_v60, 0  ;;  %vm934_vm14 = vcmask 1043456  }
 0x117   :  { %v865_v48 = vmul.f32 %v5975_v28, %v864_v34  ;;  %v929_v27 = vsel %vm928_vm11, %v918_v18, %v919_v61  ;;  %v927_v44 = vsel %vm926_vm10, %v923_v51, %v925_v3  ;;  %v946_v30 = vmul.f32 %v938_v46, %v6321_v9 }
 0x118   :  { %v905_v11 = vmul.f32 %v895_v62, %v6383_v21  ;;  %v939_v21 = vperm.slane %v6507_v35, 0  ;;  %v944_v63 = vperm.slane %v895_v62, 0  ;;  %v948_v33 = vmul.f32 %v940_v20, %v6330_v23 }
 0x119   :  { %v869_v15 = vsel %vm868_vm7, %v5975_v28, %v865_v48  ;;  %v898_v28 = vld [vmem:[#allocation11 + $0x2] ss:$4 sm:$0xff]  ;;  %v949_v35 = vmul.f32 %v941_v57, %v6333_v25  ;;  %v950_v36 = vmul.f32 %v942_v43, %v6353_v59  ;;  %v951_v4 = vmul.f32 %v943_v24, %v6359_v1 }
 0x11a   :  { %v896_v17 = vmul.f32 %v880_v2, %v869_v15  ;;  %v920_v19 = vrot.slane %v905_v11, 2  ;;  %v947_v32 = vmul.f32 %v939_v21, %v6323_v10  ;;  %v952_v6 = vmul.f32 %v944_v63, %v6367_v26 }
 0x11c   :  { %v906_v42 = vmul.f32 %v896_v17, %v6401_v58  ;;  %v945_v58 = vperm.slane %v896_v17, 0 }
 0x11e   :  { %v921_v22 = vrot.slane %v906_v42, 1  ;;  %v953_v13 = vmul.f32 %v945_v58, %v6371_v39 }
 0x120   :  { %v931_v29 = vsel %vm930_vm12, %v920_v19, %v921_v22 }
 0x121   :  { %v933_v49 = vsel %vm932_vm13, %v929_v27, %v931_v29 }
 0x122   :  { %v935_v31 = vsel %vm934_vm14, %v927_v44, %v933_v49 }
 0x123   :  { %v937_v54 = vsub.f32 %v898_v28, %v935_v31 }
 0x125   :  { %v955_v37 = vperm.slane %v937_v54, 0  ;;  %v956_v38 = vperm.slane %v937_v54, 1  ;;  %v957_v40 = vperm.slane %v937_v54, 2  ;;  %v958_v9 = vperm.slane %v937_v54, 3 }
 0x126   :  { %v959_v41 = vperm.slane %v937_v54, 4  ;;  %v960_v47 = vperm.slane %v937_v54, 5  ;;  %v961_v10 = vperm.slane %v937_v54, 6  ;;  %v962_v52 = vperm.slane %v937_v54, 7 }
 0x127   :  { %v971_v23 = vadd.f32 %v955_v37, %v946_v30  ;;  %v972_v55 = vadd.f32 %v956_v38, %v947_v32  ;;  %v973_v25 = vadd.f32 %v957_v40, %v948_v33  ;;  %v974_v8 = vadd.f32 %v958_v9, %v949_v35 }
 0x128   :  { %v975_v60 = vadd.f32 %v959_v41, %v950_v36  ;;  %v976_v59 = vadd.f32 %v960_v47, %v951_v4  ;;  %v977_v62 = vadd.f32 %v961_v10, %v952_v6  ;;  %v978_v1 = vadd.f32 %v962_v52, %v953_v13 }
 0x129   :  { %v6549_v12 = vpack.c.bf16 %v971_v23, %v971_v23  ;;  %v6551_v26 = vpack.c.bf16 %v972_v55, %v972_v55  ;;  %v6553_v39 = vpack.c.bf16 %v973_v25, %v973_v25  ;;  %v6555_v34 = vpack.c.bf16 %v974_v8, %v974_v8 }
 0x12a   :  { %v6557_v56 = vpack.c.bf16 %v975_v60, %v975_v60  ;;  %v6559_v0 = vpack.c.bf16 %v976_v59, %v976_v59  ;;  %v6561_v2 = vpack.c.bf16 %v977_v62, %v977_v62  ;;  %v6563_v5 = vpack.c.bf16 %v978_v1, %v978_v1 }
 0x12b   :  { %6214 = dma.done.wait [#allocation5], 32768 }
 0x12c   :  { %6215 = vsyncadd [#allocation5], 4294934528  ;;  %v4316_v48 = vld [vmem:[#allocation2 + $0xe0] sm:$0xf]  ;;  %v5643_v14 = vld [vmem:[#allocation2 + $0xec] sm:$0xf0] }
 0x12d   :  { %v4444_v7 = vld [vmem:[#allocation2 + $0x1e0] sm:$0xf]  ;;  %v4317_v11 = vor.u32 %v5643_v14, %v4316_v48  ;;  %v5675_v45 = vld [vmem:[#allocation2 + $0x1ec] sm:$0xf0] }
 0x12e   :  { %v4572_v15 = vld [vmem:[#allocation2 + $0x2e0] sm:$0xf]  ;;  %v5707_v16 = vld [vmem:[#allocation2 + $0x2ec] sm:$0xf0]  ;;  %v4445_v50 = vor.u32 %v5675_v45, %v4444_v7 }
 0x12f   :  { %v4573_v17 = vor.u32 %v5707_v16, %v4572_v15  ;;  %v4700_v53 = vld [vmem:[#allocation2 + $0x3e0] sm:$0xf]  ;;  %v5739_v46 = vld [vmem:[#allocation2 + $0x3ec] sm:$0xf0]  ;;  %2537 = vmatpush.bf16.msra.mxu0 %v4317_v11 }
 0x130   :  { %v4300_v18 = vld [vmem:[#allocation2 + $0xc0] sm:$0xf]  ;;  %v4701_v61 = vor.u32 %v5739_v46, %v4700_v53  ;;  %v5639_v19 = vld [vmem:[#allocation2 + $0xcc] sm:$0xf0]  ;;  %2550 = vmatpush.bf16.msra.mxu1 %v4445_v50 }
 0x131   :  { %v4428_v42 = vld [vmem:[#allocation2 + $0x1c0] sm:$0xf]  ;;  %v5671_v51 = vld [vmem:[#allocation2 + $0x1cc] sm:$0xf0]  ;;  %2563 = vmatpush.bf16.msra.mxu2 %v4573_v17  ;;  %v4301_v21 = vor.u32 %v5639_v19, %v4300_v18 }
 0x132   :  { %v4429_v20 = vor.u32 %v5671_v51, %v4428_v42  ;;  %v4556_v3 = vld [vmem:[#allocation2 + $0x2c0] sm:$0xf]  ;;  %v5703_v22 = vld [vmem:[#allocation2 + $0x2cc] sm:$0xf0]  ;;  %2576 = vmatpush.bf16.msra.mxu3 %v4701_v61 }
 0x133   :  { %v4684_v57 = vld [vmem:[#allocation2 + $0x3c0] sm:$0xf]  ;;  %v4557_v43 = vor.u32 %v5703_v22, %v4556_v3  ;;  %v5735_v24 = vld [vmem:[#allocation2 + $0x3cc] sm:$0xf0]  ;;  %2538 = vmatpush.bf16.msra.mxu0 %v4301_v21 }
 0x134   :  { %v4284_v27 = vld [vmem:[#allocation2 + $0xa0] sm:$0xf]  ;;  %v5635_v63 = vld [vmem:[#allocation2 + $0xac] sm:$0xf0]  ;;  %v4685_v28 = vor.u32 %v5735_v24, %v4684_v57  ;;  %2551 = vmatpush.bf16.msra.mxu1 %v4429_v20 }
 0x135   :  { %v4412_v29 = vld [vmem:[#allocation2 + $0x1a0] sm:$0xf]  ;;  %v5667_v58 = vld [vmem:[#allocation2 + $0x1ac] sm:$0xf0]  ;;  %v4285_v49 = vor.u32 %v5635_v63, %v4284_v27  ;;  %2564 = vmatpush.bf16.msra.mxu2 %v4557_v43 }
 0x136   :  { %v4540_v44 = vld [vmem:[#allocation2 + $0x2a0] sm:$0xf]  ;;  %v5699_v30 = vld [vmem:[#allocation2 + $0x2ac] sm:$0xf0]  ;;  %v4413_v33 = vor.u32 %v5667_v58, %v4412_v29  ;;  %2577 = vmatpush.bf16.msra.mxu3 %v4685_v28 }
 0x137   :  { %v4668_v31 = vld [vmem:[#allocation2 + $0x3a0] sm:$0xf]  ;;  %v5731_v32 = vld [vmem:[#allocation2 + $0x3ac] sm:$0xf0]  ;;  %v4541_v35 = vor.u32 %v5699_v30, %v4540_v44  ;;  %2539 = vmatpush.bf16.msra.mxu0 %v4285_v49 }
 0x138   :  { %v4268_v54 = vld [vmem:[#allocation2 + $0x80] sm:$0xf]  ;;  %v5631_v36 = vld [vmem:[#allocation2 + $0x8c] sm:$0xf0]  ;;  %v4669_v6 = vor.u32 %v5731_v32, %v4668_v31  ;;  %2552 = vmatpush.bf16.msra.mxu1 %v4413_v33 }
 0x139   :  { %v4396_v4 = vld [vmem:[#allocation2 + $0x180] sm:$0xf]  ;;  %v5663_v13 = vld [vmem:[#allocation2 + $0x18c] sm:$0xf0]  ;;  %v4269_v41 = vor.u32 %v5631_v36, %v4268_v54  ;;  %2565 = vmatpush.bf16.msra.mxu2 %v4541_v35 }
 0x13a   :  { %v4524_v37 = vld [vmem:[#allocation2 + $0x280] sm:$0xf]  ;;  %v5695_v38 = vld [vmem:[#allocation2 + $0x28c] sm:$0xf0]  ;;  %v4397_v47 = vor.u32 %v5663_v13, %v4396_v4  ;;  %2578 = vmatpush.bf16.msra.mxu3 %v4669_v6 }
 0x13b   :  { %v4652_v40 = vld [vmem:[#allocation2 + $0x380] sm:$0xf]  ;;  %v5727_v9 = vld [vmem:[#allocation2 + $0x38c] sm:$0xf0]  ;;  %v4525_v10 = vor.u32 %v5695_v38, %v4524_v37  ;;  %2540 = vmatpush.bf16.msra.mxu0 %v4269_v41 }
 0x13c   :  { %v4252_v52 = vld [vmem:[#allocation2 + $0x60] sm:$0xf]  ;;  %v5627_v23 = vld [vmem:[#allocation2 + $0x6c] sm:$0xf0]  ;;  %v4653_v25 = vor.u32 %v5727_v9, %v4652_v40  ;;  %2553 = vmatpush.bf16.msra.mxu1 %v4397_v47 }
 0x13d   :  { %v4380_v55 = vld [vmem:[#allocation2 + $0x160] sm:$0xf]  ;;  %v5659_v8 = vld [vmem:[#allocation2 + $0x16c] sm:$0xf0]  ;;  %v4253_v48 = vor.u32 %v5627_v23, %v4252_v52  ;;  %2566 = vmatpush.bf16.msra.mxu2 %v4525_v10 }
 0x13e   :  { %v4508_v60 = vld [vmem:[#allocation2 + $0x260] sm:$0xf]  ;;  %v5691_v59 = vld [vmem:[#allocation2 + $0x26c] sm:$0xf0]  ;;  %v4381_v14 = vor.u32 %v5659_v8, %v4380_v55  ;;  %2579 = vmatpush.bf16.msra.mxu3 %v4653_v25 }
 0x13f   :  { %v4636_v62 = vld [vmem:[#allocation2 + $0x360] sm:$0xf]  ;;  %v5723_v1 = vld [vmem:[#allocation2 + $0x36c] sm:$0xf0]  ;;  %v4509_v7 = vor.u32 %v5691_v59, %v4508_v60  ;;  %2541 = vmatpush.bf16.msra.mxu0 %v4253_v48 }
 0x140   :  { %v4236_v11 = vld [vmem:[#allocation2 + $0x40] sm:$0xf]  ;;  %v5623_v45 = vld [vmem:[#allocation2 + $0x4c] sm:$0xf0]  ;;  %v4637_v16 = vor.u32 %v5723_v1, %v4636_v62  ;;  %2554 = vmatpush.bf16.msra.mxu1 %v4381_v14 }
 0x141   :  { %v4364_v15 = vld [vmem:[#allocation2 + $0x140] sm:$0xf]  ;;  %v5655_v50 = vld [vmem:[#allocation2 + $0x14c] sm:$0xf0]  ;;  %v4237_v61 = vor.u32 %v5623_v45, %v4236_v11  ;;  %2567 = vmatpush.bf16.msra.mxu2 %v4509_v7 }
 0x142   :  { %v4492_v17 = vld [vmem:[#allocation2 + $0x240] sm:$0xf]  ;;  %v5687_v53 = vld [vmem:[#allocation2 + $0x24c] sm:$0xf0]  ;;  %v4365_v19 = vor.u32 %v5655_v50, %v4364_v15  ;;  %2580 = vmatpush.bf16.msra.mxu3 %v4637_v16 }
 0x143   :  { %v4620_v46 = vld [vmem:[#allocation2 + $0x340] sm:$0xf]  ;;  %v5719_v18 = vld [vmem:[#allocation2 + $0x34c] sm:$0xf0]  ;;  %v4493_v42 = vor.u32 %v5687_v53, %v4492_v17  ;;  %2542 = vmatpush.bf16.msra.mxu0 %v4237_v61 }
 0x144   :  { %v4220_v51 = vld [vmem:[#allocation2 + $0x20] sm:$0xf]  ;;  %v5619_v21 = vld [vmem:[#allocation2 + $0x2c] sm:$0xf0]  ;;  %v4621_v3 = vor.u32 %v5719_v18, %v4620_v46  ;;  %2555 = vmatpush.bf16.msra.mxu1 %v4365_v19 }
 0x145   :  { %v4348_v20 = vld [vmem:[#allocation2 + $0x120] sm:$0xf]  ;;  %v5651_v22 = vld [vmem:[#allocation2 + $0x12c] sm:$0xf0]  ;;  %v4221_v63 = vor.u32 %v5619_v21, %v4220_v51  ;;  %2568 = vmatpush.bf16.msra.mxu2 %v4493_v42 }
 0x146   :  { %v4476_v57 = vld [vmem:[#allocation2 + $0x220] sm:$0xf]  ;;  %v5683_v43 = vld [vmem:[#allocation2 + $0x22c] sm:$0xf0]  ;;  %v4349_v58 = vor.u32 %v5651_v22, %v4348_v20  ;;  %2581 = vmatpush.bf16.msra.mxu3 %v4621_v3 }
 0x147   :  { %v4604_v24 = vld [vmem:[#allocation2 + $0x320] sm:$0xf]  ;;  %v5715_v27 = vld [vmem:[#allocation2 + $0x32c] sm:$0xf0]  ;;  %v4477_v44 = vor.u32 %v5683_v43, %v4476_v57  ;;  %2543 = vmatpush.bf16.msra.mxu0 %v4221_v63 }
 0x148   :  { %v4204_v28 = vld [vmem:[#allocation2] sm:$0xf]  ;;  %v5615_v29 = vld [vmem:[#allocation2 + $0xc] sm:$0xf0]  ;;  %v4605_v32 = vor.u32 %v5715_v27, %v4604_v24  ;;  %2556 = vmatpush.bf16.msra.mxu1 %v4349_v58 }
 0x149   :  { %v4332_v49 = vld [vmem:[#allocation2 + $0x100] sm:$0xf]  ;;  %v5647_v30 = vld [vmem:[#allocation2 + $0x10c] sm:$0xf0]  ;;  %v4205_v13 = vor.u32 %v5615_v29, %v4204_v28  ;;  %2569 = vmatpush.bf16.msra.mxu2 %v4477_v44 }
 0x14a   :  { %v4460_v31 = vld [vmem:[#allocation2 + $0x200] sm:$0xf]  ;;  %v5679_v33 = vld [vmem:[#allocation2 + $0x20c] sm:$0xf0]  ;;  %v4333_v9 = vor.u32 %v5647_v30, %v4332_v49  ;;  %2582 = vmatpush.bf16.msra.mxu3 %v4605_v32 }
 0x14b   :  { %v4588_v35 = vld [vmem:[#allocation2 + $0x300] sm:$0xf]  ;;  %v5711_v54 = vld [vmem:[#allocation2 + $0x30c] sm:$0xf0]  ;;  %v4461_v41 = vor.u32 %v5679_v33, %v4460_v31  ;;  %2544 = vmatpush.bf16.msra.mxu0 %v4205_v13 }
 0x14c   :  { %v4828_v36 = vld [vmem:[#allocation2 + $0x4e0] sm:$0xf]  ;;  %v5771_v4 = vld [vmem:[#allocation2 + $0x4ec] sm:$0xf0]  ;;  %v4589_v52 = vor.u32 %v5711_v54, %v4588_v35  ;;  %2557 = vmatpush.bf16.msra.mxu1 %v4333_v9 }
 0x14d   :  { %v4956_v6 = vld [vmem:[#allocation2 + $0x5e0] sm:$0xf]  ;;  %v5803_v37 = vld [vmem:[#allocation2 + $0x5ec] sm:$0xf0]  ;;  %v4829_v23 = vor.u32 %v5771_v4, %v4828_v36  ;;  %2570 = vmatpush.bf16.msra.mxu2 %v4461_v41 }
 0x14e   :  { %v5084_v38 = vld [vmem:[#allocation2 + $0x6e0] sm:$0xf]  ;;  %v5835_v40 = vld [vmem:[#allocation2 + $0x6ec] sm:$0xf0]  ;;  %v4957_v55 = vor.u32 %v5803_v37, %v4956_v6  ;;  %2583 = vmatpush.bf16.msra.mxu3 %v4589_v52  ;;  %2545 = vmatmul.bf16.vlgmr.msra.gmra.mxu0 %v6549_v12 }
 0x14f   :  { %v5212_v47 = vld [vmem:[#allocation2 + $0x7e0] sm:$0xf]  ;;  %v5867_v10 = vld [vmem:[#allocation2 + $0x7ec] sm:$0xf0]  ;;  %v5085_v25 = vor.u32 %v5835_v40, %v5084_v38  ;;  %2589 = vmatpush.bf16.msrb.mxu0 %v4829_v23  ;;  %2558 = vmatmul.bf16.vlgmr.msra.gmra.mxu1 %v6551_v26 }
 0x150   :  { %v4812_v8 = vld [vmem:[#allocation2 + $0x4c0] sm:$0xf]  ;;  %v5767_v60 = vld [vmem:[#allocation2 + $0x4cc] sm:$0xf0]  ;;  %v5213_v62 = vor.u32 %v5867_v10, %v5212_v47  ;;  %2602 = vmatpush.bf16.msrb.mxu1 %v4957_v55  ;;  %2571 = vmatmul.bf16.vlgmr.msra.gmra.mxu2 %v6553_v39 }
 0x151   :  { %v4940_v59 = vld [vmem:[#allocation2 + $0x5c0] sm:$0xf]  ;;  %v5799_v1 = vld [vmem:[#allocation2 + $0x5cc] sm:$0xf0]  ;;  %v4813_v45 = vor.u32 %v5767_v60, %v4812_v8  ;;  %2615 = vmatpush.bf16.msrb.mxu2 %v5085_v25  ;;  %2584 = vmatmul.bf16.vlgmr.msra.gmra.mxu3 %v6555_v34 }
 0x152   :  { %v5068_v48 = vld [vmem:[#allocation2 + $0x6c0] sm:$0xf]  ;;  %v5831_v14 = vld [vmem:[#allocation2 + $0x6cc] sm:$0xf0]  ;;  %v4941_v15 = vor.u32 %v5799_v1, %v4940_v59  ;;  %2628 = vmatpush.bf16.msrb.mxu3 %v5213_v62 }
 0x153   :  { %v5196_v7 = vld [vmem:[#allocation2 + $0x7c0] sm:$0xf]  ;;  %v5863_v11 = vld [vmem:[#allocation2 + $0x7cc] sm:$0xf0]  ;;  %v5069_v16 = vor.u32 %v5831_v14, %v5068_v48  ;;  %2590 = vmatpush.bf16.msrb.mxu0 %v4813_v45 }
 0x154   :  { %v4796_v50 = vld [vmem:[#allocation2 + $0x4a0] sm:$0xf]  ;;  %v5763_v17 = vld [vmem:[#allocation2 + $0x4ac] sm:$0xf0]  ;;  %v5197_v46 = vor.u32 %v5863_v11, %v5196_v7  ;;  %2603 = vmatpush.bf16.msrb.mxu1 %v4941_v15 }
 0x155   :  { %v4924_v53 = vld [vmem:[#allocation2 + $0x5a0] sm:$0xf]  ;;  %v5795_v18 = vld [vmem:[#allocation2 + $0x5ac] sm:$0xf0]  ;;  %v4797_v21 = vor.u32 %v5763_v17, %v4796_v50  ;;  %2616 = vmatpush.bf16.msrb.mxu2 %v5069_v16 }
 0x156   :  { %v5052_v61 = vld [vmem:[#allocation2 + $0x6a0] sm:$0xf]  ;;  %v5827_v19 = vld [vmem:[#allocation2 + $0x6ac] sm:$0xf0]  ;;  %v4925_v20 = vor.u32 %v5795_v18, %v4924_v53  ;;  %2629 = vmatpush.bf16.msrb.mxu3 %v5197_v46 }
 0x157   :  { %v5180_v42 = vld [vmem:[#allocation2 + $0x7a0] sm:$0xf]  ;;  %v5859_v51 = vld [vmem:[#allocation2 + $0x7ac] sm:$0xf0]  ;;  %v5053_v3 = vor.u32 %v5827_v19, %v5052_v61  ;;  %2591 = vmatpush.bf16.msrb.mxu0 %v4797_v21 }
 0x158   :  { %v4780_v22 = vld [vmem:[#allocation2 + $0x480] sm:$0xf]  ;;  %v5759_v57 = vld [vmem:[#allocation2 + $0x48c] sm:$0xf0]  ;;  %v5181_v24 = vor.u32 %v5859_v51, %v5180_v42  ;;  %2604 = vmatpush.bf16.msrb.mxu1 %v4925_v20 }
 0x159   :  { %v4908_v43 = vld [vmem:[#allocation2 + $0x580] sm:$0xf]  ;;  %v5791_v27 = vld [vmem:[#allocation2 + $0x58c] sm:$0xf0]  ;;  %v4781_v44 = vor.u32 %v5759_v57, %v4780_v22  ;;  %2617 = vmatpush.bf16.msrb.mxu2 %v5053_v3  ;;  %v5641_v57 = vld [vmem:[#allocation2 + $0xe4] sm:$0xf] }
 0x15a   :  { %v5036_v63 = vld [vmem:[#allocation2 + $0x680] sm:$0xf]  ;;  %v5823_v28 = vld [vmem:[#allocation2 + $0x68c] sm:$0xf0]  ;;  %v4909_v49 = vor.u32 %v5791_v27, %v4908_v43  ;;  %2630 = vmatpush.bf16.msrb.mxu3 %v5181_v24  ;;  %v4318_v43 = vld [vmem:[#allocation2 + $0xf0] sm:$0xf0] }
 0x15b   :  { %v5164_v29 = vld [vmem:[#allocation2 + $0x780] sm:$0xf]  ;;  %v5855_v58 = vld [vmem:[#allocation2 + $0x78c] sm:$0xf0]  ;;  %v5037_v30 = vor.u32 %v5823_v28, %v5036_v63  ;;  %2592 = vmatpush.bf16.msrb.mxu0 %v4781_v44  ;;  %v5673_v24 = vld [vmem:[#allocation2 + $0x1e4] sm:$0xf] }
 0x15c   :  { %v4764_v31 = vld [vmem:[#allocation2 + $0x460] sm:$0xf]  ;;  %v5755_v32 = vld [vmem:[#allocation2 + $0x46c] sm:$0xf0]  ;;  %v5165_v35 = vor.u32 %v5855_v58, %v5164_v29  ;;  %2605 = vmatpush.bf16.msrb.mxu1 %v4909_v49  ;;  %v4446_v63 = vld [vmem:[#allocation2 + $0x1f0] sm:$0xf0] }
 0x15d   :  { %v4892_v33 = vld [vmem:[#allocation2 + $0x560] sm:$0xf]  ;;  %v5787_v54 = vld [vmem:[#allocation2 + $0x56c] sm:$0xf0]  ;;  %v4765_v37 = vor.u32 %v5755_v32, %v4764_v31  ;;  %2618 = vmatpush.bf16.msrb.mxu2 %v5037_v30  ;;  %v5705_v28 = vld [vmem:[#allocation2 + $0x2e4] sm:$0xf]  ;;  %v4321_v32 = vor.u32 %v5641_v57, %v4318_v43 }
 0x15e   :  { %v5020_v36 = vld [vmem:[#allocation2 + $0x660] sm:$0xf]  ;;  %v5819_v4 = vld [vmem:[#allocation2 + $0x66c] sm:$0xf0]  ;;  %v4893_v38 = vor.u32 %v5787_v54, %v4892_v33  ;;  %2631 = vmatpush.bf16.msrb.mxu3 %v5165_v35  ;;  %v4574_v29 = vld [vmem:[#allocation2 + $0x2f0] sm:$0xf0]  ;;  %v4449_v33 = vor.u32 %v5673_v24, %v4446_v63 }
 0x15f   :  { %v5148_v6 = vld [vmem:[#allocation2 + $0x760] sm:$0xf]  ;;  %v5851_v13 = vld [vmem:[#allocation2 + $0x76c] sm:$0xf0]  ;;  %v5021_v40 = vor.u32 %v5819_v4, %v5020_v36  ;;  %2593 = vmatpush.bf16.msrb.mxu0 %v4765_v37  ;;  %v5737_v49 = vld [vmem:[#allocation2 + $0x3e4] sm:$0xf]  ;;  %v4577_v35 = vor.u32 %v5705_v28, %v4574_v29 }
 0x160   :  { %v4748_v9 = vld [vmem:[#allocation2 + $0x440] sm:$0xf]  ;;  %v5751_v41 = vld [vmem:[#allocation2 + $0x44c] sm:$0xf0]  ;;  %v5149_v10 = vor.u32 %v5851_v13, %v5148_v6  ;;  %2606 = vmatpush.bf16.msrb.mxu1 %v4893_v38  ;;  %v4702_v30 = vld [vmem:[#allocation2 + $0x3f0] sm:$0xf0] }
 0x161   :  { %v4876_v47 = vld [vmem:[#allocation2 + $0x540] sm:$0xf]  ;;  %v5783_v52 = vld [vmem:[#allocation2 + $0x54c] sm:$0xf0]  ;;  %v4749_v60 = vor.u32 %v5751_v41, %v4748_v9  ;;  %2619 = vmatpush.bf16.msrb.mxu2 %v5021_v40  ;;  %v5637_v54 = vld [vmem:[#allocation2 + $0xc4] sm:$0xf]  ;;  %v4705_v6 = vor.u32 %v5737_v49, %v4702_v30 }
 0x162   :  { %v5004_v23 = vld [vmem:[#allocation2 + $0x640] sm:$0xf]  ;;  %v5815_v55 = vld [vmem:[#allocation2 + $0x64c] sm:$0xf0]  ;;  %v4877_v59 = vor.u32 %v5783_v52, %v4876_v47  ;;  %2632 = vmatpush.bf16.msrb.mxu3 %v5149_v10  ;;  %v4302_v36 = vld [vmem:[#allocation2 + $0xd0] sm:$0xf0] }
 0x163   :  { %v5132_v25 = vld [vmem:[#allocation2 + $0x740] sm:$0xf]  ;;  %v5847_v8 = vld [vmem:[#allocation2 + $0x74c] sm:$0xf0]  ;;  %v5005_v62 = vor.u32 %v5815_v55, %v5004_v23  ;;  %2594 = vmatpush.bf16.msrb.mxu0 %v4749_v60  ;;  %v5669_v4 = vld [vmem:[#allocation2 + $0x1c4] sm:$0xf]  ;;  %v4305_v41 = vor.u32 %v5637_v54, %v4302_v36 }
 0x164   :  { %v4732_v1 = vld [vmem:[#allocation2 + $0x420] sm:$0xf]  ;;  %v5747_v48 = vld [vmem:[#allocation2 + $0x42c] sm:$0xf0]  ;;  %v5133_v7 = vor.u32 %v5847_v8, %v5132_v25  ;;  %2607 = vmatpush.bf16.msrb.mxu1 %v4877_v59  ;;  %v4430_v13 = vld [vmem:[#allocation2 + $0x1d0] sm:$0xf0] }
 0x165   :  { %v4860_v14 = vld [vmem:[#allocation2 + $0x520] sm:$0xf]  ;;  %v5779_v11 = vld [vmem:[#allocation2 + $0x52c] sm:$0xf0]  ;;  %v4733_v17 = vor.u32 %v5747_v48, %v4732_v1  ;;  %2620 = vmatpush.bf16.msrb.mxu2 %v5005_v62  ;;  %v5701_v37 = vld [vmem:[#allocation2 + $0x2c4] sm:$0xf]  ;;  %v4433_v47 = vor.u32 %v5669_v4, %v4430_v13 }
 0x166   :  { %v4988_v45 = vld [vmem:[#allocation2 + $0x620] sm:$0xf]  ;;  %v5811_v15 = vld [vmem:[#allocation2 + $0x62c] sm:$0xf0]  ;;  %v4861_v18 = vor.u32 %v5779_v11, %v4860_v14  ;;  %2633 = vmatpush.bf16.msrb.mxu3 %v5133_v7  ;;  %v4558_v38 = vld [vmem:[#allocation2 + $0x2d0] sm:$0xf0] }
 0x167   :  { %v5116_v16 = vld [vmem:[#allocation2 + $0x720] sm:$0xf]  ;;  %v5843_v50 = vld [vmem:[#allocation2 + $0x72c] sm:$0xf0]  ;;  %v4989_v61 = vor.u32 %v5811_v15, %v4988_v45  ;;  %2595 = vmatpush.bf16.msrb.mxu0 %v4733_v17  ;;  %v5733_v40 = vld [vmem:[#allocation2 + $0x3c4] sm:$0xf]  ;;  %v4561_v10 = vor.u32 %v5701_v37, %v4558_v38 }
 0x168   :  { %v4716_v53 = vld [vmem:[#allocation2 + $0x400] sm:$0xf]  ;;  %v5743_v46 = vld [vmem:[#allocation2 + $0x40c] sm:$0xf0]  ;;  %v5117_v21 = vor.u32 %v5843_v50, %v5116_v16  ;;  %2608 = vmatpush.bf16.msrb.mxu1 %v4861_v18  ;;  %v4686_v9 = vld [vmem:[#allocation2 + $0x3d0] sm:$0xf0] }
 0x169   :  { %v4844_v19 = vld [vmem:[#allocation2 + $0x500] sm:$0xf]  ;;  %v5775_v42 = vld [vmem:[#allocation2 + $0x50c] sm:$0xf0]  ;;  %v4717_v27 = vor.u32 %v5743_v46, %v4716_v53  ;;  %2621 = vmatpush.bf16.msrb.mxu2 %v4989_v61  ;;  %v5633_v52 = vld [vmem:[#allocation2 + $0xa4] sm:$0xf]  ;;  %v4689_v25 = vor.u32 %v5733_v40, %v4686_v9 }
 0x16a   :  { %v4972_v51 = vld [vmem:[#allocation2 + $0x600] sm:$0xf]  ;;  %v5807_v20 = vld [vmem:[#allocation2 + $0x60c] sm:$0xf0]  ;;  %v4845_v58 = vor.u32 %v5775_v42, %v4844_v19  ;;  %2634 = vmatpush.bf16.msrb.mxu3 %v5117_v21  ;;  %v4286_v23 = vld [vmem:[#allocation2 + $0xb0] sm:$0xf0] }
 0x16b   :  { %v5100_v3 = vld [vmem:[#allocation2 + $0x700] sm:$0xf]  ;;  %v5839_v22 = vld [vmem:[#allocation2 + $0x70c] sm:$0xf0]  ;;  %v4973_v44 = vor.u32 %v5807_v20, %v4972_v51  ;;  %2596 = vmatpush.bf16.msrb.mxu0 %v4717_v27  ;;  %v5665_v55 = vld [vmem:[#allocation2 + $0x1a4] sm:$0xf]  ;;  %v4289_v48 = vor.u32 %v5633_v52, %v4286_v23 }
 0x16c   :  { %v5101_v31 = vor.u32 %v5839_v22, %v5100_v3  ;;  %2609 = vmatpush.bf16.msrb.mxu1 %v4845_v58  ;;  %v4414_v8 = vld [vmem:[#allocation2 + $0x1b0] sm:$0xf0]  ;;  %v5697_v60 = vld [vmem:[#allocation2 + $0x2a4] sm:$0xf] }
 0x16d   :  { %2622 = vmatpush.bf16.msrb.mxu2 %v4973_v44  ;;  %v4542_v59 = vld [vmem:[#allocation2 + $0x2b0] sm:$0xf0]  ;;  %v5729_v62 = vld [vmem:[#allocation2 + $0x3a4] sm:$0xf]  ;;  %v4417_v14 = vor.u32 %v5665_v55, %v4414_v8 }
 0x16e   :  { %2635 = vmatpush.bf16.msrb.mxu3 %v5101_v31  ;;  %2597 = vmatmul.bf16.vlgmr.msrb.gmra.mxu0 %v6557_v56  ;;  %v4670_v1 = vld [vmem:[#allocation2 + $0x3b0] sm:$0xf0]  ;;  %v4545_v7 = vor.u32 %v5697_v60, %v4542_v59  ;;  %v5629_v11 = vld [vmem:[#allocation2 + $0x84] sm:$0xf] }
 0x16f   :  { %2641 = vmatpush.bf16.msra.mxu0 %v4321_v32  ;;  %2610 = vmatmul.bf16.vlgmr.msrb.gmra.mxu1 %v6559_v0  ;;  %v4270_v45 = vld [vmem:[#allocation2 + $0x90] sm:$0xf0]  ;;  %v5661_v15 = vld [vmem:[#allocation2 + $0x184] sm:$0xf]  ;;  %v4673_v16 = vor.u32 %v5729_v62, %v4670_v1 }
 0x170   :  { %2654 = vmatpush.bf16.msra.mxu1 %v4449_v33  ;;  %2623 = vmatmul.bf16.vlgmr.msrb.gmra.mxu2 %v6561_v2  ;;  %v4398_v50 = vld [vmem:[#allocation2 + $0x190] sm:$0xf0]  ;;  %v5693_v17 = vld [vmem:[#allocation2 + $0x284] sm:$0xf]  ;;  %v4273_v61 = vor.u32 %v5629_v11, %v4270_v45 }
 0x171   :  { %2667 = vmatpush.bf16.msra.mxu2 %v4577_v35  ;;  %2636 = vmatmul.bf16.vlgmr.msrb.gmra.mxu3 %v6563_v5  ;;  %v4526_v53 = vld [vmem:[#allocation2 + $0x290] sm:$0xf0]  ;;  %v5725_v46 = vld [vmem:[#allocation2 + $0x384] sm:$0xf]  ;;  %v4401_v19 = vor.u32 %v5661_v15, %v4398_v50 }
 0x172   :  { %2680 = vmatpush.bf16.msra.mxu3 %v4705_v6  ;;  %v4654_v18 = vld [vmem:[#allocation2 + $0x390] sm:$0xf0]  ;;  %v4529_v42 = vor.u32 %v5693_v17, %v4526_v53  ;;  %v5625_v51 = vld [vmem:[#allocation2 + $0x64] sm:$0xf] }
 0x173   :  { %2642 = vmatpush.bf16.msra.mxu0 %v4305_v41  ;;  %v4254_v21 = vld [vmem:[#allocation2 + $0x70] sm:$0xf0]  ;;  %v5657_v20 = vld [vmem:[#allocation2 + $0x164] sm:$0xf]  ;;  %v4657_v3 = vor.u32 %v5725_v46, %v4654_v18 }
 0x174   :  { %2655 = vmatpush.bf16.msra.mxu1 %v4433_v47  ;;  %v4382_v22 = vld [vmem:[#allocation2 + $0x170] sm:$0xf0]  ;;  %v5689_v57 = vld [vmem:[#allocation2 + $0x264] sm:$0xf]  ;;  %v4257_v63 = vor.u32 %v5625_v51, %v4254_v21 }
 0x175   :  { %2668 = vmatpush.bf16.msra.mxu2 %v4561_v10  ;;  %v4510_v43 = vld [vmem:[#allocation2 + $0x270] sm:$0xf0]  ;;  %v5721_v24 = vld [vmem:[#allocation2 + $0x364] sm:$0xf]  ;;  %v4385_v28 = vor.u32 %v5657_v20, %v4382_v22 }
 0x176   :  { %2681 = vmatpush.bf16.msra.mxu3 %v4689_v25  ;;  %v4638_v27 = vld [vmem:[#allocation2 + $0x370] sm:$0xf0]  ;;  %v4513_v29 = vor.u32 %v5689_v57, %v4510_v43  ;;  %v5621_v58 = vld [vmem:[#allocation2 + $0x44] sm:$0xf] }
 0x177   :  { %2643 = vmatpush.bf16.msra.mxu0 %v4289_v48  ;;  %v4238_v44 = vld [vmem:[#allocation2 + $0x50] sm:$0xf0]  ;;  %v5653_v49 = vld [vmem:[#allocation2 + $0x144] sm:$0xf]  ;;  %v4641_v30 = vor.u32 %v5721_v24, %v4638_v27 }
 0x178   :  { %2656 = vmatpush.bf16.msra.mxu1 %v4417_v14  ;;  %v4366_v31 = vld [vmem:[#allocation2 + $0x150] sm:$0xf0]  ;;  %v5685_v32 = vld [vmem:[#allocation2 + $0x244] sm:$0xf]  ;;  %v4241_v36 = vor.u32 %v5621_v58, %v4238_v44 }
 0x179   :  { %2669 = vmatpush.bf16.msra.mxu2 %v4545_v7  ;;  %v4494_v33 = vld [vmem:[#allocation2 + $0x250] sm:$0xf0]  ;;  %v5717_v35 = vld [vmem:[#allocation2 + $0x344] sm:$0xf]  ;;  %v4369_v4 = vor.u32 %v5653_v49, %v4366_v31 }
 0x17a   :  { %2682 = vmatpush.bf16.msra.mxu3 %v4673_v16  ;;  %v4622_v54 = vld [vmem:[#allocation2 + $0x350] sm:$0xf0]  ;;  %v4497_v6 = vor.u32 %v5685_v32, %v4494_v33  ;;  %v5617_v13 = vld [vmem:[#allocation2 + $0x24] sm:$0xf] }
 0x17b   :  { %2644 = vmatpush.bf16.msra.mxu0 %v4273_v61  ;;  %v4222_v37 = vld [vmem:[#allocation2 + $0x30] sm:$0xf0]  ;;  %v5649_v38 = vld [vmem:[#allocation2 + $0x124] sm:$0xf]  ;;  %v4625_v40 = vor.u32 %v5717_v35, %v4622_v54 }
 0x17c   :  { %2657 = vmatpush.bf16.msra.mxu1 %v4401_v19  ;;  %v4350_v9 = vld [vmem:[#allocation2 + $0x130] sm:$0xf0]  ;;  %v5681_v41 = vld [vmem:[#allocation2 + $0x224] sm:$0xf]  ;;  %v4225_v23 = vor.u32 %v5617_v13, %v4222_v37 }
 0x17d   :  { %2670 = vmatpush.bf16.msra.mxu2 %v4529_v42  ;;  %v4478_v47 = vld [vmem:[#allocation2 + $0x230] sm:$0xf0]  ;;  %v5713_v10 = vld [vmem:[#allocation2 + $0x324] sm:$0xf]  ;;  %v4353_v8 = vor.u32 %v5649_v38, %v4350_v9 }
 0x17e   :  { %2683 = vmatpush.bf16.msra.mxu3 %v4657_v3  ;;  %v4606_v52 = vld [vmem:[#allocation2 + $0x330] sm:$0xf0]  ;;  %v5613_v55 = vld [vmem:[#allocation2 + $0x4] sm:$0xf]  ;;  %v4481_v60 = vor.u32 %v5681_v41, %v4478_v47 }
 0x17f   :  { %2645 = vmatpush.bf16.msra.mxu0 %v4257_v63  ;;  %v4206_v25 = vld [vmem:[#allocation2 + $0x10] sm:$0xf0]  ;;  %v5645_v59 = vld [vmem:[#allocation2 + $0x104] sm:$0xf]  ;;  %v4609_v48 = vor.u32 %v5713_v10, %v4606_v52 }
 0x180   :  { %2658 = vmatpush.bf16.msra.mxu1 %v4385_v28  ;;  %v4334_v62 = vld [vmem:[#allocation2 + $0x110] sm:$0xf0]  ;;  %v5677_v1 = vld [vmem:[#allocation2 + $0x204] sm:$0xf]  ;;  %v4209_v50 = vor.u32 %v5613_v55, %v4206_v25 }
 0x181   :  { %2671 = vmatpush.bf16.msra.mxu2 %v4513_v29  ;;  %v4462_v14 = vld [vmem:[#allocation2 + $0x210] sm:$0xf0]  ;;  %v5709_v7 = vld [vmem:[#allocation2 + $0x304] sm:$0xf]  ;;  %v4337_v18 = vor.u32 %v5645_v59, %v4334_v62 }
 0x182   :  { %2684 = vmatpush.bf16.msra.mxu3 %v4641_v30  ;;  %v4590_v11 = vld [vmem:[#allocation2 + $0x310] sm:$0xf0]  ;;  %v5769_v45 = vld [vmem:[#allocation2 + $0x4e4] sm:$0xf]  ;;  %v4465_v61 = vor.u32 %v5677_v1, %v4462_v14 }
 0x183   :  { %2646 = vmatpush.bf16.msra.mxu0 %v4241_v36  ;;  %v4830_v15 = vld [vmem:[#allocation2 + $0x4f0] sm:$0xf0]  ;;  %v5801_v16 = vld [vmem:[#allocation2 + $0x5e4] sm:$0xf]  ;;  %v4593_v51 = vor.u32 %v5709_v7, %v4590_v11 }
 0x184   :  { %2659 = vmatpush.bf16.msra.mxu1 %v4369_v4  ;;  %v4958_v17 = vld [vmem:[#allocation2 + $0x5f0] sm:$0xf0]  ;;  %v5833_v53 = vld [vmem:[#allocation2 + $0x6e4] sm:$0xf]  ;;  %v4833_v21 = vor.u32 %v5769_v45, %v4830_v15 }
 0x185   :  { %2672 = vmatpush.bf16.msra.mxu2 %v4497_v6  ;;  %v5086_v46 = vld [vmem:[#allocation2 + $0x6f0] sm:$0xf0]  ;;  %v5865_v19 = vld [vmem:[#allocation2 + $0x7e4] sm:$0xf]  ;;  %v4961_v20 = vor.u32 %v5801_v16, %v4958_v17 }
 0x186   :  { %2685 = vmatpush.bf16.msra.mxu3 %v4625_v40  ;;  %v5214_v42 = vld [vmem:[#allocation2 + $0x7f0] sm:$0xf0]  ;;  %v5089_v3 = vor.u32 %v5833_v53, %v5086_v46  ;;  %v5765_v22 = vld [vmem:[#allocation2 + $0x4c4] sm:$0xf] }
 0x187   :  { %2647 = vmatpush.bf16.msra.mxu0 %v4225_v23  ;;  %v4814_v57 = vld [vmem:[#allocation2 + $0x4d0] sm:$0xf0]  ;;  %v5797_v43 = vld [vmem:[#allocation2 + $0x5c4] sm:$0xf]  ;;  %v5217_v24 = vor.u32 %v5865_v19, %v5214_v42 }
 0x188   :  { %2660 = vmatpush.bf16.msra.mxu1 %v4353_v8  ;;  %v4942_v27 = vld [vmem:[#allocation2 + $0x5d0] sm:$0xf0]  ;;  %v5829_v63 = vld [vmem:[#allocation2 + $0x6c4] sm:$0xf]  ;;  %v4817_v44 = vor.u32 %v5765_v22, %v4814_v57 }
 0x189   :  { %2673 = vmatpush.bf16.msra.mxu2 %v4481_v60  ;;  %v5070_v28 = vld [vmem:[#allocation2 + $0x6d0] sm:$0xf0]  ;;  %v5861_v29 = vld [vmem:[#allocation2 + $0x7c4] sm:$0xf]  ;;  %v4945_v49 = vor.u32 %v5797_v43, %v4942_v27 }
 0x18a   :  { %2686 = vmatpush.bf16.msra.mxu3 %v4609_v48  ;;  %v5198_v58 = vld [vmem:[#allocation2 + $0x7d0] sm:$0xf0]  ;;  %v5073_v30 = vor.u32 %v5829_v63, %v5070_v28  ;;  %v5761_v31 = vld [vmem:[#allocation2 + $0x4a4] sm:$0xf] }
 0x18b   :  { %2648 = vmatpush.bf16.msra.mxu0 %v4209_v50  ;;  %v4798_v32 = vld [vmem:[#allocation2 + $0x4b0] sm:$0xf0]  ;;  %v5793_v33 = vld [vmem:[#allocation2 + $0x5a4] sm:$0xf]  ;;  %v5201_v35 = vor.u32 %v5861_v29, %v5198_v58 }
 0x18c   :  { %2661 = vmatpush.bf16.msra.mxu1 %v4337_v18  ;;  %v4926_v54 = vld [vmem:[#allocation2 + $0x5b0] sm:$0xf0]  ;;  %v5825_v36 = vld [vmem:[#allocation2 + $0x6a4] sm:$0xf]  ;;  %v4801_v37 = vor.u32 %v5761_v31, %v4798_v32 }
 0x18d   :  { %2674 = vmatpush.bf16.msra.mxu2 %v4465_v61  ;;  %v5054_v4 = vld [vmem:[#allocation2 + $0x6b0] sm:$0xf0]  ;;  %v5857_v6 = vld [vmem:[#allocation2 + $0x7a4] sm:$0xf]  ;;  %v4929_v38 = vor.u32 %v5793_v33, %v4926_v54 }
 0x18e   :  { %2687 = vmatpush.bf16.msra.mxu3 %v4593_v51  ;;  %v5182_v13 = vld [vmem:[#allocation2 + $0x7b0] sm:$0xf0]  ;;  %2649 = vmatmul.bf16.vlgmr.msra.gmra.mxu0 %v6549_v12  ;;  %v5057_v40 = vor.u32 %v5825_v36, %v5054_v4  ;;  %v5757_v9 = vld [vmem:[#allocation2 + $0x484] sm:$0xf] }
 0x18f   :  { %2693 = vmatpush.bf16.msrb.mxu0 %v4833_v21  ;;  %2662 = vmatmul.bf16.vlgmr.msra.gmra.mxu1 %v6551_v26  ;;  %v4782_v41 = vld [vmem:[#allocation2 + $0x490] sm:$0xf0]  ;;  %v5789_v47 = vld [vmem:[#allocation2 + $0x584] sm:$0xf]  ;;  %v5185_v10 = vor.u32 %v5857_v6, %v5182_v13 }
 0x190   :  { %2706 = vmatpush.bf16.msrb.mxu1 %v4961_v20  ;;  %2675 = vmatmul.bf16.vlgmr.msra.gmra.mxu2 %v6553_v39  ;;  %v4910_v52 = vld [vmem:[#allocation2 + $0x590] sm:$0xf0]  ;;  %v5821_v23 = vld [vmem:[#allocation2 + $0x684] sm:$0xf]  ;;  %v4785_v60 = vor.u32 %v5757_v9, %v4782_v41  ;;  %v4324_v41 = vld [vmem:[#allocation2 + $0xe8] sm:$0xf] }
 0x191   :  { %2719 = vmatpush.bf16.msrb.mxu2 %v5089_v3  ;;  %2688 = vmatmul.bf16.vlgmr.msra.gmra.mxu3 %v6555_v34  ;;  %v5038_v55 = vld [vmem:[#allocation2 + $0x690] sm:$0xf0]  ;;  %v5853_v25 = vld [vmem:[#allocation2 + $0x784] sm:$0xf]  ;;  %v4913_v59 = vor.u32 %v5789_v47, %v4910_v52  ;;  %v5644_v47 = vld [vmem:[#allocation2 + $0xf4] sm:$0xf0] }
 0x192   :  { %2732 = vmatpush.bf16.msrb.mxu3 %v5217_v24  ;;  %v5166_v8 = vld [vmem:[#allocation2 + $0x790] sm:$0xf0]  ;;  %v5041_v62 = vor.u32 %v5821_v23, %v5038_v55  ;;  %v5753_v1 = vld [vmem:[#allocation2 + $0x464] sm:$0xf]  ;;  %v5676_v23 = vld [vmem:[#allocation2 + $0x1f4] sm:$0xf0] }
 0x193   :  { %2694 = vmatpush.bf16.msrb.mxu0 %v4817_v44  ;;  %v4766_v48 = vld [vmem:[#allocation2 + $0x470] sm:$0xf0]  ;;  %v5785_v14 = vld [vmem:[#allocation2 + $0x564] sm:$0xf]  ;;  %v5169_v7 = vor.u32 %v5853_v25, %v5166_v8  ;;  %v4580_v55 = vld [vmem:[#allocation2 + $0x2e8] sm:$0xf] }
 0x194   :  { %2707 = vmatpush.bf16.msrb.mxu1 %v4945_v49  ;;  %v4894_v11 = vld [vmem:[#allocation2 + $0x570] sm:$0xf0]  ;;  %v5817_v45 = vld [vmem:[#allocation2 + $0x664] sm:$0xf]  ;;  %v4769_v17 = vor.u32 %v5753_v1, %v4766_v48  ;;  %v5708_v25 = vld [vmem:[#allocation2 + $0x2f4] sm:$0xf0]  ;;  %v4325_v48 = vor.u32 %v5644_v47, %v4324_v41 }
 0x195   :  { %2720 = vmatpush.bf16.msrb.mxu2 %v5073_v30  ;;  %v5022_v15 = vld [vmem:[#allocation2 + $0x670] sm:$0xf0]  ;;  %v5849_v16 = vld [vmem:[#allocation2 + $0x764] sm:$0xf]  ;;  %v4897_v53 = vor.u32 %v5785_v14, %v4894_v11  ;;  %v4308_v11 = vld [vmem:[#allocation2 + $0xc8] sm:$0xf] }
 0x196   :  { %2733 = vmatpush.bf16.msrb.mxu3 %v5201_v35  ;;  %v5150_v50 = vld [vmem:[#allocation2 + $0x770] sm:$0xf0]  ;;  %v5025_v46 = vor.u32 %v5817_v45, %v5022_v15  ;;  %v5749_v18 = vld [vmem:[#allocation2 + $0x444] sm:$0xf]  ;;  %v5640_v45 = vld [vmem:[#allocation2 + $0xd4] sm:$0xf0] }
 0x197   :  { %2695 = vmatpush.bf16.msrb.mxu0 %v4801_v37  ;;  %v4750_v61 = vld [vmem:[#allocation2 + $0x450] sm:$0xf0]  ;;  %v5781_v19 = vld [vmem:[#allocation2 + $0x544] sm:$0xf]  ;;  %v5153_v42 = vor.u32 %v5849_v16, %v5150_v50  ;;  %v4436_v15 = vld [vmem:[#allocation2 + $0x1c8] sm:$0xf] }
 0x198   :  { %2708 = vmatpush.bf16.msrb.mxu1 %v4929_v38  ;;  %v4878_v51 = vld [vmem:[#allocation2 + $0x550] sm:$0xf0]  ;;  %v5813_v21 = vld [vmem:[#allocation2 + $0x644] sm:$0xf]  ;;  %v4753_v57 = vor.u32 %v5749_v18, %v4750_v61  ;;  %v5672_v50 = vld [vmem:[#allocation2 + $0x1d4] sm:$0xf0]  ;;  %v4309_v61 = vor.u32 %v5640_v45, %v4308_v11 }
 0x199   :  { %2721 = vmatpush.bf16.msrb.mxu2 %v5057_v40  ;;  %v5006_v20 = vld [vmem:[#allocation2 + $0x650] sm:$0xf0]  ;;  %v5845_v3 = vld [vmem:[#allocation2 + $0x744] sm:$0xf]  ;;  %v4881_v43 = vor.u32 %v5781_v19, %v4878_v51  ;;  %v5736_v18 = vld [vmem:[#allocation2 + $0x3d4] sm:$0xf0]  ;;  %v4437_v19 = vor.u32 %v5672_v50, %v4436_v15 }
 0x19a   :  { %2734 = vmatpush.bf16.msrb.mxu3 %v5185_v10  ;;  %v5134_v22 = vld [vmem:[#allocation2 + $0x750] sm:$0xf0]  ;;  %v5009_v24 = vor.u32 %v5813_v21, %v5006_v20  ;;  %v5745_v27 = vld [vmem:[#allocation2 + $0x424] sm:$0xf]  ;;  %v4452_v10 = vld [vmem:[#allocation2 + $0x1e8] sm:$0xf] }
 0x19b   :  { %2696 = vmatpush.bf16.msrb.mxu0 %v4785_v60  ;;  %v4734_v63 = vld [vmem:[#allocation2 + $0x430] sm:$0xf0]  ;;  %v5777_v28 = vld [vmem:[#allocation2 + $0x524] sm:$0xf]  ;;  %v5137_v29 = vor.u32 %v5845_v3, %v5134_v22  ;;  %v4453_v14 = vor.u32 %v5676_v23, %v4452_v10  ;;  %v4292_v51 = vld [vmem:[#allocation2 + $0xa8] sm:$0xf] }
 0x19c   :  { %2709 = vmatpush.bf16.msrb.mxu1 %v4913_v59  ;;  %v4862_v58 = vld [vmem:[#allocation2 + $0x530] sm:$0xf0]  ;;  %v5809_v44 = vld [vmem:[#allocation2 + $0x624] sm:$0xf]  ;;  %v4737_v32 = vor.u32 %v5745_v27, %v4734_v63  ;;  %v4708_v59 = vld [vmem:[#allocation2 + $0x3e8] sm:$0xf] }
 0x19d   :  { %2722 = vmatpush.bf16.msrb.mxu2 %v5041_v62  ;;  %v4990_v49 = vld [vmem:[#allocation2 + $0x630] sm:$0xf0]  ;;  %v5841_v30 = vld [vmem:[#allocation2 + $0x724] sm:$0xf]  ;;  %v4865_v54 = vor.u32 %v5777_v28, %v4862_v58  ;;  %v5740_v62 = vld [vmem:[#allocation2 + $0x3f4] sm:$0xf0] }
 0x19e   :  { %2735 = vmatpush.bf16.msrb.mxu3 %v5169_v7  ;;  %v5118_v31 = vld [vmem:[#allocation2 + $0x730] sm:$0xf0]  ;;  %v5741_v33 = vld [vmem:[#allocation2 + $0x404] sm:$0xf]  ;;  %v4993_v36 = vor.u32 %v5809_v44, %v4990_v49  ;;  %v4581_v7 = vor.u32 %v5708_v25, %v4580_v55  ;;  %v4709_v16 = vor.u32 %v5740_v62, %v4708_v59  ;;  %v5636_v21 = vld [vmem:[#allocation2 + $0xb4] sm:$0xf0] }
 0x19f   :  { %2697 = vmatpush.bf16.msrb.mxu0 %v4769_v17  ;;  %v4718_v35 = vld [vmem:[#allocation2 + $0x410] sm:$0xf0]  ;;  %v5773_v4 = vld [vmem:[#allocation2 + $0x504] sm:$0xf]  ;;  %v5121_v37 = vor.u32 %v5841_v30, %v5118_v31  ;;  %v4564_v17 = vld [vmem:[#allocation2 + $0x2c8] sm:$0xf]  ;;  %v4293_v63 = vor.u32 %v5636_v21, %v4292_v51 }
 0x1a0   :  { %2710 = vmatpush.bf16.msrb.mxu1 %v4897_v53  ;;  %v4846_v6 = vld [vmem:[#allocation2 + $0x510] sm:$0xf0]  ;;  %v5805_v13 = vld [vmem:[#allocation2 + $0x604] sm:$0xf]  ;;  %v4721_v52 = vor.u32 %v5741_v33, %v4718_v35  ;;  %v5704_v53 = vld [vmem:[#allocation2 + $0x2d4] sm:$0xf0] }
 0x1a1   :  { %2723 = vmatpush.bf16.msrb.mxu2 %v5025_v46  ;;  %v4974_v38 = vld [vmem:[#allocation2 + $0x610] sm:$0xf0]  ;;  %v5837_v40 = vld [vmem:[#allocation2 + $0x704] sm:$0xf]  ;;  %v4849_v8 = vor.u32 %v5773_v4, %v4846_v6  ;;  %v4692_v46 = vld [vmem:[#allocation2 + $0x3c8] sm:$0xf] }
 0x1a2   :  { %2736 = vmatpush.bf16.msrb.mxu3 %v5153_v42  ;;  %v5102_v9 = vld [vmem:[#allocation2 + $0x710] sm:$0xf0]  ;;  %v4977_v60 = vor.u32 %v5805_v13, %v4974_v38  ;;  %v4565_v42 = vor.u32 %v5704_v53, %v4564_v17  ;;  %v4420_v20 = vld [vmem:[#allocation2 + $0x1a8] sm:$0xf]  ;;  %v4693_v3 = vor.u32 %v5736_v18, %v4692_v46  ;;  %v5668_v22 = vld [vmem:[#allocation2 + $0x1b4] sm:$0xf0] }
 0x1a3   :  { %2698 = vmatpush.bf16.msrb.mxu0 %v4753_v57  ;;  %v5105_v1 = vor.u32 %v5837_v40, %v5102_v9  ;;  %v4548_v57 = vld [vmem:[#allocation2 + $0x2a8] sm:$0xf]  ;;  %v5732_v27 = vld [vmem:[#allocation2 + $0x3b4] sm:$0xf0]  ;;  %v4421_v28 = vor.u32 %v5668_v22, %v4420_v20 }
 0x1a4   :  { %2711 = vmatpush.bf16.msrb.mxu1 %v4881_v43  ;;  %v5700_v43 = vld [vmem:[#allocation2 + $0x2b4] sm:$0xf0]  ;;  %v4276_v58 = vld [vmem:[#allocation2 + $0x88] sm:$0xf] }
 0x1a5   :  { %2724 = vmatpush.bf16.msrb.mxu2 %v5009_v24  ;;  %v4676_v24 = vld [vmem:[#allocation2 + $0x3a8] sm:$0xf]  ;;  %v5632_v44 = vld [vmem:[#allocation2 + $0x94] sm:$0xf0] }
 0x1a6   :  { %2737 = vmatpush.bf16.msrb.mxu3 %v5137_v29  ;;  %v4549_v29 = vor.u32 %v5700_v43, %v4548_v57  ;;  %v4404_v49 = vld [vmem:[#allocation2 + $0x188] sm:$0xf]  ;;  %v4677_v30 = vor.u32 %v5732_v27, %v4676_v24  ;;  %v5664_v31 = vld [vmem:[#allocation2 + $0x194] sm:$0xf0] }
 0x1a7   :  { %2699 = vmatpush.bf16.msrb.mxu0 %v4737_v32  ;;  %v4532_v32 = vld [vmem:[#allocation2 + $0x288] sm:$0xf]  ;;  %v5696_v33 = vld [vmem:[#allocation2 + $0x294] sm:$0xf0]  ;;  %v4405_v4 = vor.u32 %v5664_v31, %v4404_v49 }
 0x1a8   :  { %2712 = vmatpush.bf16.msrb.mxu1 %v4865_v54  ;;  %v4660_v35 = vld [vmem:[#allocation2 + $0x388] sm:$0xf]  ;;  %v5728_v54 = vld [vmem:[#allocation2 + $0x394] sm:$0xf0]  ;;  %v4533_v6 = vor.u32 %v5696_v33, %v4532_v32 }
 0x1a9   :  { %2725 = vmatpush.bf16.msrb.mxu2 %v4993_v36  ;;  %v4277_v36 = vor.u32 %v5632_v44, %v4276_v58  ;;  %v4260_v13 = vld [vmem:[#allocation2 + $0x68] sm:$0xf]  ;;  %v4661_v40 = vor.u32 %v5728_v54, %v4660_v35  ;;  %v5660_v9 = vld [vmem:[#allocation2 + $0x174] sm:$0xf0] }
 0x1aa   :  { %2738 = vmatpush.bf16.msrb.mxu3 %v5121_v37  ;;  %v5628_v37 = vld [vmem:[#allocation2 + $0x74] sm:$0xf0]  ;;  %v4388_v38 = vld [vmem:[#allocation2 + $0x168] sm:$0xf] }
 0x1ab   :  { %2700 = vmatpush.bf16.msrb.mxu0 %v4721_v52  ;;  %v4516_v41 = vld [vmem:[#allocation2 + $0x268] sm:$0xf]  ;;  %v5692_v47 = vld [vmem:[#allocation2 + $0x274] sm:$0xf0]  ;;  %v4261_v23 = vor.u32 %v5628_v37, %v4260_v13  ;;  %v4389_v55 = vor.u32 %v5660_v9, %v4388_v38 }
 0x1ac   :  { %2713 = vmatpush.bf16.msrb.mxu1 %v4849_v8  ;;  %v4644_v10 = vld [vmem:[#allocation2 + $0x368] sm:$0xf]  ;;  %v5724_v52 = vld [vmem:[#allocation2 + $0x374] sm:$0xf0]  ;;  %v4517_v25 = vor.u32 %v5692_v47, %v4516_v41 }
 0x1ad   :  { %2726 = vmatpush.bf16.msrb.mxu2 %v4977_v60  ;;  %v4244_v8 = vld [vmem:[#allocation2 + $0x48] sm:$0xf]  ;;  %v5624_v60 = vld [vmem:[#allocation2 + $0x54] sm:$0xf0]  ;;  %v4645_v62 = vor.u32 %v5724_v52, %v4644_v10 }
 0x1ae   :  { %2739 = vmatpush.bf16.msrb.mxu3 %v5105_v1  ;;  %2701 = vmatmul.bf16.vlgmr.msrb.gmra.mxu0 %v6557_v56  ;;  %v4372_v59 = vld [vmem:[#allocation2 + $0x148] sm:$0xf]  ;;  %v5656_v1 = vld [vmem:[#allocation2 + $0x154] sm:$0xf0]  ;;  %v4245_v45 = vor.u32 %v5624_v60, %v4244_v8 }
 0x1af   :  { %2745 = vmatpush.bf16.msra.mxu0 %v4325_v48  ;;  %2714 = vmatmul.bf16.vlgmr.msrb.gmra.mxu1 %v6559_v0  ;;  %v4500_v48 = vld [vmem:[#allocation2 + $0x248] sm:$0xf]  ;;  %v5720_v11 = vld [vmem:[#allocation2 + $0x354] sm:$0xf0]  ;;  %v4373_v15 = vor.u32 %v5656_v1, %v4372_v59 }
 0x1b0   :  { %2758 = vmatpush.bf16.msra.mxu1 %v4453_v14  ;;  %2727 = vmatmul.bf16.vlgmr.msrb.gmra.mxu2 %v6561_v2  ;;  %v5688_v14 = vld [vmem:[#allocation2 + $0x254] sm:$0xf0]  ;;  %v4228_v50 = vld [vmem:[#allocation2 + $0x28] sm:$0xf] }
 0x1b1   :  { %2771 = vmatpush.bf16.msra.mxu2 %v4581_v7  ;;  %2740 = vmatmul.bf16.vlgmr.msrb.gmra.mxu3 %v6563_v5  ;;  %v4628_v7 = vld [vmem:[#allocation2 + $0x348] sm:$0xf]  ;;  %v5620_v17 = vld [vmem:[#allocation2 + $0x34] sm:$0xf0] }
 0x1b2   :  { %2784 = vmatpush.bf16.msra.mxu3 %v4709_v16  ;;  %v4501_v16 = vor.u32 %v5688_v14, %v4500_v48  ;;  %v4356_v53 = vld [vmem:[#allocation2 + $0x128] sm:$0xf]  ;;  %v4629_v46 = vor.u32 %v5720_v11, %v4628_v7  ;;  %v5652_v18 = vld [vmem:[#allocation2 + $0x134] sm:$0xf0]  ;;  %v4229_v21 = vor.u32 %v5620_v17, %v4228_v50 }
 0x1b3   :  { %2746 = vmatpush.bf16.msra.mxu0 %v4309_v61  ;;  %v4484_v61 = vld [vmem:[#allocation2 + $0x228] sm:$0xf]  ;;  %v5716_v51 = vld [vmem:[#allocation2 + $0x334] sm:$0xf0]  ;;  %v4357_v22 = vor.u32 %v5652_v18, %v4356_v53 }
 0x1b4   :  { %2759 = vmatpush.bf16.msra.mxu1 %v4437_v19  ;;  %v5684_v19 = vld [vmem:[#allocation2 + $0x234] sm:$0xf0]  ;;  %v4212_v20 = vld [vmem:[#allocation2 + $0x8] sm:$0xf] }
 0x1b5   :  { %2772 = vmatpush.bf16.msra.mxu2 %v4565_v42  ;;  %v4612_v42 = vld [vmem:[#allocation2 + $0x328] sm:$0xf]  ;;  %v4485_v57 = vor.u32 %v5684_v19, %v4484_v61  ;;  %v5648_v24 = vld [vmem:[#allocation2 + $0x114] sm:$0xf0] }
 0x1b6   :  { %2785 = vmatpush.bf16.msra.mxu3 %v4693_v3  ;;  %v5616_v3 = vld [vmem:[#allocation2 + $0x14] sm:$0xf0]  ;;  %v4340_v43 = vld [vmem:[#allocation2 + $0x108] sm:$0xf] }
 0x1b7   :  { %2747 = vmatpush.bf16.msra.mxu0 %v4293_v63  ;;  %v4468_v27 = vld [vmem:[#allocation2 + $0x208] sm:$0xf]  ;;  %v4613_v63 = vor.u32 %v5716_v51, %v4612_v42  ;;  %v5712_v58 = vld [vmem:[#allocation2 + $0x314] sm:$0xf0]  ;;  %v4213_v31 = vor.u32 %v5616_v3, %v4212_v20  ;;  %v4341_v54 = vor.u32 %v5648_v24, %v4340_v43 }
 0x1b8   :  { %2760 = vmatpush.bf16.msra.mxu1 %v4421_v28  ;;  %v5680_v28 = vld [vmem:[#allocation2 + $0x214] sm:$0xf0]  ;;  %v4836_v44 = vld [vmem:[#allocation2 + $0x4e8] sm:$0xf] }
 0x1b9   :  { %2773 = vmatpush.bf16.msra.mxu2 %v4549_v29  ;;  %v4596_v29 = vld [vmem:[#allocation2 + $0x308] sm:$0xf]  ;;  %v5772_v49 = vld [vmem:[#allocation2 + $0x4f4] sm:$0xf0] }
 0x1ba   :  { %2786 = vmatpush.bf16.msra.mxu3 %v4677_v30  ;;  %v4964_v30 = vld [vmem:[#allocation2 + $0x5e8] sm:$0xf]  ;;  %v5804_v32 = vld [vmem:[#allocation2 + $0x5f4] sm:$0xf0]  ;;  %v4597_v13 = vor.u32 %v5712_v58, %v4596_v29  ;;  %v4837_v37 = vor.u32 %v5772_v49, %v4836_v44 }
 0x1bb   :  { %2748 = vmatpush.bf16.msra.mxu0 %v4277_v36  ;;  %v5092_v33 = vld [vmem:[#allocation2 + $0x6e8] sm:$0xf]  ;;  %v5836_v35 = vld [vmem:[#allocation2 + $0x6f4] sm:$0xf0]  ;;  %v4469_v36 = vor.u32 %v5680_v28, %v4468_v27  ;;  %v4965_v38 = vor.u32 %v5804_v32, %v4964_v30 }
 0x1bc   :  { %2761 = vmatpush.bf16.msra.mxu1 %v4405_v4  ;;  %v5220_v4 = vld [vmem:[#allocation2 + $0x7e8] sm:$0xf]  ;;  %v5768_v41 = vld [vmem:[#allocation2 + $0x4d4] sm:$0xf0] }
 0x1bd   :  { %2774 = vmatpush.bf16.msra.mxu2 %v4533_v6  ;;  %v5868_v6 = vld [vmem:[#allocation2 + $0x7f4] sm:$0xf0]  ;;  %v4820_v9 = vld [vmem:[#allocation2 + $0x4c8] sm:$0xf] }
 0x1be   :  { %2787 = vmatpush.bf16.msra.mxu3 %v4661_v40  ;;  %v5093_v40 = vor.u32 %v5836_v35, %v5092_v33  ;;  %v4948_v47 = vld [vmem:[#allocation2 + $0x5c8] sm:$0xf]  ;;  %v5221_v10 = vor.u32 %v5868_v6, %v5220_v4  ;;  %v5800_v52 = vld [vmem:[#allocation2 + $0x5d4] sm:$0xf0]  ;;  %v4821_v60 = vor.u32 %v5768_v41, %v4820_v9 }
 0x1bf   :  { %2749 = vmatpush.bf16.msra.mxu0 %v4261_v23  ;;  %v5076_v23 = vld [vmem:[#allocation2 + $0x6c8] sm:$0xf]  ;;  %v5864_v8 = vld [vmem:[#allocation2 + $0x7d4] sm:$0xf0]  ;;  %v4949_v1 = vor.u32 %v5800_v52, %v4948_v47 }
 0x1c0   :  { %2762 = vmatpush.bf16.msra.mxu1 %v4389_v55  ;;  %v5832_v55 = vld [vmem:[#allocation2 + $0x6d4] sm:$0xf0]  ;;  %v4804_v59 = vld [vmem:[#allocation2 + $0x4a8] sm:$0xf] }
 0x1c1   :  { %2775 = vmatpush.bf16.msra.mxu2 %v4517_v25  ;;  %v5204_v25 = vld [vmem:[#allocation2 + $0x7c8] sm:$0xf]  ;;  %v5077_v48 = vor.u32 %v5832_v55, %v5076_v23  ;;  %v5796_v7 = vld [vmem:[#allocation2 + $0x5b4] sm:$0xf0] }
 0x1c2   :  { %2788 = vmatpush.bf16.msra.mxu3 %v4645_v62  ;;  %v5764_v62 = vld [vmem:[#allocation2 + $0x4b4] sm:$0xf0]  ;;  %v4932_v14 = vld [vmem:[#allocation2 + $0x5a8] sm:$0xf] }
 0x1c3   :  { %2750 = vmatpush.bf16.msra.mxu0 %v4245_v45  ;;  %v5060_v11 = vld [vmem:[#allocation2 + $0x6a8] sm:$0xf]  ;;  %v5205_v45 = vor.u32 %v5864_v8, %v5204_v25  ;;  %v5860_v17 = vld [vmem:[#allocation2 + $0x7b4] sm:$0xf0]  ;;  %v4805_v53 = vor.u32 %v5764_v62, %v4804_v59  ;;  %v4933_v18 = vor.u32 %v5796_v7, %v4932_v14 }
 0x1c4   :  { %2763 = vmatpush.bf16.msra.mxu1 %v4373_v15  ;;  %v5828_v15 = vld [vmem:[#allocation2 + $0x6b4] sm:$0xf0]  ;;  %v5188_v50 = vld [vmem:[#allocation2 + $0x7a8] sm:$0xf] }
 0x1c5   :  { %2776 = vmatpush.bf16.msra.mxu2 %v4501_v16  ;;  %v6582_v16 = vld [vmem:[#allocation12] ss:$4 sm:$0xf]  ;;  %v5061_v61 = vor.u32 %v5828_v15, %v5060_v11  ;;  %v5760_v19 = vld [vmem:[#allocation2 + $0x494] sm:$0xf0] }
 0x1c6   :  { %2789 = vmatpush.bf16.msra.mxu3 %v4629_v46  ;;  %v4788_v46 = vld [vmem:[#allocation2 + $0x488] sm:$0xf]  ;;  %v1249_v51 = vperm.slane %v6582_v16, 0  ;;  %v5792_v20 = vld [vmem:[#allocation2 + $0x594] sm:$0xf0] }
 0x1c7   :  { %2751 = vmatpush.bf16.msra.mxu0 %v4229_v21  ;;  %v4916_v42 = vld [vmem:[#allocation2 + $0x588] sm:$0xf]  ;;  %v5189_v21 = vor.u32 %v5860_v17, %v5188_v50  ;;  %v5856_v43 = vld [vmem:[#allocation2 + $0x794] sm:$0xf0]  ;;  %v4789_v24 = vor.u32 %v5760_v19, %v4788_v46 }
 0x1c8   :  { %2764 = vmatpush.bf16.msra.mxu1 %v4357_v22  ;;  %v5044_v3 = vld [vmem:[#allocation2 + $0x688] sm:$0xf]  ;;  %v5824_v22 = vld [vmem:[#allocation2 + $0x694] sm:$0xf0] }
 0x1c9   :  { %2777 = vmatpush.bf16.msra.mxu2 %v4485_v57  ;;  %v5172_v57 = vld [vmem:[#allocation2 + $0x788] sm:$0xf]  ;;  %v5045_v28 = vor.u32 %v5824_v22, %v5044_v3  ;;  %v5756_v58 = vld [vmem:[#allocation2 + $0x474] sm:$0xf0] }
 0x1ca   :  { %2790 = vmatpush.bf16.msra.mxu3 %v4613_v63  ;;  %v4917_v63 = vor.u32 %v5792_v20, %v4916_v42  ;;  %v4772_v29 = vld [vmem:[#allocation2 + $0x468] sm:$0xf]  ;;  %v5788_v32 = vld [vmem:[#allocation2 + $0x574] sm:$0xf0] }
 0x1cb   :  { %2752 = vmatpush.bf16.msra.mxu0 %v4213_v31  ;;  %v2546_v27 = vpop.f32.mrf.mxu0  ;;  %v4900_v44 = vld [vmem:[#allocation2 + $0x568] sm:$0xf]  ;;  %v5173_v31 = vor.u32 %v5856_v43, %v5172_v57  ;;  %v5820_v35 = vld [vmem:[#allocation2 + $0x674] sm:$0xf0]  ;;  %v4773_v6 = vor.u32 %v5756_v58, %v4772_v29  ;;  %v5642_v58 = vld [vmem:[#allocation2 + $0xec] sm:$0xf] }
 0x1cc   :  { %2765 = vmatpush.bf16.msra.mxu1 %v4341_v54  ;;  %v2547_v49 = vadd.f32 %v2546_v27, %v1249_v51  ;;  %v2559_v30 = vpop.f32.mrf.mxu1  ;;  %v5028_v33 = vld [vmem:[#allocation2 + $0x668] sm:$0xf]  ;;  %v5816_v23 = vld [vmem:[#allocation2 + $0x654] sm:$0xf0] }
 0x1cd   :  { %2778 = vmatpush.bf16.msra.mxu2 %v4469_v36  ;;  %v5156_v54 = vld [vmem:[#allocation2 + $0x768] sm:$0xf]  ;;  %v5852_v36 = vld [vmem:[#allocation2 + $0x774] sm:$0xf0] }
 0x1ce   :  { %2791 = vmatpush.bf16.msra.mxu3 %v4597_v13  ;;  %2753 = vmatmul.bf16.vlgmr.msra.gmra.mxu0 %v6549_v12  ;;  %v2560_v4 = vadd.f32 %v2559_v30, %v2547_v49  ;;  %v4901_v13 = vor.u32 %v5788_v32, %v4900_v44  ;;  %v4884_v9 = vld [vmem:[#allocation2 + $0x548] sm:$0xf]  ;;  %v5157_v47 = vor.u32 %v5852_v36, %v5156_v54  ;;  %v5748_v11 = vld [vmem:[#allocation2 + $0x434] sm:$0xf0]  ;;  %v4326_v44 = vld [vmem:[#allocation2 + $0xf8] sm:$0xf0] }
 0x1cf   :  { %2797 = vmatpush.bf16.msrb.mxu0 %v4837_v37  ;;  %2766 = vmatmul.bf16.vlgmr.msra.gmra.mxu1 %v6551_v26  ;;  %v5029_v37 = vor.u32 %v5820_v35, %v5028_v33  ;;  %v5012_v52 = vld [vmem:[#allocation2 + $0x648] sm:$0xf]  ;;  %v5780_v17 = vld [vmem:[#allocation2 + $0x534] sm:$0xf0]  ;;  %v5674_v49 = vld [vmem:[#allocation2 + $0x1ec] sm:$0xf] }
 0x1d0   :  { %2810 = vmatpush.bf16.msrb.mxu1 %v4965_v38  ;;  %2779 = vmatmul.bf16.vlgmr.msra.gmra.mxu2 %v6553_v39  ;;  %v4756_v38 = vld [vmem:[#allocation2 + $0x448] sm:$0xf]  ;;  %v5013_v14 = vor.u32 %v5816_v23, %v5012_v52  ;;  %v5812_v46 = vld [vmem:[#allocation2 + $0x634] sm:$0xf0]  ;;  %v5706_v32 = vld [vmem:[#allocation2 + $0x2ec] sm:$0xf] }
 0x1d1   :  { %2823 = vmatpush.bf16.msrb.mxu2 %v5093_v40  ;;  %2792 = vmatmul.bf16.vlgmr.msra.gmra.mxu3 %v6555_v34  ;;  %v5752_v40 = vld [vmem:[#allocation2 + $0x454] sm:$0xf0]  ;;  %v5140_v8 = vld [vmem:[#allocation2 + $0x748] sm:$0xf]  ;;  %v4582_v33 = vld [vmem:[#allocation2 + $0x2f8] sm:$0xf0] }
 0x1d2   :  { %2836 = vmatpush.bf16.msrb.mxu3 %v5221_v10  ;;  %v5784_v10 = vld [vmem:[#allocation2 + $0x554] sm:$0xf0]  ;;  %v4757_v59 = vor.u32 %v5752_v40, %v4756_v38  ;;  %v4740_v7 = vld [vmem:[#allocation2 + $0x428] sm:$0xf]  ;;  %v5738_v36 = vld [vmem:[#allocation2 + $0x3ec] sm:$0xf]  ;;  %v4585_v38 = vor.u32 %v5706_v32, %v4582_v33 }
 0x1d3   :  { %2798 = vmatpush.bf16.msrb.mxu0 %v4821_v60  ;;  %v2572_v41 = vpop.f32.mrf.mxu2  ;;  %v5848_v60 = vld [vmem:[#allocation2 + $0x754] sm:$0xf0]  ;;  %v4741_v19 = vor.u32 %v5748_v11, %v4740_v7  ;;  %v4724_v42 = vld [vmem:[#allocation2 + $0x408] sm:$0xf]  ;;  %v5638_v40 = vld [vmem:[#allocation2 + $0xcc] sm:$0xf] }
 0x1d4   :  { %2811 = vmatpush.bf16.msrb.mxu1 %v4949_v1  ;;  %v2573_v55 = vadd.f32 %v2572_v41, %v2560_v4  ;;  %v2585_v25 = vpop.f32.mrf.mxu3  ;;  %v2548_v1 = vpop.f32.mrf.mxu0  ;;  %v5141_v50 = vor.u32 %v5848_v60, %v5140_v8  ;;  %v5744_v51 = vld [vmem:[#allocation2 + $0x414] sm:$0xf0]  ;;  %v4852_v3 = vld [vmem:[#allocation2 + $0x508] sm:$0xf]  ;;  %v4710_v4 = vld [vmem:[#allocation2 + $0x3f8] sm:$0xf0] }
 0x1d5   :  { %2824 = vmatpush.bf16.msrb.mxu2 %v5077_v48  ;;  %v4885_v48 = vor.u32 %v5784_v10, %v4884_v9  ;;  %v2561_v15 = vpop.f32.mrf.mxu1  ;;  %v5776_v22 = vld [vmem:[#allocation2 + $0x514] sm:$0xf0]  ;;  %v4980_v57 = vld [vmem:[#allocation2 + $0x608] sm:$0xf]  ;;  %v4725_v30 = vor.u32 %v5744_v51, %v4724_v42  ;;  %v4310_v9 = vld [vmem:[#allocation2 + $0xd8] sm:$0xf0] }
 0x1d6   :  { %2837 = vmatpush.bf16.msrb.mxu3 %v5205_v45  ;;  %v6588_v62 = vadd.f32 %v2585_v25, %v2573_v55  ;;  %v4868_v45 = vld [vmem:[#allocation2 + $0x528] sm:$0xf]  ;;  %v5808_v27 = vld [vmem:[#allocation2 + $0x614] sm:$0xf0]  ;;  %v4853_v35 = vor.u32 %v5776_v22, %v4852_v3  ;;  %v5670_v41 = vld [vmem:[#allocation2 + $0x1cc] sm:$0xf]  ;;  %v4313_v8 = vor.u32 %v5638_v40, %v4310_v9 }
 0x1d7   :  { %2799 = vmatpush.bf16.msrb.mxu0 %v4805_v53  ;;  %v4996_v53 = vld [vmem:[#allocation2 + $0x628] sm:$0xf]  ;;  %v4981_v54 = vor.u32 %v5808_v27, %v4980_v57  ;;  %v4438_v10 = vld [vmem:[#allocation2 + $0x1d8] sm:$0xf0]  ;;  %v5702_v52 = vld [vmem:[#allocation2 + $0x2cc] sm:$0xf] }
 0x1d8   :  { %2812 = vmatpush.bf16.msrb.mxu1 %v4933_v18  ;;  %v5124_v18 = vld [vmem:[#allocation2 + $0x728] sm:$0xf]  ;;  %v4997_v20 = vor.u32 %v5812_v46, %v4996_v53  ;;  %v4566_v23 = vld [vmem:[#allocation2 + $0x2d8] sm:$0xf0]  ;;  %v5734_v55 = vld [vmem:[#allocation2 + $0x3cc] sm:$0xf]  ;;  %v4441_v60 = vor.u32 %v5670_v41, %v4438_v10 }
 0x1d9   :  { %2825 = vmatpush.bf16.msrb.mxu2 %v5061_v61  ;;  %v5844_v61 = vld [vmem:[#allocation2 + $0x734] sm:$0xf0]  ;;  %v4694_v25 = vld [vmem:[#allocation2 + $0x3d8] sm:$0xf0]  ;;  %v5634_v1 = vld [vmem:[#allocation2 + $0xac] sm:$0xf] }
 0x1da   :  { %2838 = vmatpush.bf16.msrb.mxu3 %v5189_v21  ;;  %v4869_v21 = vor.u32 %v5780_v17, %v4868_v45  ;;  %v4697_v7 = vor.u32 %v5734_v55, %v4694_v25  ;;  %v4422_v11 = vld [vmem:[#allocation2 + $0x1b8] sm:$0xf0]  ;;  %v5698_v45 = vld [vmem:[#allocation2 + $0x2ac] sm:$0xf] }
 0x1db   :  { %2800 = vmatpush.bf16.msrb.mxu0 %v4789_v24  ;;  %v2574_v43 = vpop.f32.mrf.mxu2  ;;  %v5125_v24 = vor.u32 %v5844_v61, %v5124_v18  ;;  %v4550_v15 = vld [vmem:[#allocation2 + $0x2b8] sm:$0xf0]  ;;  %v5630_v61 = vld [vmem:[#allocation2 + $0x8c] sm:$0xf] }
 0x1dc   :  { %2813 = vmatpush.bf16.msrb.mxu1 %v4917_v63  ;;  %v5108_v63 = vld [vmem:[#allocation2 + $0x708] sm:$0xf]  ;;  %v2587_v29 = vpop.f32.mrf.mxu3  ;;  %v4678_v17 = vld [vmem:[#allocation2 + $0x3b8] sm:$0xf0]  ;;  %v4553_v18 = vor.u32 %v5698_v45, %v4550_v15  ;;  %v5662_v42 = vld [vmem:[#allocation2 + $0x18c] sm:$0xf] }
 0x1dd   :  { %2826 = vmatpush.bf16.msrb.mxu2 %v5045_v28  ;;  %v5840_v28 = vld [vmem:[#allocation2 + $0x714] sm:$0xf0]  ;;  %v4534_v3 = vld [vmem:[#allocation2 + $0x298] sm:$0xf0]  ;;  %v5726_v22 = vld [vmem:[#allocation2 + $0x38c] sm:$0xf] }
 0x1de   :  { %2839 = vmatpush.bf16.msrb.mxu3 %v5173_v31  ;;  %v4454_v31 = vld [vmem:[#allocation2 + $0x1f8] sm:$0xf0]  ;;  %v5690_v32 = vld [vmem:[#allocation2 + $0x26c] sm:$0xf] }
 0x1df   :  { %2801 = vmatpush.bf16.msrb.mxu0 %v4773_v6  ;;  %v5109_v6 = vor.u32 %v5840_v28, %v5108_v63  ;;  %v4662_v57 = vld [vmem:[#allocation2 + $0x398] sm:$0xf0]  ;;  %v5654_v40 = vld [vmem:[#allocation2 + $0x14c] sm:$0xf] }
 0x1e0   :  { %2814 = vmatpush.bf16.msrb.mxu1 %v4901_v13  ;;  %v4329_v13 = vor.u32 %v5642_v58, %v4326_v44  ;;  %v5626_v58 = vld [vmem:[#allocation2 + $0x6c] sm:$0xf]  ;;  %v4262_v44 = vld [vmem:[#allocation2 + $0x78] sm:$0xf0] }
 0x1e1   :  { %2827 = vmatpush.bf16.msrb.mxu2 %v5029_v37  ;;  %v4457_v37 = vor.u32 %v5674_v49, %v4454_v31  ;;  %v5658_v49 = vld [vmem:[#allocation2 + $0x16c] sm:$0xf]  ;;  %v4390_v31 = vld [vmem:[#allocation2 + $0x178] sm:$0xf0] }
 0x1e2   :  { %2840 = vmatpush.bf16.msrb.mxu3 %v5157_v47  ;;  %v4713_v47 = vor.u32 %v5738_v36, %v4710_v4  ;;  %v4518_v33 = vld [vmem:[#allocation2 + $0x278] sm:$0xf0]  ;;  %v4265_v4 = vor.u32 %v5626_v58, %v4262_v44  ;;  %v5718_v55 = vld [vmem:[#allocation2 + $0x34c] sm:$0xf] }
 0x1e3   :  { %2802 = vmatpush.bf16.msrb.mxu0 %v4757_v59  ;;  %v4569_v59 = vor.u32 %v5702_v52, %v4566_v23  ;;  %v4646_v36 = vld [vmem:[#allocation2 + $0x378] sm:$0xf0]  ;;  %v5686_v52 = vld [vmem:[#allocation2 + $0x24c] sm:$0xf] }
 0x1e4   :  { %2815 = vmatpush.bf16.msrb.mxu1 %v4885_v48  ;;  %v4294_v48 = vld [vmem:[#allocation2 + $0xb8] sm:$0xf0]  ;;  %v5802_v44 = vld [vmem:[#allocation2 + $0x5ec] sm:$0xf] }
 0x1e5   :  { %2828 = vmatpush.bf16.msrb.mxu2 %v5013_v14  ;;  %v5666_v14 = vld [vmem:[#allocation2 + $0x1ac] sm:$0xf]  ;;  %v4297_v53 = vor.u32 %v5634_v1, %v4294_v48  ;;  %v4374_v10 = vld [vmem:[#allocation2 + $0x158] sm:$0xf0] }
 0x1e6   :  { %2841 = vmatpush.bf16.msrb.mxu3 %v5141_v50  ;;  %v5730_v50 = vld [vmem:[#allocation2 + $0x3ac] sm:$0xf]  ;;  %v4425_v46 = vor.u32 %v5666_v14, %v4422_v11  ;;  %v4502_v23 = vld [vmem:[#allocation2 + $0x258] sm:$0xf0]  ;;  %v4377_v1 = vor.u32 %v5654_v40, %v4374_v10 }
 0x1e7   :  { %2803 = vmatpush.bf16.msrb.mxu0 %v4741_v19  ;;  %v4278_v19 = vld [vmem:[#allocation2 + $0x98] sm:$0xf0]  ;;  %v4681_v51 = vor.u32 %v5730_v50, %v4678_v17  ;;  %v4505_v48 = vor.u32 %v5686_v52, %v4502_v23  ;;  %v5618_v14 = vld [vmem:[#allocation2 + $0x2c] sm:$0xf] }
 0x1e8   :  { %2816 = vmatpush.bf16.msrb.mxu1 %v4869_v21  ;;  %v4406_v21 = vld [vmem:[#allocation2 + $0x198] sm:$0xf0]  ;;  %v4281_v43 = vor.u32 %v5630_v61, %v4278_v19  ;;  %v5650_v11 = vld [vmem:[#allocation2 + $0x12c] sm:$0xf] }
 0x1e9   :  { %2829 = vmatpush.bf16.msrb.mxu2 %v4997_v20  ;;  %v5694_v20 = vld [vmem:[#allocation2 + $0x28c] sm:$0xf]  ;;  %v4409_v27 = vor.u32 %v5662_v42, %v4406_v21  ;;  %v4630_v25 = vld [vmem:[#allocation2 + $0x358] sm:$0xf0] }
 0x1ea   :  { %2842 = vmatpush.bf16.msrb.mxu3 %v5125_v24  ;;  %v4537_v63 = vor.u32 %v5694_v20, %v4534_v3  ;;  %v4633_v15 = vor.u32 %v5718_v55, %v4630_v25  ;;  %v4358_v50 = vld [vmem:[#allocation2 + $0x138] sm:$0xf0]  ;;  %v5682_v17 = vld [vmem:[#allocation2 + $0x22c] sm:$0xf] }
 0x1eb   :  { %2804 = vmatpush.bf16.msrb.mxu0 %v4725_v30  ;;  %v2598_v24 = vpop.f32.mrf.mxu0  ;;  %v4665_v30 = vor.u32 %v5726_v22, %v4662_v57  ;;  %v5614_v19 = vld [vmem:[#allocation2 + $0xc] sm:$0xf]  ;;  %v4214_v42 = vld [vmem:[#allocation2 + $0x18] sm:$0xf0] }
 0x1ec   :  { %2817 = vmatpush.bf16.msrb.mxu1 %v4853_v35  ;;  %v2599_v28 = vadd.f32 %v2598_v24, %v6588_v62  ;;  %v2611_v29 = vpop.f32.mrf.mxu1  ;;  %v5622_v62 = vld [vmem:[#allocation2 + $0x4c] sm:$0xf]  ;;  %v4342_v3 = vld [vmem:[#allocation2 + $0x118] sm:$0xf0] }
 0x1ed   :  { %2830 = vmatpush.bf16.msrb.mxu2 %v4981_v54  ;;  %v5722_v54 = vld [vmem:[#allocation2 + $0x36c] sm:$0xf]  ;;  %v4470_v24 = vld [vmem:[#allocation2 + $0x218] sm:$0xf0] }
 0x1ee   :  { %2843 = vmatpush.bf16.msrb.mxu3 %v5109_v6  ;;  %2805 = vmatmul.bf16.vlgmr.msrb.gmra.mxu0 %v6557_v56  ;;  %v2612_v35 = vadd.f32 %v2611_v29, %v2599_v28  ;;  %v4393_v6 = vor.u32 %v5658_v49, %v4390_v31  ;;  %v4649_v9 = vor.u32 %v5722_v54, %v4646_v36  ;;  %v5646_v20 = vld [vmem:[#allocation2 + $0x10c] sm:$0xf]  ;;  %v4838_v58 = vld [vmem:[#allocation2 + $0x4f8] sm:$0xf0] }
 0x1ef   :  { %2849 = vmatpush.bf16.msra.mxu0 %v4329_v13  ;;  %2818 = vmatmul.bf16.vlgmr.msrb.gmra.mxu1 %v6559_v0  ;;  %v4521_v13 = vor.u32 %v5690_v32, %v4518_v33  ;;  %v5678_v22 = vld [vmem:[#allocation2 + $0x20c] sm:$0xf]  ;;  %v4217_v49 = vor.u32 %v5614_v19, %v4214_v42  ;;  %v5094_v32 = vld [vmem:[#allocation2 + $0x6f8] sm:$0xf0]  ;;  %v4345_v33 = vor.u32 %v5646_v20, %v4342_v3 }
 0x1f0   :  { %2862 = vmatpush.bf16.msra.mxu1 %v4457_v37  ;;  %2831 = vmatmul.bf16.vlgmr.msrb.gmra.mxu2 %v6561_v2  ;;  %v5770_v29 = vld [vmem:[#allocation2 + $0x4ec] sm:$0xf]  ;;  %v5222_v36 = vld [vmem:[#allocation2 + $0x7f8] sm:$0xf0] }
 0x1f1   :  { %2875 = vmatpush.bf16.msra.mxu2 %v4585_v38  ;;  %2844 = vmatmul.bf16.vlgmr.msrb.gmra.mxu3 %v6563_v5  ;;  %v4246_v38 = vld [vmem:[#allocation2 + $0x58] sm:$0xf0]  ;;  %v5834_v31 = vld [vmem:[#allocation2 + $0x6ec] sm:$0xf] }
 0x1f2   :  { %2888 = vmatpush.bf16.msra.mxu3 %v4713_v47  ;;  %v5866_v54 = vld [vmem:[#allocation2 + $0x7ec] sm:$0xf]  ;;  %v5078_v52 = vld [vmem:[#allocation2 + $0x6d8] sm:$0xf0] }
 0x1f3   :  { %2850 = vmatpush.bf16.msra.mxu0 %v4313_v8  ;;  %v2624_v37 = vpop.f32.mrf.mxu2  ;;  %v5798_v40 = vld [vmem:[#allocation2 + $0x5cc] sm:$0xf]  ;;  %v5206_v55 = vld [vmem:[#allocation2 + $0x7d8] sm:$0xf0] }
 0x1f4   :  { %2863 = vmatpush.bf16.msra.mxu1 %v4441_v60  ;;  %v2625_v41 = vadd.f32 %v2624_v37, %v2612_v35  ;;  %v2637_v47 = vpop.f32.mrf.mxu3  ;;  %v4249_v60 = vor.u32 %v5622_v62, %v4246_v38  ;;  %v2613_v45 = vpop.f32.mrf.mxu1  ;;  %v4473_v35 = vor.u32 %v5678_v22, %v4470_v24  ;;  %v5097_v62 = vor.u32 %v5834_v31, %v5094_v32  ;;  %v4822_v38 = vld [vmem:[#allocation2 + $0x4d8] sm:$0xf0]  ;;  %v5830_v10 = vld [vmem:[#allocation2 + $0x6cc] sm:$0xf] }
 0x1f5   :  { %2876 = vmatpush.bf16.msra.mxu2 %v4569_v59  ;;  %v2600_v59 = vpop.f32.mrf.mxu0  ;;  %v5862_v23 = vld [vmem:[#allocation2 + $0x7cc] sm:$0xf]  ;;  %v4790_v19 = vld [vmem:[#allocation2 + $0x498] sm:$0xf0] }
 0x1f6   :  { %2889 = vmatpush.bf16.msra.mxu3 %v4697_v7  ;;  %v2638_v8 = vadd.f32 %v2637_v47, %v2625_v41  ;;  %v4230_v7 = vld [vmem:[#allocation2 + $0x38] sm:$0xf0]  ;;  %v5225_v47 = vor.u32 %v5866_v54, %v5222_v36  ;;  %v5826_v45 = vld [vmem:[#allocation2 + $0x6ac] sm:$0xf] }
 0x1f7   :  { %2851 = vmatpush.bf16.msra.mxu0 %v4297_v53  ;;  %v4486_v53 = vld [vmem:[#allocation2 + $0x238] sm:$0xf0]  ;;  %v4233_v61 = vor.u32 %v5618_v14, %v4230_v7  ;;  %v5794_v14 = vld [vmem:[#allocation2 + $0x5ac] sm:$0xf] }
 0x1f8   :  { %2864 = vmatpush.bf16.msra.mxu1 %v4425_v46  ;;  %v5714_v46 = vld [vmem:[#allocation2 + $0x32c] sm:$0xf]  ;;  %v4489_v21 = vor.u32 %v5682_v17, %v4486_v53  ;;  %v6595_v41 = vmax.f32 %v2638_v8, 0.0  ;;  %v4934_v8 = vld [vmem:[#allocation2 + $0x5b8] sm:$0xf0] }
 0x1f9   :  { %2877 = vmatpush.bf16.msra.mxu2 %v4553_v18  ;;  %v4614_v18 = vld [vmem:[#allocation2 + $0x338] sm:$0xf0]  ;;  %v5790_v42 = vld [vmem:[#allocation2 + $0x58c] sm:$0xf] }
 0x1fa   :  { %2890 = vmatpush.bf16.msra.mxu3 %v4681_v51  ;;  %v4361_v51 = vor.u32 %v5650_v11, %v4358_v50  ;;  %v2957_v7 = vrot.slane %v6595_v41, 4  ;;  %v5209_v11 = vor.u32 %v5862_v23, %v5206_v55  ;;  %v5858_v50 = vld [vmem:[#allocation2 + $0x7ac] sm:$0xf]  ;;  %v5190_v17 = vld [vmem:[#allocation2 + $0x7b8] sm:$0xf0] }
 0x1fb   :  { %2852 = vmatpush.bf16.msra.mxu0 %v4281_v43  ;;  %v2626_v57 = vpop.f32.mrf.mxu2  ;;  %v4617_v43 = vor.u32 %v5714_v46, %v4614_v18  ;;  %v5758_v46 = vld [vmem:[#allocation2 + $0x48c] sm:$0xf]  ;;  %v4937_v18 = vor.u32 %v5794_v14, %v4934_v8  ;;  %v5174_v22 = vld [vmem:[#allocation2 + $0x798] sm:$0xf0] }
 0x1fc   :  { %2865 = vmatpush.bf16.msra.mxu1 %v4409_v27  ;;  %v5710_v27 = vld [vmem:[#allocation2 + $0x30c] sm:$0xf]  ;;  %v2639_v28 = vpop.f32.mrf.mxu3  ;;  %v5030_v32 = vld [vmem:[#allocation2 + $0x678] sm:$0xf0] }
 0x1fd   :  { %2878 = vmatpush.bf16.msra.mxu2 %v4537_v63  ;;  %v4598_v63 = vld [vmem:[#allocation2 + $0x318] sm:$0xf0]  ;;  %v5822_v20 = vld [vmem:[#allocation2 + $0x68c] sm:$0xf] }
 0x1fe   :  { %2891 = vmatpush.bf16.msra.mxu3 %v4665_v30  ;;  %v4966_v30 = vld [vmem:[#allocation2 + $0x5f8] sm:$0xf0]  ;;  %v5854_v3 = vld [vmem:[#allocation2 + $0x78c] sm:$0xf] }
 0x1ff   :  { %2853 = vmatpush.bf16.msra.mxu0 %v4265_v4  ;;  %v4601_v4 = vor.u32 %v5710_v27, %v4598_v63  ;;  %v4969_v37 = vor.u32 %v5802_v44, %v4966_v30  ;;  %v5754_v57 = vld [vmem:[#allocation2 + $0x46c] sm:$0xf]  ;;  %v4774_v63 = vld [vmem:[#allocation2 + $0x478] sm:$0xf0]  ;;  %v5177_v30 = vor.u32 %v5854_v3, %v5174_v22 }
 0x200   :  { %2866 = vmatpush.bf16.msra.mxu1 %v4393_v6  ;;  %v4841_v6 = vor.u32 %v5770_v29, %v4838_v58  ;;  %v5786_v28 = vld [vmem:[#allocation2 + $0x56c] sm:$0xf]  ;;  %v4902_v29 = vld [vmem:[#allocation2 + $0x578] sm:$0xf0]  ;;  %v4777_v36 = vor.u32 %v5754_v57, %v4774_v63 }
 0x201   :  { %2879 = vmatpush.bf16.msra.mxu2 %v4521_v13  ;;  %v5766_v13 = vld [vmem:[#allocation2 + $0x4cc] sm:$0xf]  ;;  %v5110_v63 = vld [vmem:[#allocation2 + $0x718] sm:$0xf0] }
 0x202   :  { %2892 = vmatpush.bf16.msra.mxu3 %v4649_v9  ;;  %v4950_v9 = vld [vmem:[#allocation2 + $0x5d8] sm:$0xf0]  ;;  %v4825_v25 = vor.u32 %v5766_v13, %v4822_v38  ;;  %v5818_v31 = vld [vmem:[#allocation2 + $0x66c] sm:$0xf] }
 0x203   :  { %2854 = vmatpush.bf16.msra.mxu0 %v4249_v60  ;;  %v5762_v60 = vld [vmem:[#allocation2 + $0x4ac] sm:$0xf]  ;;  %v4953_v59 = vor.u32 %v5798_v40, %v4950_v9 }
 0x204   :  { %2867 = vmatpush.bf16.msra.mxu1 %v4377_v1  ;;  %v5081_v1 = vor.u32 %v5830_v10, %v5078_v52  ;;  %v5750_v13 = vld [vmem:[#allocation2 + $0x44c] sm:$0xf]  ;;  %v5014_v52 = vld [vmem:[#allocation2 + $0x658] sm:$0xf0] }
 0x205   :  { %2880 = vmatpush.bf16.msra.mxu2 %v4505_v48  ;;  %v4806_v48 = vld [vmem:[#allocation2 + $0x4b8] sm:$0xf0]  ;;  %v5814_v10 = vld [vmem:[#allocation2 + $0x64c] sm:$0xf] }
 0x206   :  { %2893 = vmatpush.bf16.msra.mxu3 %v4633_v15  ;;  %v5062_v15 = vld [vmem:[#allocation2 + $0x6b8] sm:$0xf0]  ;;  %v4809_v53 = vor.u32 %v5762_v60, %v4806_v48  ;;  %v5806_v57 = vld [vmem:[#allocation2 + $0x60c] sm:$0xf] }
 0x207   :  { %2855 = vmatpush.bf16.msra.mxu0 %v4233_v61  ;;  %v5065_v61 = vor.u32 %v5826_v45, %v5062_v15  ;;  %v5142_v60 = vld [vmem:[#allocation2 + $0x758] sm:$0xf0]  ;;  %v5778_v45 = vld [vmem:[#allocation2 + $0x52c] sm:$0xf] }
 0x208   :  { %2868 = vmatpush.bf16.msra.mxu1 %v4361_v51  ;;  %v2958_v51 = vadd.f32 %v2957_v7, %v6595_v41  ;;  %v5017_v7 = vor.u32 %v5814_v10, %v5014_v52  ;;  %v4870_v15 = vld [vmem:[#allocation2 + $0x538] sm:$0xf0] }
 0x209   :  { %2881 = vmatpush.bf16.msra.mxu2 %v4489_v21  ;;  %v5193_v21 = vor.u32 %v5858_v50, %v5190_v17 }
 0x20a   :  { %2894 = vmatpush.bf16.msra.mxu3 %v4617_v43 }
 0x20b   :  { %2856 = vmatpush.bf16.msra.mxu0 %v4217_v49  ;;  %v2650_v43 = vpop.f32.mrf.mxu0  ;;  %v2959_v49 = vrot.slane %v2958_v51, 2 }
 0x20c   :  { %2869 = vmatpush.bf16.msra.mxu1 %v4345_v33  ;;  %v2663_v44 = vpop.f32.mrf.mxu1  ;;  %v5850_v33 = vld [vmem:[#allocation2 + $0x76c] sm:$0xf] }
 0x20d   :  { %2882 = vmatpush.bf16.msra.mxu2 %v4473_v35  ;;  %v5158_v35 = vld [vmem:[#allocation2 + $0x778] sm:$0xf0]  ;;  %v2960_v40 = vadd.f32 %v2959_v49, %v2958_v51 }
 0x20e   :  { %2895 = vmatpush.bf16.msra.mxu3 %v4601_v4  ;;  %2857 = vmatmul.bf16.vlgmr.msra.gmra.mxu0 %v6549_v12  ;;  %v4918_v12 = vld [vmem:[#allocation2 + $0x598] sm:$0xf0]  ;;  %v4905_v4 = vor.u32 %v5786_v28, %v4902_v29  ;;  %v5161_v9 = vor.u32 %v5850_v33, %v5158_v35 }
 0x20f   :  { %2901 = vmatpush.bf16.msrb.mxu0 %v4841_v6  ;;  %2870 = vmatmul.bf16.vlgmr.msra.gmra.mxu1 %v6551_v26  ;;  %v4793_v26 = vor.u32 %v5758_v46, %v4790_v19  ;;  %v4921_v24 = vor.u32 %v5790_v42, %v4918_v12  ;;  %v5033_v6 = vor.u32 %v5818_v31, %v5030_v32  ;;  %v2961_v17 = vrot.slane %v2960_v40, 1  ;;  %v5810_v46 = vld [vmem:[#allocation2 + $0x62c] sm:$0xf]  ;;  %v5126_v19 = vld [vmem:[#allocation2 + $0x738] sm:$0xf0] }
 0x210   :  { %2914 = vmatpush.bf16.msrb.mxu1 %v4969_v37  ;;  %2883 = vmatmul.bf16.vlgmr.msra.gmra.mxu2 %v6553_v39  ;;  %v1250_v39 = vperm.slane %v6582_v16, 1  ;;  %v4758_v37 = vld [vmem:[#allocation2 + $0x458] sm:$0xf0] }
 0x211   :  { %2927 = vmatpush.bf16.msrb.mxu2 %v5097_v62  ;;  %2896 = vmatmul.bf16.vlgmr.msra.gmra.mxu3 %v6555_v34  ;;  %v5046_v34 = vld [vmem:[#allocation2 + $0x698] sm:$0xf0]  ;;  %v5782_v62 = vld [vmem:[#allocation2 + $0x54c] sm:$0xf]  ;;  %v2962_v3 = vadd.f32 %v2961_v17, %v2960_v40 }
 0x212   :  { %2940 = vmatpush.bf16.msrb.mxu3 %v5225_v47  ;;  %v5049_v27 = vor.u32 %v5822_v20, %v5046_v34  ;;  %v2651_v58 = vadd.f32 %v2650_v43, %v1250_v39  ;;  %v4886_v47 = vld [vmem:[#allocation2 + $0x558] sm:$0xf0]  ;;  %v4873_v39 = vor.u32 %v5778_v45, %v4870_v15  ;;  %v5774_v20 = vld [vmem:[#allocation2 + $0x50c] sm:$0xf] }
 0x213   :  { %2902 = vmatpush.bf16.msrb.mxu0 %v4825_v25  ;;  %v2676_v38 = vpop.f32.mrf.mxu2  ;;  %v5846_v25 = vld [vmem:[#allocation2 + $0x74c] sm:$0xf]  ;;  %v2652_v14 = vpop.f32.mrf.mxu0  ;;  %v4889_v8 = vor.u32 %v5782_v62, %v4886_v47  ;;  %v4726_v12 = vld [vmem:[#allocation2 + $0x418] sm:$0xf0] }
 0x214   :  { %2915 = vmatpush.bf16.msrb.mxu1 %v4953_v59  ;;  %v2664_v54 = vadd.f32 %v2663_v44, %v2651_v58  ;;  %v2689_v55 = vpop.f32.mrf.mxu3  ;;  %v4761_v59 = vor.u32 %v5750_v13, %v4758_v37  ;;  %v2665_v50 = vpop.f32.mrf.mxu1  ;;  %v4982_v43 = vld [vmem:[#allocation2 + $0x618] sm:$0xf0]  ;;  %v6604_v44 = vmul.f32 0.125, %v2962_v3 }
 0x215   :  { %2928 = vmatpush.bf16.msrb.mxu2 %v5081_v1  ;;  %v5746_v1 = vld [vmem:[#allocation2 + $0x42c] sm:$0xf]  ;;  %v4985_v58 = vor.u32 %v5806_v57, %v4982_v43 }
 0x216   :  { %2941 = vmatpush.bf16.msrb.mxu3 %v5209_v11  ;;  %v2677_v23 = vadd.f32 %v2676_v38, %v2664_v54  ;;  %v4742_v11 = vld [vmem:[#allocation2 + $0x438] sm:$0xf0] }
 0x217   :  { %2903 = vmatpush.bf16.msrb.mxu0 %v4809_v53  ;;  %v5145_v53 = vor.u32 %v5846_v25, %v5142_v60  ;;  %v4745_v42 = vor.u32 %v5746_v1, %v4742_v11 }
 0x218   :  { %2916 = vmatpush.bf16.msrb.mxu1 %v4937_v18  ;;  %v2690_v48 = vadd.f32 %v2689_v55, %v2677_v23  ;;  %v4998_v18 = vld [vmem:[#allocation2 + $0x638] sm:$0xf0] }
 0x219   :  { %2929 = vmatpush.bf16.msrb.mxu2 %v5065_v61  ;;  %v5842_v61 = vld [vmem:[#allocation2 + $0x72c] sm:$0xf]  ;;  %v5001_v51 = vor.u32 %v5810_v46, %v4998_v18 }
 0x21a   :  { %2942 = vmatpush.bf16.msrb.mxu3 %v5193_v21  ;;  %v5742_v21 = vld [vmem:[#allocation2 + $0x40c] sm:$0xf]  ;;  %v5129_v22 = vor.u32 %v5842_v61, %v5126_v19 }
 0x21b   :  { %2904 = vmatpush.bf16.msrb.mxu0 %v4793_v26  ;;  %v2678_v34 = vpop.f32.mrf.mxu2  ;;  %v4854_v26 = vld [vmem:[#allocation2 + $0x518] sm:$0xf0]  ;;  %v4729_v28 = vor.u32 %v5742_v21, %v4726_v12 }
 0x21c   :  { %2917 = vmatpush.bf16.msrb.mxu1 %v4921_v24  ;;  %v2691_v24 = vpop.f32.mrf.mxu3  ;;  %v4857_v29 = vor.u32 %v5774_v20, %v4854_v26 }
 0x21d   :  { %2930 = vmatpush.bf16.msrb.mxu2 %v5049_v27  ;;  %v5838_v27 = vld [vmem:[#allocation2 + $0x70c] sm:$0xf] }
 0x21e   :  { %2943 = vmatpush.bf16.msrb.mxu3 %v5177_v30  ;;  %v5113_v49 = vor.u32 %v5838_v27, %v5110_v63  ;;  %v2985_v30 = vsub.f32 %v6595_v41, %v6604_v44 }
 0x21f   :  { %2905 = vmatpush.bf16.msrb.mxu0 %v4777_v36 }
 0x220   :  { %2918 = vmatpush.bf16.msrb.mxu1 %v4905_v4  ;;  %v2989_v31 = vmul.f32 %v2985_v30, %v2985_v30  ;;  %v6618_v30 = vld [vmem:[#allocation12 + $0x1] ss:$4 sm:$0xf] }
 0x221   :  { %2931 = vmatpush.bf16.msrb.mxu2 %v5033_v6 }
 0x222   :  { %2944 = vmatpush.bf16.msrb.mxu3 %v5161_v9  ;;  %v2993_v32 = vrot.slane %v2989_v31, 4 }
 0x223   :  { %2906 = vmatpush.bf16.msrb.mxu0 %v4761_v59 }
 0x224   :  { %2919 = vmatpush.bf16.msrb.mxu1 %v4889_v8  ;;  %v2994_v4 = vadd.f32 %v2993_v32, %v2989_v31  ;;  %v1251_v8 = vperm.slane %v6582_v16, 2 }
 0x225   :  { %2932 = vmatpush.bf16.msrb.mxu2 %v5017_v7 }
 0x226   :  { %2945 = vmatpush.bf16.msrb.mxu3 %v5145_v53  ;;  %v2995_v62 = vrot.slane %v2994_v4, 2 }
 0x227   :  { %2907 = vmatpush.bf16.msrb.mxu0 %v4745_v42 }
 0x228   :  { %2920 = vmatpush.bf16.msrb.mxu1 %v4873_v39 }
 0x229   :  { %2933 = vmatpush.bf16.msrb.mxu2 %v5001_v51 }
 0x22a   :  { %2946 = vmatpush.bf16.msrb.mxu3 %v5129_v22 }
 0x22b   :  { %2908 = vmatpush.bf16.msrb.mxu0 %v4729_v28  ;;  %v2702_v33 = vpop.f32.mrf.mxu0 }
 0x22c   :  { %2921 = vmatpush.bf16.msrb.mxu1 %v4857_v29  ;;  %v2703_v35 = vadd.f32 %v2702_v33, %v2690_v48  ;;  %v2715_v54 = vpop.f32.mrf.mxu1  ;;  %v3068_v33 = vperm.slane %v6618_v30, 0 }
 0x22d   :  { %2934 = vmatpush.bf16.msrb.mxu2 %v4985_v58 }
 0x22e   :  { %2947 = vmatpush.bf16.msrb.mxu3 %v5113_v49  ;;  %2909 = vmatmul.bf16.vlgmr.msrb.gmra.mxu0 %v6557_v56  ;;  %v2716_v36 = vadd.f32 %v2715_v54, %v2703_v35  ;;  %v3069_v35 = vperm.slane %v6618_v30, 1 }
 0x22f   :  { %2922 = vmatmul.bf16.vlgmr.msrb.gmra.mxu1 %v6559_v0  ;;  %v2996_v0 = vadd.f32 %v2995_v62, %v2994_v4 }
 0x230   :  { %2935 = vmatmul.bf16.vlgmr.msrb.gmra.mxu2 %v6561_v2 }
 0x231   :  { %2948 = vmatmul.bf16.vlgmr.msrb.gmra.mxu3 %v6563_v5  ;;  %v2997_v52 = vrot.slane %v2996_v0, 1 }
 0x233   :  { %v2728_v6 = vpop.f32.mrf.mxu2  ;;  %v2704_v40 = vpop.f32.mrf.mxu0  ;;  %v2998_v25 = vadd.f32 %v2997_v52, %v2996_v0 }
 0x234   :  { %v2729_v13 = vadd.f32 %v2728_v6, %v2716_v36  ;;  %v2741_v37 = vpop.f32.mrf.mxu3  ;;  %v2717_v56 = vpop.f32.mrf.mxu1 }
 0x235   :  { %v3017_v1 = vmul.f32 0.125, %v2998_v25 }
 0x236   :  { %v2742_v38 = vadd.f32 %v2741_v37, %v2729_v13 }
 0x237   :  { %v3021_v7 = vadd.f32 1e-05, %v3017_v1 }
 0x238   :  { %v6612_v9 = vmax.f32 %v2742_v38, 0.0 }
 0x239   :  { %5976 = vrsqrt.f32 %v3021_v7  ;;  %vm3031_vm0 = vweird.f32 %v3021_v7 }
 0x23a   :  { %v2963_v2 = vrot.slane %v6612_v9, 4 }
 0x23b   :  { %v2730_v5 = vpop.f32.mrf.mxu2 }
 0x23c   :  { %v2964_v47 = vadd.f32 %v2963_v2, %v6612_v9  ;;  %v2743_v10 = vpop.f32.mrf.mxu3 }
 0x23e   :  { %v2965_v23 = vrot.slane %v2964_v47, 2 }
 0x23f   :  { %v5977_v51 = vpop.eup %5976 }
 0x240   :  { %v2966_v55 = vadd.f32 %v2965_v23, %v2964_v47  ;;  %v3026_v3 = vmul.f32 %v5977_v51, %v3021_v7  ;;  %vm3032_vm15 = vweird.f32 %v5977_v51 }
 0x241   :  { %vm3033_vm2 = vmor %vm3031_vm0, %vm3032_vm15 }
 0x242   :  { %v2967_v60 = vrot.slane %v2966_v55, 1  ;;  %v3027_v24 = vmul.f32 %v5977_v51, %v3026_v3 }
 0x244   :  { %v2968_v59 = vadd.f32 %v2967_v60, %v2966_v55  ;;  %v3028_v27 = vmul.f32 0.5, %v3027_v24 }
 0x246   :  { %v2982_v48 = vmul.f32 0.125, %v2968_v59  ;;  %v3029_v28 = vsub.f32 1.5, %v3028_v27 }
 0x248   :  { %v2986_v14 = vsub.f32 %v6612_v9, %v2982_v48  ;;  %v3030_v49 = vmul.f32 %v5977_v51, %v3029_v28 }
 0x24a   :  { %v2990_v11 = vmul.f32 %v2986_v14, %v2986_v14  ;;  %v3034_v36 = vsel %vm3033_vm2, %v5977_v51, %v3030_v49 }
 0x24b   :  { %v2754_v15 = vpop.f32.mrf.mxu0  ;;  %v6622_v62 = vmul.f32 %v3068_v33, %v3034_v36 }
 0x24c   :  { %v2999_v45 = vrot.slane %v2990_v11, 4  ;;  %v2755_v50 = vadd.f32 %v2754_v15, %v1251_v8  ;;  %v2767_v17 = vpop.f32.mrf.mxu1 }
 0x24d   :  { %v3082_v5 = vmul.f32 %v6622_v62, %v6604_v44 }
 0x24e   :  { %v3000_v53 = vadd.f32 %v2999_v45, %v2990_v11  ;;  %v2768_v46 = vadd.f32 %v2767_v17, %v2755_v50 }
 0x250   :  { %v3001_v18 = vrot.slane %v3000_v53, 2 }
 0x252   :  { %v3002_v19 = vadd.f32 %v3001_v18, %v3000_v53  ;;  %v5984_v18 = vld [vmem:[#allocation12] ss:$4 sm:$0xf] }
 0x253   :  { %v2780_v61 = vpop.f32.mrf.mxu2  ;;  %v2756_v20 = vpop.f32.mrf.mxu0 }
 0x254   :  { %v2781_v42 = vadd.f32 %v2780_v61, %v2768_v46  ;;  %v2793_v39 = vpop.f32.mrf.mxu3  ;;  %v3003_v21 = vrot.slane %v3002_v19, 1  ;;  %v2769_v34 = vpop.f32.mrf.mxu1  ;;  %v1252_v61 = vperm.slane %v5984_v18, 3 }
 0x256   :  { %v2794_v12 = vadd.f32 %v2793_v39, %v2781_v42  ;;  %v3004_v16 = vadd.f32 %v3003_v21, %v3002_v19 }
 0x258   :  { %v3018_v22 = vmul.f32 0.125, %v3004_v16 }
 0x25a   :  { %v3022_v57 = vadd.f32 1e-05, %v3018_v22 }
 0x25b   :  { %v2782_v26 = vpop.f32.mrf.mxu2 }
 0x25c   :  { %v2795_v43 = vpop.f32.mrf.mxu3  ;;  %5978 = vrsqrt.f32 %v3022_v57  ;;  %vm3041_vm3 = vweird.f32 %v3022_v57 }
 0x262   :  { %v5979_v63 = vpop.eup %5978 }
 0x263   :  { %v3036_v29 = vmul.f32 %v5979_v63, %v3022_v57  ;;  %vm3042_vm1 = vweird.f32 %v5979_v63 }
 0x264   :  { %vm3043_vm4 = vmor %vm3041_vm3, %vm3042_vm1 }
 0x265   :  { %v3037_v58 = vmul.f32 %v5979_v63, %v3036_v29 }
 0x267   :  { %v3038_v31 = vmul.f32 0.5, %v3037_v58 }
 0x269   :  { %v3039_v32 = vsub.f32 1.5, %v3038_v31 }
 0x26b   :  { %v2806_v54 = vpop.f32.mrf.mxu0  ;;  %v3040_v4 = vmul.f32 %v5979_v63, %v3039_v32 }
 0x26c   :  { %v2807_v6 = vadd.f32 %v2806_v54, %v2794_v12  ;;  %v2819_v13 = vpop.f32.mrf.mxu1 }
 0x26d   :  { %v3044_v37 = vsel %vm3043_vm4, %v5979_v63, %v3040_v4 }
 0x26e   :  { %v6624_v38 = vmul.f32 %v3069_v35, %v3044_v37  ;;  %v2820_v40 = vadd.f32 %v2819_v13, %v2807_v6 }
 0x270   :  { %v3083_v0 = vmul.f32 %v6624_v38, %v2982_v48 }
 0x272   :  { %v3090_v47 = vrot.slane %v3083_v0, 7 }
 0x273   :  { %v2832_v56 = vpop.f32.mrf.mxu2  ;;  %v2808_v52 = vpop.f32.mrf.mxu0 }
 0x274   :  { %v2845_v2 = vpop.f32.mrf.mxu3  ;;  %v2833_v10 = vadd.f32 %v2832_v56, %v2820_v40  ;;  %v2821_v23 = vpop.f32.mrf.mxu1  ;;  %v6630_v55 = vsel %vm922_vm8, %v3082_v5, %v3090_v47 }
 0x276   :  { %v2846_v25 = vadd.f32 %v2845_v2, %v2833_v10 }
 0x278   :  { %v6632_v1 = vmax.f32 %v2846_v25, 0.0 }
 0x27a   :  { %v2969_v14 = vrot.slane %v6632_v1, 4 }
 0x27b   :  { %v2834_v60 = vpop.f32.mrf.mxu2 }
 0x27c   :  { %v2847_v59 = vpop.f32.mrf.mxu3  ;;  %v2970_v48 = vadd.f32 %v2969_v14, %v6632_v1 }
 0x27e   :  { %v2971_v8 = vrot.slane %v2970_v48, 2 }
 0x280   :  { %v2972_v44 = vadd.f32 %v2971_v8, %v2970_v48 }
 0x282   :  { %v2973_v15 = vrot.slane %v2972_v44, 1 }
 0x284   :  { %v2974_v46 = vadd.f32 %v2973_v15, %v2972_v44 }
 0x286   :  { %v6636_v42 = vmul.f32 0.125, %v2974_v46 }
 0x288   :  { %v2987_v21 = vsub.f32 %v6632_v1, %v6636_v42 }
 0x28a   :  { %v2991_v20 = vmul.f32 %v2987_v21, %v2987_v21 }
 0x28b   :  { %v2858_v7 = vpop.f32.mrf.mxu0 }
 0x28c   :  { %v2871_v11 = vpop.f32.mrf.mxu1  ;;  %v2859_v51 = vadd.f32 %v2858_v7, %v1252_v61  ;;  %v3005_v16 = vrot.slane %v2991_v20, 4  ;;  %v3070_v61 = vperm.slane %v6618_v30, 2 }
 0x28e   :  { %v2872_v12 = vadd.f32 %v2871_v11, %v2859_v51  ;;  %v3006_v57 = vadd.f32 %v3005_v16, %v2991_v20 }
 0x290   :  { %v3007_v24 = vrot.slane %v3006_v57, 2 }
 0x292   :  { %v3008_v31 = vadd.f32 %v3007_v24, %v3006_v57  ;;  %v3099_v24 = vperm.slane %v6624_v38, 0 }
 0x293   :  { %v2884_v45 = vpop.f32.mrf.mxu2  ;;  %v2860_v17 = vpop.f32.mrf.mxu0 }
 0x294   :  { %v2897_v50 = vpop.f32.mrf.mxu3  ;;  %v2873_v53 = vpop.f32.mrf.mxu1  ;;  %v2885_v34 = vadd.f32 %v2884_v45, %v2872_v12  ;;  %v3009_v35 = vrot.slane %v3008_v31, 1  ;;  %v3071_v12 = vperm.slane %v6618_v30, 3 }
 0x296   :  { %v2898_v3 = vadd.f32 %v2897_v50, %v2885_v34  ;;  %v3010_v13 = vadd.f32 %v3009_v35, %v3008_v31 }
 0x298   :  { %v3019_v56 = vmul.f32 0.125, %v3010_v13 }
 0x29a   :  { %v3023_v5 = vadd.f32 1e-05, %v3019_v56 }
 0x29b   :  { %v2886_v19 = vpop.f32.mrf.mxu2 }
 0x29c   :  { %v2899_v39 = vpop.f32.mrf.mxu3  ;;  %5980 = vrsqrt.f32 %v3023_v5  ;;  %vm3051_vm6 = vweird.f32 %v3023_v5 }
 0x2a2   :  { %v5981_v60 = vpop.eup %5980 }
 0x2a3   :  { %v3046_v48 = vmul.f32 %v5981_v60, %v3023_v5  ;;  %vm3052_vm5 = vweird.f32 %v5981_v60 }
 0x2a4   :  { %vm3053_vm7 = vmor %vm3051_vm6, %vm3052_vm5 }
 0x2a5   :  { %v3047_v11 = vmul.f32 %v5981_v60, %v3046_v48 }
 0x2a7   :  { %v3048_v15 = vmul.f32 0.5, %v3047_v11 }
 0x2a9   :  { %v3049_v50 = vsub.f32 1.5, %v3048_v15 }
 0x2ab   :  { %v2910_v22 = vpop.f32.mrf.mxu0  ;;  %v3050_v53 = vmul.f32 %v5981_v60, %v3049_v50 }
 0x2ac   :  { %v2923_v26 = vpop.f32.mrf.mxu1  ;;  %v2911_v43 = vadd.f32 %v2910_v22, %v2898_v3 }
 0x2ad   :  { %v3054_v19 = vsel %vm3053_vm7, %v5981_v60, %v3050_v53 }
 0x2ae   :  { %v2924_v27 = vadd.f32 %v2923_v26, %v2911_v43  ;;  %v3078_v21 = vmul.f32 %v3070_v61, %v3054_v19  ;;  %v3098_v26 = vperm.slane %v6622_v62, 0 }
 0x2b0   :  { %v3084_v16 = vmul.f32 %v3078_v21, %v6636_v42  ;;  %v3103_v42 = vmul.f32 %v3099_v24, %v6612_v9 }
 0x2b2   :  { %v3091_v57 = vrot.slane %v3084_v16, 6 }
 0x2b3   :  { %v2936_v63 = vpop.f32.mrf.mxu2  ;;  %v2912_v58 = vpop.f32.mrf.mxu0 }
 0x2b4   :  { %v2937_v28 = vadd.f32 %v2936_v63, %v2924_v27  ;;  %v2949_v29 = vpop.f32.mrf.mxu3  ;;  %v2925_v49 = vpop.f32.mrf.mxu1  ;;  %v3100_v27 = vperm.slane %v3078_v21, 0  ;;  %v3081_v63 = vld [vmem:[#allocation12 + $0x2] ss:$4 sm:$0xf] }
 0x2b5   :  { %v3102_v49 = vmul.f32 %v3098_v26, %v6595_v41 }
 0x2b6   :  { %v2950_v32 = vadd.f32 %v2949_v29, %v2937_v28  ;;  %v3104_v31 = vmul.f32 %v3100_v27, %v6632_v1 }
 0x2b8   :  { %v6640_v33 = vmax.f32 %v2950_v32, 0.0 }
 0x2ba   :  { %v2975_v54 = vrot.slane %v6640_v33, 4 }
 0x2bb   :  { %v2938_v36 = vpop.f32.mrf.mxu2 }
 0x2bc   :  { %v2976_v4 = vadd.f32 %v2975_v54, %v6640_v33  ;;  %v2951_v6 = vpop.f32.mrf.mxu3 }
 0x2be   :  { %v2977_v37 = vrot.slane %v2976_v4, 2 }
 0x2c0   :  { %v2978_v40 = vadd.f32 %v2977_v37, %v2976_v4 }
 0x2c2   :  { %v2979_v0 = vrot.slane %v2978_v40, 1 }
 0x2c4   :  { %v2980_v2 = vadd.f32 %v2979_v0, %v2978_v40 }
 0x2c6   :  { %v2984_v47 = vmul.f32 0.125, %v2980_v2 }
 0x2c8   :  { %v2988_v10 = vsub.f32 %v6640_v33, %v2984_v47 }
 0x2ca   :  { %v2992_v52 = vmul.f32 %v2988_v10, %v2988_v10 }
 0x2cc   :  { %v3011_v23 = vrot.slane %v2992_v52, 4 }
 0x2ce   :  { %v3012_v25 = vadd.f32 %v3011_v23, %v2992_v52 }
 0x2d0   :  { %v3013_v59 = vrot.slane %v3012_v25, 2 }
 0x2d2   :  { %v3014_v14 = vadd.f32 %v3013_v59, %v3012_v25 }
 0x2d4   :  { %v3015_v8 = vrot.slane %v3014_v14, 1 }
 0x2d6   :  { %v3016_v7 = vadd.f32 %v3015_v8, %v3014_v14 }
 0x2d8   :  { %v3020_v44 = vmul.f32 0.125, %v3016_v7 }
 0x2da   :  { %v3024_v45 = vadd.f32 1e-05, %v3020_v44 }
 0x2dc   :  { %5982 = vrsqrt.f32 %v3024_v45  ;;  %vm3061_vm12 = vweird.f32 %v3024_v45 }
 0x2e2   :  { %v5983_v17 = vpop.eup %5982 }
 0x2e3   :  { %v3056_v46 = vmul.f32 %v5983_v17, %v3024_v45  ;;  %vm3062_vm11 = vweird.f32 %v5983_v17 }
 0x2e4   :  { %vm3063_vm13 = vmor %vm3061_vm12, %vm3062_vm11 }
 0x2e5   :  { %v3057_v18 = vmul.f32 %v5983_v17, %v3056_v46 }
 0x2e7   :  { %v3058_v39 = vmul.f32 0.5, %v3057_v18 }
 0x2e9   :  { %v3059_v51 = vsub.f32 1.5, %v3058_v39 }
 0x2eb   :  { %v3060_v20 = vmul.f32 %v5983_v17, %v3059_v51 }
 0x2ed   :  { %v3064_v34 = vsel %vm3063_vm13, %v5983_v17, %v3060_v20 }
 0x2ee   :  { %v3079_v3 = vmul.f32 %v3071_v12, %v3064_v34 }
 0x2f0   :  { %v3085_v22 = vmul.f32 %v3079_v3, %v2984_v47  ;;  %v3101_v28 = vperm.slane %v3079_v3, 0 }
 0x2f2   :  { %v3092_v43 = vrot.slane %v3085_v22, 5  ;;  %v3105_v62 = vmul.f32 %v3101_v28, %v6640_v33 }
 0x2f4   :  { %v3094_v29 = vsel %vm924_vm9, %v3091_v57, %v3092_v43 }
 0x2f5   :  { %v3095_v30 = vsel %vm926_vm10, %v6630_v55, %v3094_v29 }
 0x2f6   :  { %v3097_v58 = vsub.f32 %v3081_v63, %v3095_v30 }
 0x2f8   :  { %v3107_v32 = vperm.slane %v3097_v58, 0  ;;  %v3108_v35 = vperm.slane %v3097_v58, 1  ;;  %v3109_v38 = vperm.slane %v3097_v58, 2  ;;  %v3110_v54 = vperm.slane %v3097_v58, 3 }
 0x2fa   :  { %v3115_v36 = vadd.f32 %v3107_v32, %v3102_v49  ;;  %v3116_v4 = vadd.f32 %v3108_v35, %v3103_v42  ;;  %v3117_v6 = vadd.f32 %v3109_v38, %v3104_v31  ;;  %v3118_v13 = vadd.f32 %v3110_v54, %v3105_v62 }
 0x2fc   :  { %v6657_v37 = vpack.c.bf16 %v3115_v36, %v3115_v36  ;;  %v6659_v55 = vpack.c.bf16 %v3116_v4, %v3116_v4  ;;  %v6661_v40 = vpack.c.bf16 %v3117_v6, %v3117_v6  ;;  %v6663_v41 = vpack.c.bf16 %v3118_v13, %v3118_v13 }
 0x2fd   :  { %6216 = dma.done.wait [#allocation5 + $0x1], 8192 }
 0x2fe   :  { %6217 = vsyncadd [#allocation5 + $0x1], 4294959104  ;;  %v5284_v9 = vld [vmem:[#allocation3 + $0x70] sm:$0xf]  ;;  %v5884_v1 = vld [vmem:[#allocation3 + $0x74] sm:$0xf0] }
 0x2ff   :  { %v5348_v33 = vld [vmem:[#allocation3 + $0xf0] sm:$0xf]  ;;  %v5285_v56 = vor.u32 %v5884_v1, %v5284_v9  ;;  %v5900_v0 = vld [vmem:[#allocation3 + $0xf4] sm:$0xf0]  ;;  %v5276_v25 = vld [vmem:[#allocation3 + $0x60] sm:$0xf] }
 0x300   :  { %v5412_v2 = vld [vmem:[#allocation3 + $0x170] sm:$0xf]  ;;  %v5916_v5 = vld [vmem:[#allocation3 + $0x174] sm:$0xf0]  ;;  %v5349_v47 = vor.u32 %v5900_v0, %v5348_v33  ;;  %v5882_v59 = vld [vmem:[#allocation3 + $0x64] sm:$0xf0] }
 0x301   :  { %v5413_v10 = vor.u32 %v5916_v5, %v5412_v2  ;;  %v5476_v52 = vld [vmem:[#allocation3 + $0x1f0] sm:$0xf]  ;;  %v5932_v23 = vld [vmem:[#allocation3 + $0x1f4] sm:$0xf0]  ;;  %3517 = vmatpush.bf16.msra.mxu0 %v5285_v56  ;;  %v5340_v14 = vld [vmem:[#allocation3 + $0xe0] sm:$0xf]  ;;  %v5277_v8 = vor.u32 %v5882_v59, %v5276_v25 }
 0x302   :  { %v5477_v60 = vor.u32 %v5932_v23, %v5476_v52  ;;  %v5898_v48 = vld [vmem:[#allocation3 + $0xe4] sm:$0xf0]  ;;  %3530 = vmatpush.bf16.msra.mxu1 %v5349_v47  ;;  %v5404_v11 = vld [vmem:[#allocation3 + $0x160] sm:$0xf]  ;;  %v5268_v17 = vld [vmem:[#allocation3 + $0x50] sm:$0xf] }
 0x303   :  { %3543 = vmatpush.bf16.msra.mxu2 %v5413_v10  ;;  %v5341_v7 = vor.u32 %v5898_v48, %v5340_v14  ;;  %v5914_v44 = vld [vmem:[#allocation3 + $0x164] sm:$0xf0]  ;;  %v5468_v45 = vld [vmem:[#allocation3 + $0x1e0] sm:$0xf]  ;;  %v5880_v53 = vld [vmem:[#allocation3 + $0x54] sm:$0xf0] }
 0x304   :  { %3556 = vmatpush.bf16.msra.mxu3 %v5477_v60  ;;  %v5405_v15 = vor.u32 %v5914_v44, %v5404_v11  ;;  %v5930_v50 = vld [vmem:[#allocation3 + $0x1e4] sm:$0xf0]  ;;  %v5332_v18 = vld [vmem:[#allocation3 + $0xd0] sm:$0xf]  ;;  %v5896_v61 = vld [vmem:[#allocation3 + $0xd4] sm:$0xf0]  ;;  %v5269_v39 = vor.u32 %v5880_v53, %v5268_v17 }
 0x305   :  { %v5469_v46 = vor.u32 %v5930_v50, %v5468_v45  ;;  %v5396_v19 = vld [vmem:[#allocation3 + $0x150] sm:$0xf]  ;;  %3518 = vmatpush.bf16.msra.mxu0 %v5277_v8  ;;  %v5912_v51 = vld [vmem:[#allocation3 + $0x154] sm:$0xf0]  ;;  %v5333_v20 = vor.u32 %v5896_v61, %v5332_v18  ;;  %v5260_v16 = vld [vmem:[#allocation3 + $0x40] sm:$0xf] }
 0x306   :  { %v5460_v21 = vld [vmem:[#allocation3 + $0x1d0] sm:$0xf]  ;;  %v5928_v12 = vld [vmem:[#allocation3 + $0x1d4] sm:$0xf0]  ;;  %3531 = vmatpush.bf16.msra.mxu1 %v5341_v7  ;;  %v5397_v34 = vor.u32 %v5912_v51, %v5396_v19  ;;  %v5878_v3 = vld [vmem:[#allocation3 + $0x44] sm:$0xf0] }
 0x307   :  { %3544 = vmatpush.bf16.msra.mxu2 %v5405_v15  ;;  %v5324_v22 = vld [vmem:[#allocation3 + $0xc0] sm:$0xf]  ;;  %v5461_v26 = vor.u32 %v5928_v12, %v5460_v21  ;;  %v5894_v57 = vld [vmem:[#allocation3 + $0xc4] sm:$0xf0]  ;;  %v5261_v28 = vor.u32 %v5878_v3, %v5260_v16  ;;  %v5252_v58 = vld [vmem:[#allocation3 + $0x30] sm:$0xf] }
 0x308   :  { %3557 = vmatpush.bf16.msra.mxu3 %v5469_v46  ;;  %v5388_v43 = vld [vmem:[#allocation3 + $0x140] sm:$0xf]  ;;  %v5910_v24 = vld [vmem:[#allocation3 + $0x144] sm:$0xf0]  ;;  %v5325_v29 = vor.u32 %v5894_v57, %v5324_v22  ;;  %v5876_v49 = vld [vmem:[#allocation3 + $0x34] sm:$0xf0] }
 0x309   :  { %v5452_v27 = vld [vmem:[#allocation3 + $0x1c0] sm:$0xf]  ;;  %v5926_v63 = vld [vmem:[#allocation3 + $0x1c4] sm:$0xf0]  ;;  %3519 = vmatpush.bf16.msra.mxu0 %v5269_v39  ;;  %v5389_v30 = vor.u32 %v5910_v24, %v5388_v43  ;;  %v5316_v42 = vld [vmem:[#allocation3 + $0xb0] sm:$0xf]  ;;  %v5253_v36 = vor.u32 %v5876_v49, %v5252_v58 }
 0x30a   :  { %3532 = vmatpush.bf16.msra.mxu1 %v5333_v20  ;;  %v5453_v31 = vor.u32 %v5926_v63, %v5452_v27  ;;  %v5892_v62 = vld [vmem:[#allocation3 + $0xb4] sm:$0xf0]  ;;  %v5380_v32 = vld [vmem:[#allocation3 + $0x130] sm:$0xf]  ;;  %v5244_v13 = vld [vmem:[#allocation3 + $0x20] sm:$0xf] }
 0x30b   :  { %3545 = vmatpush.bf16.msra.mxu2 %v5397_v34  ;;  %v5908_v35 = vld [vmem:[#allocation3 + $0x134] sm:$0xf0]  ;;  %v5444_v38 = vld [vmem:[#allocation3 + $0x1b0] sm:$0xf]  ;;  %v5317_v4 = vor.u32 %v5892_v62, %v5316_v42  ;;  %v5874_v9 = vld [vmem:[#allocation3 + $0x24] sm:$0xf0] }
 0x30c   :  { %3558 = vmatpush.bf16.msra.mxu3 %v5461_v26  ;;  %v5924_v54 = vld [vmem:[#allocation3 + $0x1b4] sm:$0xf0]  ;;  %v5381_v6 = vor.u32 %v5908_v35, %v5380_v32  ;;  %v5308_v1 = vld [vmem:[#allocation3 + $0xa0] sm:$0xf]  ;;  %v5890_v56 = vld [vmem:[#allocation3 + $0xa4] sm:$0xf0]  ;;  %v5245_v10 = vor.u32 %v5874_v9, %v5244_v13 }
 0x30d   :  { %3520 = vmatpush.bf16.msra.mxu0 %v5261_v28  ;;  %v5445_v33 = vor.u32 %v5924_v54, %v5444_v38  ;;  %v5372_v0 = vld [vmem:[#allocation3 + $0x120] sm:$0xf]  ;;  %v5906_v2 = vld [vmem:[#allocation3 + $0x124] sm:$0xf0]  ;;  %v5309_v52 = vor.u32 %v5890_v56, %v5308_v1  ;;  %v5236_v25 = vld [vmem:[#allocation3 + $0x10] sm:$0xf] }
 0x30e   :  { %3533 = vmatpush.bf16.msra.mxu1 %v5325_v29  ;;  %v5436_v5 = vld [vmem:[#allocation3 + $0x1a0] sm:$0xf]  ;;  %v5922_v47 = vld [vmem:[#allocation3 + $0x1a4] sm:$0xf0]  ;;  %v5373_v23 = vor.u32 %v5906_v2, %v5372_v0  ;;  %v5872_v60 = vld [vmem:[#allocation3 + $0x14] sm:$0xf0] }
 0x30f   :  { %3546 = vmatpush.bf16.msra.mxu2 %v5389_v30  ;;  %v5300_v59 = vld [vmem:[#allocation3 + $0x90] sm:$0xf]  ;;  %v5437_v14 = vor.u32 %v5922_v47, %v5436_v5  ;;  %v5888_v48 = vld [vmem:[#allocation3 + $0x94] sm:$0xf0]  ;;  %v5237_v45 = vor.u32 %v5872_v60, %v5236_v25  ;;  %v5228_v15 = vld [vmem:[#allocation3] sm:$0xf] }
 0x310   :  { %3559 = vmatpush.bf16.msra.mxu3 %v5453_v31  ;;  %v5364_v8 = vld [vmem:[#allocation3 + $0x110] sm:$0xf]  ;;  %v5904_v7 = vld [vmem:[#allocation3 + $0x114] sm:$0xf0]  ;;  %v5870_v50 = vld [vmem:[#allocation3 + $0x4] sm:$0xf0]  ;;  %v5301_v17 = vor.u32 %v5888_v48, %v5300_v59 }
 0x311   :  { %3521 = vmatpush.bf16.msra.mxu0 %v5253_v36  ;;  %v5428_v11 = vld [vmem:[#allocation3 + $0x190] sm:$0xf]  ;;  %v5920_v44 = vld [vmem:[#allocation3 + $0x194] sm:$0xf0]  ;;  %v5365_v53 = vor.u32 %v5904_v7, %v5364_v8  ;;  %v5292_v46 = vld [vmem:[#allocation3 + $0x80] sm:$0xf]  ;;  %v5229_v16 = vor.u32 %v5870_v50, %v5228_v15 }
 0x312   :  { %3534 = vmatpush.bf16.msra.mxu1 %v5317_v4  ;;  %v5886_v18 = vld [vmem:[#allocation3 + $0x84] sm:$0xf0]  ;;  %v5356_v61 = vld [vmem:[#allocation3 + $0x100] sm:$0xf]  ;;  %v5429_v19 = vor.u32 %v5920_v44, %v5428_v11  ;;  %v5883_v12 = vld [vmem:[#allocation3 + $0x74] sm:$0xf] }
 0x313   :  { %3547 = vmatpush.bf16.msra.mxu2 %v5381_v6  ;;  %v5902_v39 = vld [vmem:[#allocation3 + $0x104] sm:$0xf0]  ;;  %v5420_v51 = vld [vmem:[#allocation3 + $0x180] sm:$0xf]  ;;  %v5286_v20 = vld [vmem:[#allocation3 + $0x78] sm:$0xf0]  ;;  %v5293_v57 = vor.u32 %v5886_v18, %v5292_v46 }
 0x314   :  { %3560 = vmatpush.bf16.msra.mxu3 %v5445_v33  ;;  %v5918_v21 = vld [vmem:[#allocation3 + $0x184] sm:$0xf0]  ;;  %v5899_v34 = vld [vmem:[#allocation3 + $0xf4] sm:$0xf]  ;;  %v5350_v3 = vld [vmem:[#allocation3 + $0xf8] sm:$0xf0]  ;;  %v5357_v43 = vor.u32 %v5902_v39, %v5356_v61  ;;  %v5289_v28 = vor.u32 %v5883_v12, %v5286_v20 }
 0x315   :  { %3522 = vmatpush.bf16.msra.mxu0 %v5245_v10  ;;  %v5915_v22 = vld [vmem:[#allocation3 + $0x174] sm:$0xf]  ;;  %v5414_v26 = vld [vmem:[#allocation3 + $0x178] sm:$0xf0]  ;;  %v5421_v63 = vor.u32 %v5918_v21, %v5420_v51  ;;  %v5353_v29 = vor.u32 %v5899_v34, %v5350_v3  ;;  %v5881_v58 = vld [vmem:[#allocation3 + $0x64] sm:$0xf] }
 0x316   :  { %3535 = vmatpush.bf16.msra.mxu1 %v5309_v52  ;;  %v5931_v24 = vld [vmem:[#allocation3 + $0x1f4] sm:$0xf]  ;;  %v5478_v27 = vld [vmem:[#allocation3 + $0x1f8] sm:$0xf0]  ;;  %v5417_v30 = vor.u32 %v5915_v22, %v5414_v26  ;;  %v5278_v49 = vld [vmem:[#allocation3 + $0x68] sm:$0xf0] }
 0x317   :  { %3548 = vmatpush.bf16.msra.mxu2 %v5373_v23  ;;  %v5897_v42 = vld [vmem:[#allocation3 + $0xe4] sm:$0xf]  ;;  %v5481_v31 = vor.u32 %v5931_v24, %v5478_v27  ;;  %v5342_v62 = vld [vmem:[#allocation3 + $0xe8] sm:$0xf0]  ;;  %v5281_v36 = vor.u32 %v5881_v58, %v5278_v49  ;;  %v5879_v13 = vld [vmem:[#allocation3 + $0x54] sm:$0xf] }
 0x318   :  { %3561 = vmatpush.bf16.msra.mxu3 %v5437_v14  ;;  %v5913_v32 = vld [vmem:[#allocation3 + $0x164] sm:$0xf]  ;;  %v5406_v35 = vld [vmem:[#allocation3 + $0x168] sm:$0xf0]  ;;  %v5345_v4 = vor.u32 %v5897_v42, %v5342_v62  ;;  %v5270_v9 = vld [vmem:[#allocation3 + $0x58] sm:$0xf0] }
 0x319   :  { %3523 = vmatpush.bf16.msra.mxu0 %v5237_v45  ;;  %v5929_v38 = vld [vmem:[#allocation3 + $0x1e4] sm:$0xf]  ;;  %v5470_v54 = vld [vmem:[#allocation3 + $0x1e8] sm:$0xf0]  ;;  %v5409_v6 = vor.u32 %v5913_v32, %v5406_v35  ;;  %v5895_v1 = vld [vmem:[#allocation3 + $0xd4] sm:$0xf]  ;;  %v5273_v10 = vor.u32 %v5879_v13, %v5270_v9 }
 0x31a   :  { %3536 = vmatpush.bf16.msra.mxu1 %v5301_v17  ;;  %v5473_v33 = vor.u32 %v5929_v38, %v5470_v54  ;;  %v5334_v56 = vld [vmem:[#allocation3 + $0xd8] sm:$0xf0]  ;;  %v5911_v0 = vld [vmem:[#allocation3 + $0x154] sm:$0xf]  ;;  %v5877_v25 = vld [vmem:[#allocation3 + $0x44] sm:$0xf] }
 0x31b   :  { %3549 = vmatpush.bf16.msra.mxu2 %v5365_v53  ;;  %v5398_v2 = vld [vmem:[#allocation3 + $0x158] sm:$0xf0]  ;;  %v5927_v5 = vld [vmem:[#allocation3 + $0x1d4] sm:$0xf]  ;;  %v5337_v52 = vor.u32 %v5895_v1, %v5334_v56  ;;  %v5262_v60 = vld [vmem:[#allocation3 + $0x48] sm:$0xf0] }
 0x31c   :  { %3562 = vmatpush.bf16.msra.mxu3 %v5429_v19  ;;  %v5462_v47 = vld [vmem:[#allocation3 + $0x1d8] sm:$0xf0]  ;;  %v5401_v23 = vor.u32 %v5911_v0, %v5398_v2  ;;  %v5893_v59 = vld [vmem:[#allocation3 + $0xc4] sm:$0xf]  ;;  %v5326_v48 = vld [vmem:[#allocation3 + $0xc8] sm:$0xf0]  ;;  %v5265_v45 = vor.u32 %v5877_v25, %v5262_v60 }
 0x31d   :  { %3524 = vmatpush.bf16.msra.mxu0 %v5229_v16  ;;  %v5465_v14 = vor.u32 %v5927_v5, %v5462_v47  ;;  %v5909_v8 = vld [vmem:[#allocation3 + $0x144] sm:$0xf]  ;;  %v5390_v7 = vld [vmem:[#allocation3 + $0x148] sm:$0xf0]  ;;  %v5329_v15 = vor.u32 %v5893_v59, %v5326_v48  ;;  %v5875_v17 = vld [vmem:[#allocation3 + $0x34] sm:$0xf] }
 0x31e   :  { %3537 = vmatpush.bf16.msra.mxu1 %v5293_v57  ;;  %v5925_v11 = vld [vmem:[#allocation3 + $0x1c4] sm:$0xf]  ;;  %v5454_v44 = vld [vmem:[#allocation3 + $0x1c8] sm:$0xf0]  ;;  %v5393_v50 = vor.u32 %v5909_v8, %v5390_v7  ;;  %v5254_v53 = vld [vmem:[#allocation3 + $0x38] sm:$0xf0] }
 0x31f   :  { %3550 = vmatpush.bf16.msra.mxu2 %v5357_v43  ;;  %v5891_v46 = vld [vmem:[#allocation3 + $0xb4] sm:$0xf]  ;;  %v5457_v18 = vor.u32 %v5925_v11, %v5454_v44  ;;  %v5318_v61 = vld [vmem:[#allocation3 + $0xb8] sm:$0xf0]  ;;  %v5257_v12 = vor.u32 %v5875_v17, %v5254_v53  ;;  %v5873_v16 = vld [vmem:[#allocation3 + $0x24] sm:$0xf] }
 0x320   :  { %3563 = vmatpush.bf16.msra.mxu3 %v5421_v63  ;;  %3525 = vmatmul.bf16.vlgmr.msra.gmra.mxu0 %v6657_v37  ;;  %v5907_v19 = vld [vmem:[#allocation3 + $0x134] sm:$0xf]  ;;  %v5382_v39 = vld [vmem:[#allocation3 + $0x138] sm:$0xf0]  ;;  %v5321_v20 = vor.u32 %v5891_v46, %v5318_v61  ;;  %v5246_v3 = vld [vmem:[#allocation3 + $0x28] sm:$0xf0] }
 0x321   :  { %3569 = vmatpush.bf16.msrb.mxu0 %v5289_v28  ;;  %3538 = vmatmul.bf16.vlgmr.msra.gmra.mxu1 %v6659_v55  ;;  %v5923_v51 = vld [vmem:[#allocation3 + $0x1b4] sm:$0xf]  ;;  %v5446_v21 = vld [vmem:[#allocation3 + $0x1b8] sm:$0xf0]  ;;  %v5385_v34 = vor.u32 %v5907_v19, %v5382_v39  ;;  %v5889_v22 = vld [vmem:[#allocation3 + $0xa4] sm:$0xf]  ;;  %v5249_v28 = vor.u32 %v5873_v16, %v5246_v3 }
 0x322   :  { %3582 = vmatpush.bf16.msrb.mxu1 %v5353_v29  ;;  %3551 = vmatmul.bf16.vlgmr.msra.gmra.mxu2 %v6661_v40  ;;  %v5449_v26 = vor.u32 %v5923_v51, %v5446_v21  ;;  %v5310_v57 = vld [vmem:[#allocation3 + $0xa8] sm:$0xf0]  ;;  %v5905_v43 = vld [vmem:[#allocation3 + $0x124] sm:$0xf]  ;;  %v5871_v58 = vld [vmem:[#allocation3 + $0x14] sm:$0xf] }
 0x323   :  { %3595 = vmatpush.bf16.msrb.mxu2 %v5417_v30  ;;  %3564 = vmatmul.bf16.vlgmr.msra.gmra.mxu3 %v6663_v41  ;;  %v5374_v24 = vld [vmem:[#allocation3 + $0x128] sm:$0xf0]  ;;  %v5921_v27 = vld [vmem:[#allocation3 + $0x1a4] sm:$0xf]  ;;  %v5313_v29 = vor.u32 %v5889_v22, %v5310_v57  ;;  %v5238_v49 = vld [vmem:[#allocation3 + $0x18] sm:$0xf0] }
 0x324   :  { %3608 = vmatpush.bf16.msrb.mxu3 %v5481_v31  ;;  %v5438_v63 = vld [vmem:[#allocation3 + $0x1a8] sm:$0xf0]  ;;  %v5377_v30 = vor.u32 %v5905_v43, %v5374_v24  ;;  %v5887_v42 = vld [vmem:[#allocation3 + $0x94] sm:$0xf]  ;;  %v5302_v62 = vld [vmem:[#allocation3 + $0x98] sm:$0xf0] }
 0x325   :  { %3570 = vmatpush.bf16.msrb.mxu0 %v5281_v36  ;;  %v5441_v31 = vor.u32 %v5921_v27, %v5438_v63  ;;  %v5903_v32 = vld [vmem:[#allocation3 + $0x114] sm:$0xf]  ;;  %v5366_v35 = vld [vmem:[#allocation3 + $0x118] sm:$0xf0]  ;;  %v5241_v36 = vor.u32 %v5871_v58, %v5238_v49  ;;  %v5869_v13 = vld [vmem:[#allocation3 + $0x4] sm:$0xf] }
 0x326   :  { %3583 = vmatpush.bf16.msrb.mxu1 %v5345_v4  ;;  %v5919_v38 = vld [vmem:[#allocation3 + $0x194] sm:$0xf]  ;;  %v5430_v54 = vld [vmem:[#allocation3 + $0x198] sm:$0xf0]  ;;  %v5305_v4 = vor.u32 %v5887_v42, %v5302_v62  ;;  %v5230_v9 = vld [vmem:[#allocation3 + $0x8] sm:$0xf0] }
 0x327   :  { %3596 = vmatpush.bf16.msrb.mxu2 %v5409_v6  ;;  %v5369_v6 = vor.u32 %v5903_v32, %v5366_v35  ;;  %v5885_v1 = vld [vmem:[#allocation3 + $0x84] sm:$0xf]  ;;  %v5294_v56 = vld [vmem:[#allocation3 + $0x88] sm:$0xf0] }
 0x328   :  { %3609 = vmatpush.bf16.msrb.mxu3 %v5473_v33  ;;  %v5433_v33 = vor.u32 %v5919_v38, %v5430_v54  ;;  %v5901_v0 = vld [vmem:[#allocation3 + $0x104] sm:$0xf]  ;;  %v5358_v2 = vld [vmem:[#allocation3 + $0x108] sm:$0xf0] }
 0x329   :  { %3571 = vmatpush.bf16.msrb.mxu0 %v5273_v10  ;;  %v5917_v5 = vld [vmem:[#allocation3 + $0x184] sm:$0xf]  ;;  %v5422_v47 = vld [vmem:[#allocation3 + $0x188] sm:$0xf0]  ;;  %v5233_v10 = vor.u32 %v5869_v13, %v5230_v9 }
 0x32a   :  { %3584 = vmatpush.bf16.msrb.mxu1 %v5337_v52  ;;  %v5297_v52 = vor.u32 %v5885_v1, %v5294_v56  ;;  %v5425_v25 = vor.u32 %v5917_v5, %v5422_v47  ;;  %v3191_v60 = vld [vmem:[#allocation14] ss:$4 sm:$0x3] }
 0x32b   :  { %3597 = vmatpush.bf16.msrb.mxu2 %v5401_v23  ;;  %v5361_v23 = vor.u32 %v5901_v0, %v5358_v2  ;;  %v3193_v59 = vperm.slane %v3191_v60, 0  ;;  %v3194_v51 = vperm.slane %v3191_v60, 1 }
 0x32c   :  { %3610 = vmatpush.bf16.msrb.mxu3 %v5465_v14 }
 0x32d   :  { %3572 = vmatpush.bf16.msrb.mxu0 %v5265_v45 }
 0x32e   :  { %3585 = vmatpush.bf16.msrb.mxu1 %v5329_v15 }
 0x32f   :  { %3598 = vmatpush.bf16.msrb.mxu2 %v5393_v50 }
 0x330   :  { %3611 = vmatpush.bf16.msrb.mxu3 %v5457_v18 }
 0x331   :  { %3573 = vmatpush.bf16.msrb.mxu0 %v5257_v12 }
 0x332   :  { %3586 = vmatpush.bf16.msrb.mxu1 %v5321_v20 }
 0x333   :  { %3599 = vmatpush.bf16.msrb.mxu2 %v5385_v34 }
 0x334   :  { %3612 = vmatpush.bf16.msrb.mxu3 %v5449_v26 }
 0x335   :  { %3574 = vmatpush.bf16.msrb.mxu0 %v5249_v28 }
 0x336   :  { %3587 = vmatpush.bf16.msrb.mxu1 %v5313_v29 }
 0x337   :  { %3600 = vmatpush.bf16.msrb.mxu2 %v5377_v30 }
 0x338   :  { %3613 = vmatpush.bf16.msrb.mxu3 %v5441_v31 }
 0x339   :  { %3575 = vmatpush.bf16.msrb.mxu0 %v5241_v36 }
 0x33a   :  { %3588 = vmatpush.bf16.msrb.mxu1 %v5305_v4 }
 0x33b   :  { %3601 = vmatpush.bf16.msrb.mxu2 %v5369_v6 }
 0x33c   :  { %3614 = vmatpush.bf16.msrb.mxu3 %v5433_v33 }
 0x33d   :  { %3576 = vmatpush.bf16.msrb.mxu0 %v5233_v10 }
 0x33e   :  { %3589 = vmatpush.bf16.msrb.mxu1 %v5297_v52 }
 0x33f   :  { %3602 = vmatpush.bf16.msrb.mxu2 %v5361_v23 }
 0x340   :  { %3615 = vmatpush.bf16.msrb.mxu3 %v5425_v25  ;;  %3577 = vmatmul.bf16.vlgmr.msrb.gmra.mxu0 %v6657_v37 }
 0x341   :  { %3590 = vmatmul.bf16.vlgmr.msrb.gmra.mxu1 %v6659_v55 }
 0x342   :  { %3603 = vmatmul.bf16.vlgmr.msrb.gmra.mxu2 %v6661_v40 }
 0x343   :  { %3616 = vmatmul.bf16.vlgmr.msrb.gmra.mxu3 %v6663_v41 }
 0x39d   :  { %v3526_v14 = vpop.f32.mrf.mxu0 }
 0x39e   :  { %v3527_v48 = vadd.f32 %v3526_v14, %v3193_v59  ;;  %v3539_v8 = vpop.f32.mrf.mxu1 }
 0x3a0   :  { %v3540_v7 = vadd.f32 %v3539_v8, %v3527_v48 }
 0x3a5   :  { %v3552_v11 = vpop.f32.mrf.mxu2  ;;  %v3528_v50 = vpop.f32.mrf.mxu0 }
 0x3a6   :  { %v3553_v44 = vadd.f32 %v3552_v11, %v3540_v7  ;;  %v3565_v45 = vpop.f32.mrf.mxu3  ;;  %v3541_v17 = vpop.f32.mrf.mxu1 }
 0x3a8   :  { %v3566_v15 = vadd.f32 %v3565_v45, %v3553_v44  ;;  %v3678_v45 = vld [vmem:[#allocation14 + $0x1] ss:$4 sm:$0x3] }
 0x3a9   :  { %v3680_v17 = vperm.slane %v3678_v45, 0 }
 0x3aa   :  { %v6673_v53 = vmax.f32 %v3566_v15, 0.0 }
 0x3ac   :  { %v3623_v37 = vrot.slane %v6673_v53, 4 }
 0x3ad   :  { %v3554_v55 = vpop.f32.mrf.mxu2 }
 0x3ae   :  { %v3624_v40 = vadd.f32 %v3623_v37, %v6673_v53  ;;  %v3567_v41 = vpop.f32.mrf.mxu3  ;;  %v3681_v37 = vperm.slane %v3678_v45, 1 }
 0x3b0   :  { %v3625_v46 = vrot.slane %v3624_v40, 2 }
 0x3b2   :  { %v3626_v18 = vadd.f32 %v3625_v46, %v3624_v40 }
 0x3b4   :  { %v3627_v61 = vrot.slane %v3626_v18, 1 }
 0x3b6   :  { %v3628_v19 = vadd.f32 %v3627_v61, %v3626_v18 }
 0x3b8   :  { %v6677_v39 = vmul.f32 0.125, %v3628_v19 }
 0x3ba   :  { %v3637_v21 = vsub.f32 %v6673_v53, %v6677_v39 }
 0x3bc   :  { %v3639_v12 = vmul.f32 %v3637_v21, %v3637_v21 }
 0x3bd   :  { %v3578_v20 = vpop.f32.mrf.mxu0 }
 0x3be   :  { %v3579_v34 = vadd.f32 %v3578_v20, %v3194_v51  ;;  %v3591_v16 = vpop.f32.mrf.mxu1  ;;  %v3641_v3 = vrot.slane %v3639_v12, 4  ;;  %v3687_v51 = vld [vmem:[#allocation14 + $0x2] ss:$4 sm:$0x3] }
 0x3c0   :  { %v3592_v22 = vadd.f32 %v3591_v16, %v3579_v34  ;;  %v3642_v26 = vadd.f32 %v3641_v3, %v3639_v12 }
 0x3c2   :  { %v3643_v28 = vrot.slane %v3642_v26, 2 }
 0x3c4   :  { %v3644_v58 = vadd.f32 %v3643_v28, %v3642_v26 }
 0x3c5   :  { %v3604_v57 = vpop.f32.mrf.mxu2  ;;  %v3580_v27 = vpop.f32.mrf.mxu0 }
 0x3c6   :  { %v3605_v43 = vadd.f32 %v3604_v57, %v3592_v22  ;;  %v3617_v24 = vpop.f32.mrf.mxu3  ;;  %v3593_v63 = vpop.f32.mrf.mxu1  ;;  %v3645_v32 = vrot.slane %v3644_v58, 1 }
 0x3c8   :  { %v3618_v29 = vadd.f32 %v3617_v24, %v3605_v43  ;;  %v3646_v54 = vadd.f32 %v3645_v32, %v3644_v58 }
 0x3ca   :  { %v3622_v30 = vmax.f32 %v3618_v29, 0.0  ;;  %v3653_v6 = vmul.f32 0.125, %v3646_v54 }
 0x3cc   :  { %v3629_v49 = vrot.slane %v3622_v30, 4  ;;  %v3655_v1 = vadd.f32 1e-05, %v3653_v6 }
 0x3cd   :  { %v3606_v42 = vpop.f32.mrf.mxu2 }
 0x3ce   :  { %v3630_v31 = vadd.f32 %v3629_v49, %v3622_v30  ;;  %v3619_v62 = vpop.f32.mrf.mxu3  ;;  %5985 = vrsqrt.f32 %v3655_v1  ;;  %vm3663_vm10 = vweird.f32 %v3655_v1 }
 0x3d0   :  { %v3631_v35 = vrot.slane %v3630_v31, 2 }
 0x3d2   :  { %v3632_v38 = vadd.f32 %v3631_v35, %v3630_v31 }
 0x3d4   :  { %v3633_v36 = vrot.slane %v3632_v38, 1  ;;  %v5986_v47 = vpop.eup %5985 }
 0x3d5   :  { %v3658_v23 = vmul.f32 %v5986_v47, %v3655_v1  ;;  %vm3664_vm9 = vweird.f32 %v5986_v47 }
 0x3d6   :  { %v3634_v4 = vadd.f32 %v3633_v36, %v3632_v38  ;;  %vm3665_vm15 = vmor %vm3663_vm10, %vm3664_vm9 }
 0x3d7   :  { %v3659_v59 = vmul.f32 %v5986_v47, %v3658_v23 }
 0x3d8   :  { %v3636_v13 = vmul.f32 0.125, %v3634_v4 }
 0x3d9   :  { %v3660_v14 = vmul.f32 0.5, %v3659_v59 }
 0x3da   :  { %v3638_v9 = vsub.f32 %v3622_v30, %v3636_v13 }
 0x3db   :  { %v3661_v8 = vsub.f32 1.5, %v3660_v14 }
 0x3dc   :  { %v3640_v33 = vmul.f32 %v3638_v9, %v3638_v9 }
 0x3dd   :  { %v3662_v44 = vmul.f32 %v5986_v47, %v3661_v8 }
 0x3de   :  { %v3647_v56 = vrot.slane %v3640_v33, 4 }
 0x3df   :  { %v3666_v55 = vsel %vm3665_vm15, %v5986_v47, %v3662_v44 }
 0x3e0   :  { %v3648_v0 = vadd.f32 %v3647_v56, %v3640_v33  ;;  %v3684_v46 = vmul.f32 %v3680_v17, %v3666_v55 }
 0x3e2   :  { %v3649_v2 = vrot.slane %v3648_v0, 2  ;;  %v3688_v19 = vmul.f32 %v3684_v46, %v6677_v39  ;;  %v3696_v12 = vperm.slane %v3684_v46, 0 }
 0x3e4   :  { %v3650_v5 = vadd.f32 %v3649_v2, %v3648_v0  ;;  %v3698_v3 = vmul.f32 %v3696_v12, %v6673_v53 }
 0x3e6   :  { %v3651_v10 = vrot.slane %v3650_v5, 1 }
 0x3e8   :  { %v3652_v52 = vadd.f32 %v3651_v10, %v3650_v5 }
 0x3ea   :  { %v3654_v25 = vmul.f32 0.125, %v3652_v52 }
 0x3ec   :  { %v3656_v60 = vadd.f32 1e-05, %v3654_v25 }
 0x3ee   :  { %5987 = vrsqrt.f32 %v3656_v60  ;;  %vm3673_vm0 = vweird.f32 %v3656_v60 }
 0x3f4   :  { %v5988_v48 = vpop.eup %5987 }
 0x3f5   :  { %v3668_v7 = vmul.f32 %v5988_v48, %v3656_v60  ;;  %vm3674_vm14 = vweird.f32 %v5988_v48 }
 0x3f6   :  { %vm3675_vm1 = vmor %vm3673_vm0, %vm3674_vm14 }
 0x3f7   :  { %v3669_v11 = vmul.f32 %v5988_v48, %v3668_v7 }
 0x3f9   :  { %v3670_v15 = vmul.f32 0.5, %v3669_v11 }
 0x3fb   :  { %v3671_v50 = vsub.f32 1.5, %v3670_v15 }
 0x3fd   :  { %v3672_v40 = vmul.f32 %v5988_v48, %v3671_v50 }
 0x3ff   :  { %v3676_v41 = vsel %vm3675_vm1, %v5988_v48, %v3672_v40 }
 0x400   :  { %v3685_v18 = vmul.f32 %v3681_v37, %v3676_v41 }
 0x402   :  { %v3689_v61 = vmul.f32 %v3685_v18, %v3636_v13  ;;  %v3697_v20 = vperm.slane %v3685_v18, 0 }
 0x404   :  { %v3692_v21 = vrot.slane %v3689_v61, 7  ;;  %v3699_v22 = vmul.f32 %v3697_v20, %v3622_v30 }
 0x406   :  { %v3693_v34 = vsel %vm922_vm8, %v3688_v19, %v3692_v21 }
 0x407   :  { %v3695_v16 = vsub.f32 %v3687_v51, %v3693_v34 }
 0x409   :  { %v3701_v26 = vperm.slane %v3695_v16, 0  ;;  %v3702_v57 = vperm.slane %v3695_v16, 1 }
 0x40b   :  { %v3705_v43 = vadd.f32 %v3701_v26, %v3698_v3  ;;  %v3706_v24 = vadd.f32 %v3702_v57, %v3699_v22 }
 0x40d   :  { %v3707_v27 = vpack.c.bf16 %v3705_v43, %v3705_v43  ;;  %v3708_v63 = vpack.c.bf16 %v3706_v24, %v3706_v24 }
 0x40e   :  { %6218 = dma.done.wait [#allocation5 + $0x2], 2048 }
 0x40f   :  { %6219 = vsyncadd [#allocation5 + $0x2], 4294965248  ;;  %v5940_v28 = vld [vmem:[#allocation4 + $0x38] sm:$0xff]  ;;  %v5939_v29 = vld [vmem:[#allocation4 + $0x30] sm:$0xff]  ;;  %s6232_s27 = smov [#allocation15]   ;;  %s3914_s30 = sshll.u32 %s6705_s9, 4  ;;  %s3915_s30 = int_to_ptr.hbm [resolvable:$true] %s3914_s30 }
 0x410   :  { %v5948_v39 = vld [vmem:[#allocation4 + $0x78] sm:$0xff]  ;;  %3843 = vmatpush.bf16.msra.mxu0 %v5940_v28  ;;  %v5947_v58 = vld [vmem:[#allocation4 + $0x70] sm:$0xff]  ;;  %v5938_v49 = vld [vmem:[#allocation4 + $0x28] sm:$0xff]  ;;  %s3912_s6 = sshll.u32 %s6232_s27, 4  ;;  %s3913_s6 = int_to_ptr.vmem [resolvable:$true] %s3912_s6 }
 0x411   :  { %3856 = vmatpush.bf16.msra.mxu1 %v5948_v39  ;;  %v5946_v42 = vld [vmem:[#allocation4 + $0x68] sm:$0xff]  ;;  %v5937_v53 = vld [vmem:[#allocation4 + $0x20] sm:$0xff]  ;;  %v5936_v31 = vld [vmem:[#allocation4 + $0x18] sm:$0xff] }
 0x412   :  { %v5945_v30 = vld [vmem:[#allocation4 + $0x60] sm:$0xff]  ;;  %v5944_v62 = vld [vmem:[#allocation4 + $0x58] sm:$0xff]  ;;  %v5935_v32 = vld [vmem:[#allocation4 + $0x10] sm:$0xff] }
 0x413   :  { %v5943_v35 = vld [vmem:[#allocation4 + $0x50] sm:$0xff]  ;;  %v5934_v38 = vld [vmem:[#allocation4 + $0x8] sm:$0xff]  ;;  %v5933_v36 = vld [vmem:[#allocation4] sm:$0xff] }
 0x414   :  { %3844 = vmatpush.bf16.msra.mxu0 %v5939_v29  ;;  %v5942_v54 = vld [vmem:[#allocation4 + $0x48] sm:$0xff]  ;;  %v5941_v4 = vld [vmem:[#allocation4 + $0x40] sm:$0xff] }
 0x415   :  { %3857 = vmatpush.bf16.msra.mxu1 %v5947_v58  ;;  %v5989_v6 = vld [vmem:[%s6704_s8] ss:$0 sm:$0xff]  ;;  %v3897_v18 = vld [vmem:[%s6704_s8 + $0x1] sm:$0x1]  ;;  %v3899_v51 = vld [vmem:[%s6704_s8 + $0x2] sm:$0x1] }
 0x418   :  { %3845 = vmatpush.bf16.msra.mxu0 %v5938_v49 }
 0x419   :  { %3858 = vmatpush.bf16.msra.mxu1 %v5946_v42 }
 0x41c   :  { %3846 = vmatpush.bf16.msra.mxu0 %v5937_v53 }
 0x41d   :  { %3859 = vmatpush.bf16.msra.mxu1 %v5945_v30 }
 0x420   :  { %3847 = vmatpush.bf16.msra.mxu0 %v5936_v31 }
 0x421   :  { %3860 = vmatpush.bf16.msra.mxu1 %v5944_v62 }
 0x424   :  { %3848 = vmatpush.bf16.msra.mxu0 %v5935_v32 }
 0x425   :  { %3861 = vmatpush.bf16.msra.mxu1 %v5943_v35 }
 0x428   :  { %3849 = vmatpush.bf16.msra.mxu0 %v5934_v38 }
 0x429   :  { %3862 = vmatpush.bf16.msra.mxu1 %v5942_v54 }
 0x42c   :  { %3850 = vmatpush.bf16.msra.mxu0 %v5933_v36 }
 0x42d   :  { %3863 = vmatpush.bf16.msra.mxu1 %v5941_v4 }
 0x42f   :  { %3851 = vmatmul.bf16.vlgmr.msra.gmra.mxu0 %v3707_v27 }
 0x430   :  { %3864 = vmatmul.bf16.vlgmr.msra.gmra.mxu1 %v3708_v63 }
 0x4ac   :  { %v3852_v13 = vpop.f32.mrf.mxu0 }
 0x4ad   :  { %v3865_v9 = vpop.f32.mrf.mxu1  ;;  %v3853_v1 = vadd.f32 %v5989_v6, %v3852_v13 }
 0x4af   :  { %v3866_v33 = vadd.f32 %v3865_v9, %v3853_v1 }
 0x4b1   :  { %v3869_v56 = vmax.f32 %v3866_v33, 0.0 }
 0x4b3   :  { %v3870_v0 = vrot.slane %v3869_v56, 4 }
 0x4b4   :  { %v3854_v2 = vpop.f32.mrf.mxu0 }
 0x4b5   :  { %v3867_v5 = vpop.f32.mrf.mxu1  ;;  %v3871_v47 = vadd.f32 %v3870_v0, %v3869_v56 }
 0x4b7   :  { %v3872_v10 = vrot.slane %v3871_v47, 2 }
 0x4b9   :  { %v3873_v52 = vadd.f32 %v3872_v10, %v3871_v47 }
 0x4bb   :  { %v3874_v23 = vrot.slane %v3873_v52, 1 }
 0x4bd   :  { %v3875_v25 = vadd.f32 %v3874_v23, %v3873_v52 }
 0x4bf   :  { %v3876_v60 = vmul.f32 0.125, %v3875_v25 }
 0x4c1   :  { %v3877_v59 = vsub.f32 %v3869_v56, %v3876_v60 }
 0x4c3   :  { %v3878_v14 = vmul.f32 %v3877_v59, %v3877_v59 }
 0x4c5   :  { %v3879_v48 = vrot.slane %v3878_v14, 4 }
 0x4c7   :  { %v3880_v8 = vadd.f32 %v3879_v48, %v3878_v14 }
 0x4c9   :  { %v3881_v7 = vrot.slane %v3880_v8, 2 }
 0x4cb   :  { %v3882_v11 = vadd.f32 %v3881_v7, %v3880_v8 }
 0x4cd   :  { %v3883_v44 = vrot.slane %v3882_v11, 1 }
 0x4cf   :  { %v3884_v45 = vadd.f32 %v3883_v44, %v3882_v11 }
 0x4d1   :  { %v3885_v15 = vmul.f32 0.125, %v3884_v45 }
 0x4d3   :  { %v3886_v50 = vadd.f32 1e-05, %v3885_v15 }
 0x4d5   :  { %5990 = vrsqrt.f32 %v3886_v50  ;;  %vm3893_vm2 = vweird.f32 %v3886_v50 }
 0x4db   :  { %v5991_v17 = vpop.eup %5990 }
 0x4dc   :  { %v3888_v37 = vmul.f32 %v5991_v17, %v3886_v50  ;;  %vm3894_vm8 = vweird.f32 %v5991_v17 }
 0x4dd   :  { %vm3895_vm3 = vmor %vm3893_vm2, %vm3894_vm8 }
 0x4de   :  { %v3889_v55 = vmul.f32 %v5991_v17, %v3888_v37 }
 0x4e0   :  { %v3890_v40 = vmul.f32 0.5, %v3889_v55 }
 0x4e2   :  { %v3891_v41 = vsub.f32 1.5, %v3890_v40 }
 0x4e4   :  { %v3892_v46 = vmul.f32 %v5991_v17, %v3891_v41 }
 0x4e6   :  { %v3896_v61 = vsel %vm3895_vm3, %v5991_v17, %v3892_v46 }
 0x4e7   :  { %v3898_v19 = vmul.f32 %v3897_v18, %v3896_v61 }
 0x4e9   :  { %v3900_v21 = vmul.f32 %v3898_v19, %v3876_v60  ;;  %v3902_v12 = vperm.slane %v3898_v19, 0 }
 0x4eb   :  { %v3901_v20 = vsub.f32 %v3899_v51, %v3900_v21  ;;  %v3903_v34 = vmul.f32 %v3902_v12, %v3869_v56 }
 0x4ed   :  { %v3904_v16 = vperm.slane %v3901_v20, 0 }
 0x4ef   :  { %v3905_v3 = vadd.f32 %v3904_v16, %v3903_v34 }
 0x4f1   :  { %3906 = vst [vmem:[#allocation15] sm:$0xff] %v3905_v3 }
 0x4f2   :  { %3917 = dma.vmem_to_hbm [thread:$0]  %s3913_s6, 128, %s3915_s30, [#allocation8]  }
 0x4f3   :  { %6220 = dma.done.wait [#allocation8], 128  }
 0x4f4   :  { %6221 = vsyncadd [#allocation8], 4294967168 }
 0x4f5   :  { %3922 = vsyncpa [#allocation7], 1 }
 0x4f6   :  { %3923 = vsyncpa [#allocation10], 1 }
 0x4f7   :  { %3924 = vsyncpa [#allocation13], 1 }
 0x4f8   :  { %3925 = vsyncpa [#allocation8], 1 }
 0x4f9   :  { %3926 = vsyncmov [#allocation5] }
 0x4fc   :  { %s3927_s8 = vpop.sfrf %3926 }
 0x4fd   :  { %p5546_p0 = scmp.ne.s32.totalorder %s3927_s8, 0 }
 0x4ff   :  { %3931 = shalt.err (%p5546_p0)  }
 0x500   :  { %3933 = vsyncmov [#allocation5 + $0x1] }
 0x503   :  { %s3934_s10 = vpop.sfrf %3933 }
 0x504   :  { %p5547_p1 = scmp.ne.s32.totalorder %s3934_s10, 0 }
 0x506   :  { %3938 = shalt.err (%p5547_p1)  }
 0x507   :  { %3940 = vsyncmov [#allocation5 + $0x2] }
 0x50a   :  { %s3941_s9 = vpop.sfrf %3940 }
 0x50b   :  { %p5548_p2 = scmp.ne.s32.totalorder %s3941_s9, 0 }
 0x50d   :  { %3945 = shalt.err (%p5548_p2)  }

</bundles_post_ra>
